<compile_context>
chip_gen: v6e
topology: v6e:2x2x1
jax: 0.10.0
libtpu: 0.0.40
codegen_flags: <defaults>
</compile_context>

<pallas_src>
import jax
import jax.numpy as jnp
from jax.experimental import pallas as pl
from jax.experimental.pallas import tpu as pltpu

# ----------------------------- configuration --------------------------------
N_TEXT_FEATURES = 768          # TextAndVideoModel.n_text_features
C_IN = 4                       # frame input channels
IMG_HW = 16                    # frame spatial size (H = W = 16)
HW = IMG_HW * IMG_HW           # 256 (lane axis of the conv)
C_IMG = 32                     # image_model.features[-1].out_channels
HIDDEN = 32                    # Config.gru_hidden_size
H_PAD = 128                    # padded per-gate / GRU-state width (lane group)
GATES = 3 * H_PAD              # padded r|z|n concat width
N_CLASSES = 4
NC_PAD = 128                   # lane-dense padded class dimension
T_FRAMES = 8                   # frames per video sample
SEQ_LEN = 8                    # text tokens
VOCAB = 100
BATCH = 2


# ----------------------------- fused kernel ----------------------------------
def fused_forward_kernel(frames_ref, emb_ref, mask_ref,
                         conv_w_ref, conv_b_ref,
                         pool_w_hbm, pool_b_ref,
                         wih_ref, whh_ref, bih_ref, bhh_ref,
                         fc_wh_ref, fc_wt_hbm, fc_b_ref,
                         out_ref,
                         pool_w_vmem, fc_wt_vmem, feat_vmem, dma_sem):
    # frames_ref: (B, T, C_in*HW) f32     emb_ref: (B, S, 768) bf16
    # mask_ref:   (B, S) f32
    # conv_w_ref: (C_img, C_in) f32       conv_b_ref: (C_img, 1) f32
    #   (conv_b stays (C_img,1): it broadcasts along the sublane axis of the
    #    (B, C_img, HW) conv tile; a (1,C_img) layout would need a transpose.)
    # pool_w_hbm: (768, 768) bf16 in HBM  pool_b_ref: (1, 768) f32
    # wih: (C_img, 384) bf16  whh: (128, 384) bf16  bih/bhh: (1, 384) f32
    #   gate order r, z, n at 128-lane offsets 0 / 128 / 256 (cols 0:32 real)
    # fc_wh: (128, NC_PAD) bf16  fc_wt_hbm: (768, NC_PAD) bf16 in HBM
    # fc_b: (1, NC_PAD) f32               out_ref: (B, NC_PAD) f32
    B, T, CHW = frames_ref.shape

    # ---- start weight DMAs first so they overlap the video/GRU compute ----
    pool_cp = pltpu.make_async_copy(pool_w_hbm, pool_w_vmem, dma_sem.at[0])
    pool_cp.start()
    fcwt_cp = pltpu.make_async_copy(fc_wt_hbm, fc_wt_vmem, dma_sem.at[1])
    fcwt_cp.start()

    # ---- video branch: 1x1 conv (VPU FMA over C_in) + ReLU + mean over HW ----
    # TODO(synk): EfficientNet.features replaced by a 1x1 conv + ReLU stand-in.
    bias = conv_b_ref[...][None, :, :]                       # (1, C_img, 1)
    w_cols = [conv_w_ref[:, c:c + 1][None, :, :] for c in range(C_IN)]

    @pl.loop(0, T)                                            # real scf.for:
    def _(t):                                                 # bounds live range
        x_t = frames_ref[:, pl.ds(t, 1), :].reshape(B, CHW)   # (B, C_in*HW)
        y = bias
        for c in range(C_IN):                                 # static 256-lane slices
            y = y + x_t[:, c * HW:(c + 1) * HW][:, None, :] * w_cols[c]
        y = jnp.maximum(y, 0.0)                               # ReLU (f32)
        feat_vmem[t] = jnp.sum(y, axis=-1) * (1.0 / HW)       # (B, C_img)

    # GRU input projections for all timesteps in one bf16 matmul.
    feat = feat_vmem[...]                                     # (T, B, C_img) f32
    feat_bf = feat.reshape(T * B, C_IMG).astype(jnp.bfloat16)
    gx = (jnp.dot(feat_bf, wih_ref[...],
                  preferred_element_type=jnp.float32)
          + bih_ref[...])                                     # (T*B, 384) f32
    gx = gx.reshape(T, B, GATES)

    # Batched GRU recurrence, fully unrolled over T (static), 128-aligned gates.
    h = jnp.zeros((B, H_PAD), jnp.float32)                    # pad lanes stay 0
    for t in range(T):
        gh = (jnp.dot(h.astype(jnp.bfloat16), whh_ref[...],
                      preferred_element_type=jnp.float32)
              + bhh_ref[...])                                 # (B, 384) f32
        gxt = gx[t]                                           # (B, 384)
        r = jax.nn.sigmoid(gxt[:, 0:H_PAD] + gh[:, 0:H_PAD])
        z = jax.nn.sigmoid(gxt[:, H_PAD:2 * H_PAD] + gh[:, H_PAD:2 * H_PAD])
        n = jnp.tanh(gxt[:, 2 * H_PAD:3 * H_PAD] + r * gh[:, 2 * H_PAD:3 * H_PAD])
        h = (1.0 - z) * n + z * h

    # ---- text branch: masked-mean of token embeddings (in-kernel glue) ----
    # TODO(synk): full BERT encoder replaced by embedding + masked-mean glue;
    # the pooler dense+tanh (the actual pooler_output math) runs below.
    mask = mask_ref[...][:, :, None]                          # (B, S, 1) f32
    emb = emb_ref[...].astype(jnp.float32)                    # (B, S, 768) f32
    ssum = jnp.sum(emb * mask, axis=1)                        # (B, 768)
    cnt = jnp.maximum(jnp.sum(mask, axis=1), 1.0)             # (B, 1)
    hidden_bf = (ssum / cnt).astype(jnp.bfloat16)             # (B, 768) bf16

    # BERT pooler dense + tanh (pool_w DMA has been hidden behind the above).
    pool_cp.wait()
    text = jnp.tanh(
        jnp.dot(hidden_bf, pool_w_vmem[...],
                preferred_element_type=jnp.float32)
        + pool_b_ref[...])                                    # (B, 768) f32

    # ---- fc over concat([h, text]) + softmax, padded to 128 lanes ----
    fcwt_cp.wait()
    logits = (jnp.dot(h.astype(jnp.bfloat16), fc_wh_ref[...],
                      preferred_element_type=jnp.float32)
              + jnp.dot(text.astype(jnp.bfloat16), fc_wt_vmem[...],
                        preferred_element_type=jnp.float32)
              + fc_b_ref[...])                                # (B, NC_PAD) f32
    m = jnp.max(logits, axis=-1, keepdims=True)
    e = jnp.exp(logits - m)                                   # pad lanes -> 0
    s = jnp.sum(e, axis=-1, keepdims=True)
    out_ref[...] = (e / s).astype(out_ref.dtype)              # exact divide


def fused_forward(frames_flat, emb_tok, mask, p):
    b = frames_flat.shape[0]
    vmem = lambda: pl.BlockSpec(memory_space=pltpu.MemorySpace.VMEM)
    hbm = lambda: pl.BlockSpec(memory_space=pl.ANY)   # stays in HBM, manual DMA
    return pl.pallas_call(
        fused_forward_kernel,
        out_shape=jax.ShapeDtypeStruct((b, NC_PAD), jnp.float32),
        in_specs=[vmem(), vmem(), vmem(),             # frames, emb, mask
                  vmem(), vmem(),                     # conv_w, conv_b
                  hbm(), vmem(),                      # pool_w (manual), pool_b
                  vmem(), vmem(), vmem(), vmem(),     # wih, whh, bih, bhh
                  vmem(), hbm(), vmem()],             # fc_wh, fc_wt (manual), fc_b
        out_specs=vmem(),
        scratch_shapes=[
            pltpu.VMEM((N_TEXT_FEATURES, N_TEXT_FEATURES), jnp.bfloat16),  # pool_w
            pltpu.VMEM((N_TEXT_FEATURES, NC_PAD), jnp.bfloat16),           # fc_wt
            pltpu.VMEM((T_FRAMES, b, C_IMG), jnp.float32),                 # feat
            pltpu.SemaphoreType.DMA((2,)),
        ],
    )(frames_flat, emb_tok, mask,
      p["conv_w"], p["conv_b"],
      p["pool_w"], p["pool_b"],
      p["wih"], p["whh"], p["bih"], p["bhh"],
      p["fc_wh"], p["fc_wt"], p["fc_b"])


# ----------------------------- parameter setup -------------------------------
def _pad_gates(w, rows_pad):
    """(rows, 3*HIDDEN) -> (rows_pad, 3*H_PAD), each gate at a 128-lane offset."""
    out = jnp.zeros((rows_pad, GATES), w.dtype)
    for g in range(3):
        out = out.at[:w.shape[0], g * H_PAD:g * H_PAD + HIDDEN].set(
            w[:, g * HIDDEN:(g + 1) * HIDDEN])
    return out


def init_params(key):
    ks = jax.random.split(key, 12)
    s = 0.1
    conv_w = s * jax.random.normal(ks[0], (C_IMG, C_IN), jnp.float32)
    conv_b = s * jax.random.normal(ks[1], (C_IMG, 1), jnp.float32)
    emb = (s * jax.random.normal(ks[2], (VOCAB, N_TEXT_FEATURES),
                                 jnp.float32)).astype(jnp.bfloat16)
    pool_w = (s * jax.random.normal(ks[3], (N_TEXT_FEATURES, N_TEXT_FEATURES),
                                    jnp.float32)).astype(jnp.bfloat16)
    pool_b = s * jax.random.normal(ks[4], (1, N_TEXT_FEATURES), jnp.float32)
    wih = s * jax.random.normal(ks[5], (C_IMG, 3 * HIDDEN), jnp.float32)
    whh = s * jax.random.normal(ks[6], (HIDDEN, 3 * HIDDEN), jnp.float32)
    bih = s * jax.random.normal(ks[7], (1, 3 * HIDDEN), jnp.float32)
    bhh = s * jax.random.normal(ks[8], (1, 3 * HIDDEN), jnp.float32)
    fc_wh = s * jax.random.normal(ks[9], (HIDDEN, N_CLASSES), jnp.float32)
    fc_wt = s * jax.random.normal(ks[10], (N_TEXT_FEATURES, N_CLASSES), jnp.float32)
    fc_b = s * jax.random.normal(ks[11], (1, N_CLASSES), jnp.float32)

    # GRU weights: gates padded to 128-lane blocks, state padded to 128 lanes,
    # stored bf16 (matmul operands); biases stay f32 (elementwise path).
    wih_p = _pad_gates(wih, C_IMG).astype(jnp.bfloat16)
    whh_p = _pad_gates(whh, H_PAD).astype(jnp.bfloat16)
    bih_p = _pad_gates(bih, 1)
    bhh_p = _pad_gates(bhh, 1)

    # Lane-dense head: pad output width to 128; pad lanes get weight 0 and
    # bias -1e30 (f32 logits, max-subtracted) so softmax assigns them prob 0.
    fc_wh_p = (jnp.zeros((H_PAD, NC_PAD), jnp.float32)
               .at[:HIDDEN, :N_CLASSES].set(fc_wh)).astype(jnp.bfloat16)
    fc_wt_p = (jnp.zeros((N_TEXT_FEATURES, NC_PAD), jnp.float32)
               .at[:, :N_CLASSES].set(fc_wt)).astype(jnp.bfloat16)
    fc_b_p = jnp.full((1, NC_PAD), -1e30, jnp.float32).at[:, :N_CLASSES].set(fc_b)

    return dict(conv_w=conv_w, conv_b=conv_b, emb=emb,
                pool_w=pool_w, pool_b=pool_b,
                wih=wih_p, whh=whh_p, bih=bih_p, bhh=bhh_p,
                fc_wh=fc_wh_p, fc_wt=fc_wt_p, fc_b=fc_b_p)


# ------------------------------- forward pass --------------------------------
@jax.jit
def text_and_video_forward(params, input_ids, attention_mask, frames):
    # frames: (B, T, C_in, H, W) -> (B, T, C_in*H*W); fully (8,128)-dense block,
    # channel slices land on static 256-lane offsets inside the kernel.
    b, t, cin, hh, ww = frames.shape
    frames_flat = frames.reshape(b, t, cin * hh * ww)

    # Only the embedding gather stays in XLA; masked-mean + pooler dense+tanh
    # run inside the fused kernel.
    emb_tok = params["emb"][input_ids]                       # (B, S, 768) bf16
    mask = attention_mask.astype(jnp.float32)                # (B, S)

    probs_pad = fused_forward(frames_flat, emb_tok, mask, params)  # (B, NC_PAD)
    return probs_pad[:, :N_CLASSES]


# ----------------------------------- main ------------------------------------
if __name__ == "__main__":
    key = jax.random.PRNGKey(0)
    k_params, k_ids, k_frames = jax.random.split(key, 3)

    params = init_params(k_params)
    input_ids = jax.random.randint(k_ids, (BATCH, SEQ_LEN), 0, VOCAB, dtype=jnp.int32)
    attention_mask = jnp.ones((BATCH, SEQ_LEN), dtype=jnp.int32).at[:, SEQ_LEN - 2:].set(0)
    frames = jax.random.normal(k_frames, (BATCH, T_FRAMES, C_IN, IMG_HW, IMG_HW),
                               jnp.float32)

    probs = text_and_video_forward(params, input_ids, attention_mask, frames)
    probs = jax.block_until_ready(probs)

    assert probs.shape == (BATCH, N_CLASSES), probs.shape
    assert bool(jnp.all(jnp.isfinite(probs)))
    row_sums = jnp.sum(probs, axis=-1)
    assert bool(jnp.all(jnp.abs(row_sums - 1.0) < 1e-3)), row_sums

    print("KERNEL_OK")
</pallas_src>

<mosaic_0001>
module attributes {stable_mosaic.version = 11 : i64} {
  func.func @fused_forward_kernel(%arg0: memref<2x8x1024xf32, #tpu.memory_space<vmem>>, %arg1: memref<2x8x768xbf16, #tpu.memory_space<vmem>>, %arg2: memref<2x8xf32, #tpu.memory_space<vmem>>, %arg3: memref<32x4xf32, #tpu.memory_space<vmem>>, %arg4: memref<32x1xf32, #tpu.memory_space<vmem>>, %arg5: memref<768x768xbf16, #tpu.memory_space<any>>, %arg6: memref<1x768xf32, #tpu.memory_space<vmem>>, %arg7: memref<32x384xbf16, #tpu.memory_space<vmem>>, %arg8: memref<128x384xbf16, #tpu.memory_space<vmem>>, %arg9: memref<1x384xf32, #tpu.memory_space<vmem>>, %arg10: memref<1x384xf32, #tpu.memory_space<vmem>>, %arg11: memref<128x128xbf16, #tpu.memory_space<vmem>>, %arg12: memref<768x128xbf16, #tpu.memory_space<any>>, %arg13: memref<1x128xf32, #tpu.memory_space<vmem>>, %arg14: memref<2x128xf32, #tpu.memory_space<vmem>>, %arg15: memref<768x768xbf16, #tpu.memory_space<vmem>>, %arg16: memref<768x128xbf16, #tpu.memory_space<vmem>>, %arg17: memref<8x2x32xf32, #tpu.memory_space<vmem>>, %arg18: memref<2x!tpu.dma_semaphore, #tpu.memory_space<semaphore_mem>>) attributes {dimension_semantics = [], scalar_prefetch = 0 : i64, scratch_operands = 4 : i64, tpu.core_type = #tpu.core_type<tc>} {
    %c0_i32 = arith.constant 0 : i32
    %0 = tpu.memref_slice %arg18[%c0_i32] : memref<2x!tpu.dma_semaphore, #tpu.memory_space<semaphore_mem>> -> memref<1x!tpu.dma_semaphore, #tpu.memory_space<semaphore_mem>>
    %1 = tpu.memref_squeeze %0 : memref<1x!tpu.dma_semaphore, #tpu.memory_space<semaphore_mem>> -> memref<!tpu.dma_semaphore, #tpu.memory_space<semaphore_mem>>
    tpu.enqueue_dma source(%arg5 : memref<768x768xbf16, #tpu.memory_space<any>>) target(%arg15 : memref<768x768xbf16, #tpu.memory_space<vmem>>) target_semaphore(%1 : memref<!tpu.dma_semaphore, #tpu.memory_space<semaphore_mem>>)
    %c1_i32 = arith.constant 1 : i32
    %2 = tpu.memref_slice %arg18[%c1_i32] : memref<2x!tpu.dma_semaphore, #tpu.memory_space<semaphore_mem>> -> memref<1x!tpu.dma_semaphore, #tpu.memory_space<semaphore_mem>>
    %3 = tpu.memref_squeeze %2 : memref<1x!tpu.dma_semaphore, #tpu.memory_space<semaphore_mem>> -> memref<!tpu.dma_semaphore, #tpu.memory_space<semaphore_mem>>
    tpu.enqueue_dma source(%arg12 : memref<768x128xbf16, #tpu.memory_space<any>>) target(%arg16 : memref<768x128xbf16, #tpu.memory_space<vmem>>) target_semaphore(%3 : memref<!tpu.dma_semaphore, #tpu.memory_space<semaphore_mem>>)
    %c0 = arith.constant 0 : index
    %c0_0 = arith.constant 0 : index
    %4 = vector.load %arg4[%c0, %c0_0] : memref<32x1xf32, #tpu.memory_space<vmem>>, vector<32x1xf32>
    %5 = vector.shape_cast %4 : vector<32x1xf32> to vector<1x32x1xf32>
    %c0_1 = arith.constant 0 : index
    %c0_2 = arith.constant 0 : index
    %6 = vector.load %arg3[%c0_1, %c0_2] : memref<32x4xf32, #tpu.memory_space<vmem>>, vector<32x1xf32>
    %7 = vector.shape_cast %6 : vector<32x1xf32> to vector<1x32x1xf32>
    %c0_3 = arith.constant 0 : index
    %c1 = arith.constant 1 : index
    %8 = vector.load %arg3[%c0_3, %c1] : memref<32x4xf32, #tpu.memory_space<vmem>>, vector<32x1xf32>
    %9 = vector.shape_cast %8 : vector<32x1xf32> to vector<1x32x1xf32>
    %c0_4 = arith.constant 0 : index
    %c2 = arith.constant 2 : index
    %10 = vector.load %arg3[%c0_4, %c2] : memref<32x4xf32, #tpu.memory_space<vmem>>, vector<32x1xf32>
    %11 = vector.shape_cast %10 : vector<32x1xf32> to vector<1x32x1xf32>
    %c0_5 = arith.constant 0 : index
    %c3 = arith.constant 3 : index
    %12 = vector.load %arg3[%c0_5, %c3] : memref<32x4xf32, #tpu.memory_space<vmem>>, vector<32x1xf32>
    %13 = vector.shape_cast %12 : vector<32x1xf32> to vector<1x32x1xf32>
    %c0_i32_6 = arith.constant 0 : i32
    %c8_i32 = arith.constant 8 : i32
    %14 = arith.addi %c0_i32_6, %c8_i32 : i32
    %c1_i32_7 = arith.constant 1 : i32
    scf.for %arg19 = %c0_i32_6 to %14 step %c1_i32_7  : i32 {
      %c1_i32_108 = arith.constant 1 : i32
      %340 = arith.muli %arg19, %c1_i32_108 : i32
      %c0_i32_109 = arith.constant 0 : i32
      %341 = arith.addi %c0_i32_109, %340 : i32
      %c0_110 = arith.constant 0 : index
      %342 = arith.index_cast %341 : i32 to index
      %c0_111 = arith.constant 0 : index
      %343 = vector.load %arg0[%c0_110, %342, %c0_111] : memref<2x8x1024xf32, #tpu.memory_space<vmem>>, vector<2x1x1024xf32>
      %344 = vector.shape_cast %343 : vector<2x1x1024xf32> to vector<2x1024xf32>
      %345 = vector.extract_strided_slice %344 {offsets = [0, 0], sizes = [2, 256], strides = [1, 1]} : vector<2x1024xf32> to vector<2x256xf32>
      %346 = vector.shape_cast %345 : vector<2x256xf32> to vector<2x1x256xf32>
      %347 = vector.broadcast %346 : vector<2x1x256xf32> to vector<2x32x256xf32>
      %348 = vector.broadcast %7 : vector<1x32x1xf32> to vector<2x32x256xf32>
      %349 = arith.mulf %347, %348 : vector<2x32x256xf32>
      %350 = vector.broadcast %5 : vector<1x32x1xf32> to vector<2x32x256xf32>
      %351 = arith.addf %350, %349 : vector<2x32x256xf32>
      %352 = vector.extract_strided_slice %344 {offsets = [0, 256], sizes = [2, 256], strides = [1, 1]} : vector<2x1024xf32> to vector<2x256xf32>
      %353 = vector.shape_cast %352 : vector<2x256xf32> to vector<2x1x256xf32>
      %354 = vector.broadcast %353 : vector<2x1x256xf32> to vector<2x32x256xf32>
      %355 = vector.broadcast %9 : vector<1x32x1xf32> to vector<2x32x256xf32>
      %356 = arith.mulf %354, %355 : vector<2x32x256xf32>
      %357 = arith.addf %351, %356 : vector<2x32x256xf32>
      %358 = vector.extract_strided_slice %344 {offsets = [0, 512], sizes = [2, 256], strides = [1, 1]} : vector<2x1024xf32> to vector<2x256xf32>
      %359 = vector.shape_cast %358 : vector<2x256xf32> to vector<2x1x256xf32>
      %360 = vector.broadcast %359 : vector<2x1x256xf32> to vector<2x32x256xf32>
      %361 = vector.broadcast %11 : vector<1x32x1xf32> to vector<2x32x256xf32>
      %362 = arith.mulf %360, %361 : vector<2x32x256xf32>
      %363 = arith.addf %357, %362 : vector<2x32x256xf32>
      %364 = vector.extract_strided_slice %344 {offsets = [0, 768], sizes = [2, 256], strides = [1, 1]} : vector<2x1024xf32> to vector<2x256xf32>
      %365 = vector.shape_cast %364 : vector<2x256xf32> to vector<2x1x256xf32>
      %366 = vector.broadcast %365 : vector<2x1x256xf32> to vector<2x32x256xf32>
      %367 = vector.broadcast %13 : vector<1x32x1xf32> to vector<2x32x256xf32>
      %368 = arith.mulf %366, %367 : vector<2x32x256xf32>
      %369 = arith.addf %363, %368 : vector<2x32x256xf32>
      %cst_112 = arith.constant 0.000000e+00 : f32
      %370 = vector.broadcast %cst_112 : f32 to vector<2x32x256xf32>
      %371 = arith.maximumf %369, %370 : vector<2x32x256xf32>
      %cst_113 = arith.constant dense<0.000000e+00> : vector<2x32xf32>
      %372 = vector.multi_reduction <add>, %371, %cst_113 [2] : vector<2x32x256xf32> to vector<2x32xf32>
      %cst_114 = arith.constant 3.906250e-03 : f32
      %373 = vector.broadcast %cst_114 : f32 to vector<2x32xf32>
      %374 = arith.mulf %372, %373 : vector<2x32xf32>
      %375 = arith.index_cast %341 : i32 to index
      %c0_115 = arith.constant 0 : index
      %c0_116 = arith.constant 0 : index
      %376 = vector.load %arg17[%375, %c0_115, %c0_116] : memref<8x2x32xf32, #tpu.memory_space<vmem>>, vector<1x2x32xf32>
      %377 = vector.shape_cast %376 : vector<1x2x32xf32> to vector<2x32xf32>
      %378 = vector.shape_cast %374 : vector<2x32xf32> to vector<1x2x32xf32>
      tpu.vector_store %arg17[%375, %c0_115, %c0_116], %378 {strides = array<i32>} : memref<8x2x32xf32, #tpu.memory_space<vmem>>, vector<1x2x32xf32>,
    }
    %c8_i32_8 = arith.constant 8 : i32
    %c0_9 = arith.constant 0 : index
    %c0_10 = arith.constant 0 : index
    %c0_11 = arith.constant 0 : index
    %15 = vector.load %arg17[%c0_9, %c0_10, %c0_11] : memref<8x2x32xf32, #tpu.memory_space<vmem>>, vector<8x2x32xf32>
    %16 = vector.shape_cast %15 : vector<8x2x32xf32> to vector<16x32xf32>
    %17 = arith.truncf %16 : vector<16x32xf32> to vector<16x32xbf16>
    %c0_12 = arith.constant 0 : index
    %c0_13 = arith.constant 0 : index
    %18 = vector.load %arg7[%c0_12, %c0_13] : memref<32x384xbf16, #tpu.memory_space<vmem>>, vector<32x384xbf16>
    %cst = arith.constant dense<0.000000e+00> : vector<16x384xf32>
    %19 = tpu.matmul %17, %18, %cst {dimension_numbers = #tpu.dot_dimension_numbers<[1], [0], [0], [1], [0, 0, 1, 1], [], []>} : vector<16x32xbf16>, vector<32x384xbf16>, vector<16x384xf32> -> vector<16x384xf32>
    %c0_14 = arith.constant 0 : index
    %c0_15 = arith.constant 0 : index
    %20 = vector.load %arg9[%c0_14, %c0_15] : memref<1x384xf32, #tpu.memory_space<vmem>>, vector<1x384xf32>
    %21 = vector.broadcast %20 : vector<1x384xf32> to vector<16x384xf32>
    %22 = arith.addf %19, %21 : vector<16x384xf32>
    %23 = vector.shape_cast %22 : vector<16x384xf32> to vector<8x2x384xf32>
    %cst_16 = arith.constant 0.000000e+00 : f32
    %24 = vector.broadcast %cst_16 : f32 to vector<2x128xf32>
    %25 = arith.truncf %24 : vector<2x128xf32> to vector<2x128xbf16>
    %c0_17 = arith.constant 0 : index
    %c0_18 = arith.constant 0 : index
    %26 = vector.load %arg8[%c0_17, %c0_18] : memref<128x384xbf16, #tpu.memory_space<vmem>>, vector<128x384xbf16>
    %cst_19 = arith.constant dense<0.000000e+00> : vector<2x384xf32>
    %27 = tpu.matmul %25, %26, %cst_19 {dimension_numbers = #tpu.dot_dimension_numbers<[1], [0], [0], [1], [0, 0, 1, 1], [], []>} : vector<2x128xbf16>, vector<128x384xbf16>, vector<2x384xf32> -> vector<2x384xf32>
    %c0_20 = arith.constant 0 : index
    %c0_21 = arith.constant 0 : index
    %28 = vector.load %arg10[%c0_20, %c0_21] : memref<1x384xf32, #tpu.memory_space<vmem>>, vector<1x384xf32>
    %29 = vector.broadcast %28 : vector<1x384xf32> to vector<2x384xf32>
    %30 = arith.addf %27, %29 : vector<2x384xf32>
    %31 = vector.extract_strided_slice %23 {offsets = [0, 0, 0], sizes = [1, 2, 384], strides = [1, 1, 1]} : vector<8x2x384xf32> to vector<1x2x384xf32>
    %32 = vector.shape_cast %31 : vector<1x2x384xf32> to vector<2x384xf32>
    %33 = vector.extract_strided_slice %32 {offsets = [0, 0], sizes = [2, 128], strides = [1, 1]} : vector<2x384xf32> to vector<2x128xf32>
    %34 = vector.extract_strided_slice %30 {offsets = [0, 0], sizes = [2, 128], strides = [1, 1]} : vector<2x384xf32> to vector<2x128xf32>
    %35 = arith.addf %33, %34 : vector<2x128xf32>
    %36 = arith.negf %35 : vector<2x128xf32>
    %37 = math.exp %36 : vector<2x128xf32>
    %cst_22 = arith.constant 1.000000e+00 : f32
    %38 = vector.broadcast %cst_22 : f32 to vector<2x128xf32>
    %39 = arith.addf %38, %37 : vector<2x128xf32>
    %40 = arith.divf %38, %39 : vector<2x128xf32>
    %41 = vector.extract_strided_slice %32 {offsets = [0, 128], sizes = [2, 128], strides = [1, 1]} : vector<2x384xf32> to vector<2x128xf32>
    %42 = vector.extract_strided_slice %30 {offsets = [0, 128], sizes = [2, 128], strides = [1, 1]} : vector<2x384xf32> to vector<2x128xf32>
    %43 = arith.addf %41, %42 : vector<2x128xf32>
    %44 = arith.negf %43 : vector<2x128xf32>
    %45 = math.exp %44 : vector<2x128xf32>
    %cst_23 = arith.constant 1.000000e+00 : f32
    %46 = vector.broadcast %cst_23 : f32 to vector<2x128xf32>
    %47 = arith.addf %46, %45 : vector<2x128xf32>
    %48 = arith.divf %46, %47 : vector<2x128xf32>
    %49 = vector.extract_strided_slice %32 {offsets = [0, 256], sizes = [2, 128], strides = [1, 1]} : vector<2x384xf32> to vector<2x128xf32>
    %50 = vector.extract_strided_slice %30 {offsets = [0, 256], sizes = [2, 128], strides = [1, 1]} : vector<2x384xf32> to vector<2x128xf32>
    %51 = arith.mulf %40, %50 : vector<2x128xf32>
    %52 = arith.addf %49, %51 : vector<2x128xf32>
    %53 = math.tanh %52 : vector<2x128xf32>
    %cst_24 = arith.constant 1.000000e+00 : f32
    %54 = vector.broadcast %cst_24 : f32 to vector<2x128xf32>
    %55 = arith.subf %54, %48 : vector<2x128xf32>
    %56 = arith.mulf %55, %53 : vector<2x128xf32>
    %57 = arith.mulf %48, %24 : vector<2x128xf32>
    %58 = arith.addf %56, %57 : vector<2x128xf32>
    %59 = arith.truncf %58 : vector<2x128xf32> to vector<2x128xbf16>
    %c0_25 = arith.constant 0 : index
    %c0_26 = arith.constant 0 : index
    %60 = vector.load %arg8[%c0_25, %c0_26] : memref<128x384xbf16, #tpu.memory_space<vmem>>, vector<128x384xbf16>
    %cst_27 = arith.constant dense<0.000000e+00> : vector<2x384xf32>
    %61 = tpu.matmul %59, %60, %cst_27 {dimension_numbers = #tpu.dot_dimension_numbers<[1], [0], [0], [1], [0, 0, 1, 1], [], []>} : vector<2x128xbf16>, vector<128x384xbf16>, vector<2x384xf32> -> vector<2x384xf32>
    %c0_28 = arith.constant 0 : index
    %c0_29 = arith.constant 0 : index
    %62 = vector.load %arg10[%c0_28, %c0_29] : memref<1x384xf32, #tpu.memory_space<vmem>>, vector<1x384xf32>
    %63 = vector.broadcast %62 : vector<1x384xf32> to vector<2x384xf32>
    %64 = arith.addf %61, %63 : vector<2x384xf32>
    %65 = vector.extract_strided_slice %23 {offsets = [1, 0, 0], sizes = [1, 2, 384], strides = [1, 1, 1]} : vector<8x2x384xf32> to vector<1x2x384xf32>
    %66 = vector.shape_cast %65 : vector<1x2x384xf32> to vector<2x384xf32>
    %67 = vector.extract_strided_slice %66 {offsets = [0, 0], sizes = [2, 128], strides = [1, 1]} : vector<2x384xf32> to vector<2x128xf32>
    %68 = vector.extract_strided_slice %64 {offsets = [0, 0], sizes = [2, 128], strides = [1, 1]} : vector<2x384xf32> to vector<2x128xf32>
    %69 = arith.addf %67, %68 : vector<2x128xf32>
    %70 = arith.negf %69 : vector<2x128xf32>
    %71 = math.exp %70 : vector<2x128xf32>
    %cst_30 = arith.constant 1.000000e+00 : f32
    %72 = vector.broadcast %cst_30 : f32 to vector<2x128xf32>
    %73 = arith.addf %72, %71 : vector<2x128xf32>
    %74 = arith.divf %72, %73 : vector<2x128xf32>
    %75 = vector.extract_strided_slice %66 {offsets = [0, 128], sizes = [2, 128], strides = [1, 1]} : vector<2x384xf32> to vector<2x128xf32>
    %76 = vector.extract_strided_slice %64 {offsets = [0, 128], sizes = [2, 128], strides = [1, 1]} : vector<2x384xf32> to vector<2x128xf32>
    %77 = arith.addf %75, %76 : vector<2x128xf32>
    %78 = arith.negf %77 : vector<2x128xf32>
    %79 = math.exp %78 : vector<2x128xf32>
    %cst_31 = arith.constant 1.000000e+00 : f32
    %80 = vector.broadcast %cst_31 : f32 to vector<2x128xf32>
    %81 = arith.addf %80, %79 : vector<2x128xf32>
    %82 = arith.divf %80, %81 : vector<2x128xf32>
    %83 = vector.extract_strided_slice %66 {offsets = [0, 256], sizes = [2, 128], strides = [1, 1]} : vector<2x384xf32> to vector<2x128xf32>
    %84 = vector.extract_strided_slice %64 {offsets = [0, 256], sizes = [2, 128], strides = [1, 1]} : vector<2x384xf32> to vector<2x128xf32>
    %85 = arith.mulf %74, %84 : vector<2x128xf32>
    %86 = arith.addf %83, %85 : vector<2x128xf32>
    %87 = math.tanh %86 : vector<2x128xf32>
    %cst_32 = arith.constant 1.000000e+00 : f32
    %88 = vector.broadcast %cst_32 : f32 to vector<2x128xf32>
    %89 = arith.subf %88, %82 : vector<2x128xf32>
    %90 = arith.mulf %89, %87 : vector<2x128xf32>
    %91 = arith.mulf %82, %58 : vector<2x128xf32>
    %92 = arith.addf %90, %91 : vector<2x128xf32>
    %93 = arith.truncf %92 : vector<2x128xf32> to vector<2x128xbf16>
    %c0_33 = arith.constant 0 : index
    %c0_34 = arith.constant 0 : index
    %94 = vector.load %arg8[%c0_33, %c0_34] : memref<128x384xbf16, #tpu.memory_space<vmem>>, vector<128x384xbf16>
    %cst_35 = arith.constant dense<0.000000e+00> : vector<2x384xf32>
    %95 = tpu.matmul %93, %94, %cst_35 {dimension_numbers = #tpu.dot_dimension_numbers<[1], [0], [0], [1], [0, 0, 1, 1], [], []>} : vector<2x128xbf16>, vector<128x384xbf16>, vector<2x384xf32> -> vector<2x384xf32>
    %c0_36 = arith.constant 0 : index
    %c0_37 = arith.constant 0 : index
    %96 = vector.load %arg10[%c0_36, %c0_37] : memref<1x384xf32, #tpu.memory_space<vmem>>, vector<1x384xf32>
    %97 = vector.broadcast %96 : vector<1x384xf32> to vector<2x384xf32>
    %98 = arith.addf %95, %97 : vector<2x384xf32>
    %99 = vector.extract_strided_slice %23 {offsets = [2, 0, 0], sizes = [1, 2, 384], strides = [1, 1, 1]} : vector<8x2x384xf32> to vector<1x2x384xf32>
    %100 = vector.shape_cast %99 : vector<1x2x384xf32> to vector<2x384xf32>
    %101 = vector.extract_strided_slice %100 {offsets = [0, 0], sizes = [2, 128], strides = [1, 1]} : vector<2x384xf32> to vector<2x128xf32>
    %102 = vector.extract_strided_slice %98 {offsets = [0, 0], sizes = [2, 128], strides = [1, 1]} : vector<2x384xf32> to vector<2x128xf32>
    %103 = arith.addf %101, %102 : vector<2x128xf32>
    %104 = arith.negf %103 : vector<2x128xf32>
    %105 = math.exp %104 : vector<2x128xf32>
    %cst_38 = arith.constant 1.000000e+00 : f32
    %106 = vector.broadcast %cst_38 : f32 to vector<2x128xf32>
    %107 = arith.addf %106, %105 : vector<2x128xf32>
    %108 = arith.divf %106, %107 : vector<2x128xf32>
    %109 = vector.extract_strided_slice %100 {offsets = [0, 128], sizes = [2, 128], strides = [1, 1]} : vector<2x384xf32> to vector<2x128xf32>
    %110 = vector.extract_strided_slice %98 {offsets = [0, 128], sizes = [2, 128], strides = [1, 1]} : vector<2x384xf32> to vector<2x128xf32>
    %111 = arith.addf %109, %110 : vector<2x128xf32>
    %112 = arith.negf %111 : vector<2x128xf32>
    %113 = math.exp %112 : vector<2x128xf32>
    %cst_39 = arith.constant 1.000000e+00 : f32
    %114 = vector.broadcast %cst_39 : f32 to vector<2x128xf32>
    %115 = arith.addf %114, %113 : vector<2x128xf32>
    %116 = arith.divf %114, %115 : vector<2x128xf32>
    %117 = vector.extract_strided_slice %100 {offsets = [0, 256], sizes = [2, 128], strides = [1, 1]} : vector<2x384xf32> to vector<2x128xf32>
    %118 = vector.extract_strided_slice %98 {offsets = [0, 256], sizes = [2, 128], strides = [1, 1]} : vector<2x384xf32> to vector<2x128xf32>
    %119 = arith.mulf %108, %118 : vector<2x128xf32>
    %120 = arith.addf %117, %119 : vector<2x128xf32>
    %121 = math.tanh %120 : vector<2x128xf32>
    %cst_40 = arith.constant 1.000000e+00 : f32
    %122 = vector.broadcast %cst_40 : f32 to vector<2x128xf32>
    %123 = arith.subf %122, %116 : vector<2x128xf32>
    %124 = arith.mulf %123, %121 : vector<2x128xf32>
    %125 = arith.mulf %116, %92 : vector<2x128xf32>
    %126 = arith.addf %124, %125 : vector<2x128xf32>
    %127 = arith.truncf %126 : vector<2x128xf32> to vector<2x128xbf16>
    %c0_41 = arith.constant 0 : index
    %c0_42 = arith.constant 0 : index
    %128 = vector.load %arg8[%c0_41, %c0_42] : memref<128x384xbf16, #tpu.memory_space<vmem>>, vector<128x384xbf16>
    %cst_43 = arith.constant dense<0.000000e+00> : vector<2x384xf32>
    %129 = tpu.matmul %127, %128, %cst_43 {dimension_numbers = #tpu.dot_dimension_numbers<[1], [0], [0], [1], [0, 0, 1, 1], [], []>} : vector<2x128xbf16>, vector<128x384xbf16>, vector<2x384xf32> -> vector<2x384xf32>
    %c0_44 = arith.constant 0 : index
    %c0_45 = arith.constant 0 : index
    %130 = vector.load %arg10[%c0_44, %c0_45] : memref<1x384xf32, #tpu.memory_space<vmem>>, vector<1x384xf32>
    %131 = vector.broadcast %130 : vector<1x384xf32> to vector<2x384xf32>
    %132 = arith.addf %129, %131 : vector<2x384xf32>
    %133 = vector.extract_strided_slice %23 {offsets = [3, 0, 0], sizes = [1, 2, 384], strides = [1, 1, 1]} : vector<8x2x384xf32> to vector<1x2x384xf32>
    %134 = vector.shape_cast %133 : vector<1x2x384xf32> to vector<2x384xf32>
    %135 = vector.extract_strided_slice %134 {offsets = [0, 0], sizes = [2, 128], strides = [1, 1]} : vector<2x384xf32> to vector<2x128xf32>
    %136 = vector.extract_strided_slice %132 {offsets = [0, 0], sizes = [2, 128], strides = [1, 1]} : vector<2x384xf32> to vector<2x128xf32>
    %137 = arith.addf %135, %136 : vector<2x128xf32>
    %138 = arith.negf %137 : vector<2x128xf32>
    %139 = math.exp %138 : vector<2x128xf32>
    %cst_46 = arith.constant 1.000000e+00 : f32
    %140 = vector.broadcast %cst_46 : f32 to vector<2x128xf32>
    %141 = arith.addf %140, %139 : vector<2x128xf32>
    %142 = arith.divf %140, %141 : vector<2x128xf32>
    %143 = vector.extract_strided_slice %134 {offsets = [0, 128], sizes = [2, 128], strides = [1, 1]} : vector<2x384xf32> to vector<2x128xf32>
    %144 = vector.extract_strided_slice %132 {offsets = [0, 128], sizes = [2, 128], strides = [1, 1]} : vector<2x384xf32> to vector<2x128xf32>
    %145 = arith.addf %143, %144 : vector<2x128xf32>
    %146 = arith.negf %145 : vector<2x128xf32>
    %147 = math.exp %146 : vector<2x128xf32>
    %cst_47 = arith.constant 1.000000e+00 : f32
    %148 = vector.broadcast %cst_47 : f32 to vector<2x128xf32>
    %149 = arith.addf %148, %147 : vector<2x128xf32>
    %150 = arith.divf %148, %149 : vector<2x128xf32>
    %151 = vector.extract_strided_slice %134 {offsets = [0, 256], sizes = [2, 128], strides = [1, 1]} : vector<2x384xf32> to vector<2x128xf32>
    %152 = vector.extract_strided_slice %132 {offsets = [0, 256], sizes = [2, 128], strides = [1, 1]} : vector<2x384xf32> to vector<2x128xf32>
    %153 = arith.mulf %142, %152 : vector<2x128xf32>
    %154 = arith.addf %151, %153 : vector<2x128xf32>
    %155 = math.tanh %154 : vector<2x128xf32>
    %cst_48 = arith.constant 1.000000e+00 : f32
    %156 = vector.broadcast %cst_48 : f32 to vector<2x128xf32>
    %157 = arith.subf %156, %150 : vector<2x128xf32>
    %158 = arith.mulf %157, %155 : vector<2x128xf32>
    %159 = arith.mulf %150, %126 : vector<2x128xf32>
    %160 = arith.addf %158, %159 : vector<2x128xf32>
    %161 = arith.truncf %160 : vector<2x128xf32> to vector<2x128xbf16>
    %c0_49 = arith.constant 0 : index
    %c0_50 = arith.constant 0 : index
    %162 = vector.load %arg8[%c0_49, %c0_50] : memref<128x384xbf16, #tpu.memory_space<vmem>>, vector<128x384xbf16>
    %cst_51 = arith.constant dense<0.000000e+00> : vector<2x384xf32>
    %163 = tpu.matmul %161, %162, %cst_51 {dimension_numbers = #tpu.dot_dimension_numbers<[1], [0], [0], [1], [0, 0, 1, 1], [], []>} : vector<2x128xbf16>, vector<128x384xbf16>, vector<2x384xf32> -> vector<2x384xf32>
    %c0_52 = arith.constant 0 : index
    %c0_53 = arith.constant 0 : index
    %164 = vector.load %arg10[%c0_52, %c0_53] : memref<1x384xf32, #tpu.memory_space<vmem>>, vector<1x384xf32>
    %165 = vector.broadcast %164 : vector<1x384xf32> to vector<2x384xf32>
    %166 = arith.addf %163, %165 : vector<2x384xf32>
    %167 = vector.extract_strided_slice %23 {offsets = [4, 0, 0], sizes = [1, 2, 384], strides = [1, 1, 1]} : vector<8x2x384xf32> to vector<1x2x384xf32>
    %168 = vector.shape_cast %167 : vector<1x2x384xf32> to vector<2x384xf32>
    %169 = vector.extract_strided_slice %168 {offsets = [0, 0], sizes = [2, 128], strides = [1, 1]} : vector<2x384xf32> to vector<2x128xf32>
    %170 = vector.extract_strided_slice %166 {offsets = [0, 0], sizes = [2, 128], strides = [1, 1]} : vector<2x384xf32> to vector<2x128xf32>
    %171 = arith.addf %169, %170 : vector<2x128xf32>
    %172 = arith.negf %171 : vector<2x128xf32>
    %173 = math.exp %172 : vector<2x128xf32>
    %cst_54 = arith.constant 1.000000e+00 : f32
    %174 = vector.broadcast %cst_54 : f32 to vector<2x128xf32>
    %175 = arith.addf %174, %173 : vector<2x128xf32>
    %176 = arith.divf %174, %175 : vector<2x128xf32>
    %177 = vector.extract_strided_slice %168 {offsets = [0, 128], sizes = [2, 128], strides = [1, 1]} : vector<2x384xf32> to vector<2x128xf32>
    %178 = vector.extract_strided_slice %166 {offsets = [0, 128], sizes = [2, 128], strides = [1, 1]} : vector<2x384xf32> to vector<2x128xf32>
    %179 = arith.addf %177, %178 : vector<2x128xf32>
    %180 = arith.negf %179 : vector<2x128xf32>
    %181 = math.exp %180 : vector<2x128xf32>
    %cst_55 = arith.constant 1.000000e+00 : f32
    %182 = vector.broadcast %cst_55 : f32 to vector<2x128xf32>
    %183 = arith.addf %182, %181 : vector<2x128xf32>
    %184 = arith.divf %182, %183 : vector<2x128xf32>
    %185 = vector.extract_strided_slice %168 {offsets = [0, 256], sizes = [2, 128], strides = [1, 1]} : vector<2x384xf32> to vector<2x128xf32>
    %186 = vector.extract_strided_slice %166 {offsets = [0, 256], sizes = [2, 128], strides = [1, 1]} : vector<2x384xf32> to vector<2x128xf32>
    %187 = arith.mulf %176, %186 : vector<2x128xf32>
    %188 = arith.addf %185, %187 : vector<2x128xf32>
    %189 = math.tanh %188 : vector<2x128xf32>
    %cst_56 = arith.constant 1.000000e+00 : f32
    %190 = vector.broadcast %cst_56 : f32 to vector<2x128xf32>
    %191 = arith.subf %190, %184 : vector<2x128xf32>
    %192 = arith.mulf %191, %189 : vector<2x128xf32>
    %193 = arith.mulf %184, %160 : vector<2x128xf32>
    %194 = arith.addf %192, %193 : vector<2x128xf32>
    %195 = arith.truncf %194 : vector<2x128xf32> to vector<2x128xbf16>
    %c0_57 = arith.constant 0 : index
    %c0_58 = arith.constant 0 : index
    %196 = vector.load %arg8[%c0_57, %c0_58] : memref<128x384xbf16, #tpu.memory_space<vmem>>, vector<128x384xbf16>
    %cst_59 = arith.constant dense<0.000000e+00> : vector<2x384xf32>
    %197 = tpu.matmul %195, %196, %cst_59 {dimension_numbers = #tpu.dot_dimension_numbers<[1], [0], [0], [1], [0, 0, 1, 1], [], []>} : vector<2x128xbf16>, vector<128x384xbf16>, vector<2x384xf32> -> vector<2x384xf32>
    %c0_60 = arith.constant 0 : index
    %c0_61 = arith.constant 0 : index
    %198 = vector.load %arg10[%c0_60, %c0_61] : memref<1x384xf32, #tpu.memory_space<vmem>>, vector<1x384xf32>
    %199 = vector.broadcast %198 : vector<1x384xf32> to vector<2x384xf32>
    %200 = arith.addf %197, %199 : vector<2x384xf32>
    %201 = vector.extract_strided_slice %23 {offsets = [5, 0, 0], sizes = [1, 2, 384], strides = [1, 1, 1]} : vector<8x2x384xf32> to vector<1x2x384xf32>
    %202 = vector.shape_cast %201 : vector<1x2x384xf32> to vector<2x384xf32>
    %203 = vector.extract_strided_slice %202 {offsets = [0, 0], sizes = [2, 128], strides = [1, 1]} : vector<2x384xf32> to vector<2x128xf32>
    %204 = vector.extract_strided_slice %200 {offsets = [0, 0], sizes = [2, 128], strides = [1, 1]} : vector<2x384xf32> to vector<2x128xf32>
    %205 = arith.addf %203, %204 : vector<2x128xf32>
    %206 = arith.negf %205 : vector<2x128xf32>
    %207 = math.exp %206 : vector<2x128xf32>
    %cst_62 = arith.constant 1.000000e+00 : f32
    %208 = vector.broadcast %cst_62 : f32 to vector<2x128xf32>
    %209 = arith.addf %208, %207 : vector<2x128xf32>
    %210 = arith.divf %208, %209 : vector<2x128xf32>
    %211 = vector.extract_strided_slice %202 {offsets = [0, 128], sizes = [2, 128], strides = [1, 1]} : vector<2x384xf32> to vector<2x128xf32>
    %212 = vector.extract_strided_slice %200 {offsets = [0, 128], sizes = [2, 128], strides = [1, 1]} : vector<2x384xf32> to vector<2x128xf32>
    %213 = arith.addf %211, %212 : vector<2x128xf32>
    %214 = arith.negf %213 : vector<2x128xf32>
    %215 = math.exp %214 : vector<2x128xf32>
    %cst_63 = arith.constant 1.000000e+00 : f32
    %216 = vector.broadcast %cst_63 : f32 to vector<2x128xf32>
    %217 = arith.addf %216, %215 : vector<2x128xf32>
    %218 = arith.divf %216, %217 : vector<2x128xf32>
    %219 = vector.extract_strided_slice %202 {offsets = [0, 256], sizes = [2, 128], strides = [1, 1]} : vector<2x384xf32> to vector<2x128xf32>
    %220 = vector.extract_strided_slice %200 {offsets = [0, 256], sizes = [2, 128], strides = [1, 1]} : vector<2x384xf32> to vector<2x128xf32>
    %221 = arith.mulf %210, %220 : vector<2x128xf32>
    %222 = arith.addf %219, %221 : vector<2x128xf32>
    %223 = math.tanh %222 : vector<2x128xf32>
    %cst_64 = arith.constant 1.000000e+00 : f32
    %224 = vector.broadcast %cst_64 : f32 to vector<2x128xf32>
    %225 = arith.subf %224, %218 : vector<2x128xf32>
    %226 = arith.mulf %225, %223 : vector<2x128xf32>
    %227 = arith.mulf %218, %194 : vector<2x128xf32>
    %228 = arith.addf %226, %227 : vector<2x128xf32>
    %229 = arith.truncf %228 : vector<2x128xf32> to vector<2x128xbf16>
    %c0_65 = arith.constant 0 : index
    %c0_66 = arith.constant 0 : index
    %230 = vector.load %arg8[%c0_65, %c0_66] : memref<128x384xbf16, #tpu.memory_space<vmem>>, vector<128x384xbf16>
    %cst_67 = arith.constant dense<0.000000e+00> : vector<2x384xf32>
    %231 = tpu.matmul %229, %230, %cst_67 {dimension_numbers = #tpu.dot_dimension_numbers<[1], [0], [0], [1], [0, 0, 1, 1], [], []>} : vector<2x128xbf16>, vector<128x384xbf16>, vector<2x384xf32> -> vector<2x384xf32>
    %c0_68 = arith.constant 0 : index
    %c0_69 = arith.constant 0 : index
    %232 = vector.load %arg10[%c0_68, %c0_69] : memref<1x384xf32, #tpu.memory_space<vmem>>, vector<1x384xf32>
    %233 = vector.broadcast %232 : vector<1x384xf32> to vector<2x384xf32>
    %234 = arith.addf %231, %233 : vector<2x384xf32>
    %235 = vector.extract_strided_slice %23 {offsets = [6, 0, 0], sizes = [1, 2, 384], strides = [1, 1, 1]} : vector<8x2x384xf32> to vector<1x2x384xf32>
    %236 = vector.shape_cast %235 : vector<1x2x384xf32> to vector<2x384xf32>
    %237 = vector.extract_strided_slice %236 {offsets = [0, 0], sizes = [2, 128], strides = [1, 1]} : vector<2x384xf32> to vector<2x128xf32>
    %238 = vector.extract_strided_slice %234 {offsets = [0, 0], sizes = [2, 128], strides = [1, 1]} : vector<2x384xf32> to vector<2x128xf32>
    %239 = arith.addf %237, %238 : vector<2x128xf32>
    %240 = arith.negf %239 : vector<2x128xf32>
    %241 = math.exp %240 : vector<2x128xf32>
    %cst_70 = arith.constant 1.000000e+00 : f32
    %242 = vector.broadcast %cst_70 : f32 to vector<2x128xf32>
    %243 = arith.addf %242, %241 : vector<2x128xf32>
    %244 = arith.divf %242, %243 : vector<2x128xf32>
    %245 = vector.extract_strided_slice %236 {offsets = [0, 128], sizes = [2, 128], strides = [1, 1]} : vector<2x384xf32> to vector<2x128xf32>
    %246 = vector.extract_strided_slice %234 {offsets = [0, 128], sizes = [2, 128], strides = [1, 1]} : vector<2x384xf32> to vector<2x128xf32>
    %247 = arith.addf %245, %246 : vector<2x128xf32>
    %248 = arith.negf %247 : vector<2x128xf32>
    %249 = math.exp %248 : vector<2x128xf32>
    %cst_71 = arith.constant 1.000000e+00 : f32
    %250 = vector.broadcast %cst_71 : f32 to vector<2x128xf32>
    %251 = arith.addf %250, %249 : vector<2x128xf32>
    %252 = arith.divf %250, %251 : vector<2x128xf32>
    %253 = vector.extract_strided_slice %236 {offsets = [0, 256], sizes = [2, 128], strides = [1, 1]} : vector<2x384xf32> to vector<2x128xf32>
    %254 = vector.extract_strided_slice %234 {offsets = [0, 256], sizes = [2, 128], strides = [1, 1]} : vector<2x384xf32> to vector<2x128xf32>
    %255 = arith.mulf %244, %254 : vector<2x128xf32>
    %256 = arith.addf %253, %255 : vector<2x128xf32>
    %257 = math.tanh %256 : vector<2x128xf32>
    %cst_72 = arith.constant 1.000000e+00 : f32
    %258 = vector.broadcast %cst_72 : f32 to vector<2x128xf32>
    %259 = arith.subf %258, %252 : vector<2x128xf32>
    %260 = arith.mulf %259, %257 : vector<2x128xf32>
    %261 = arith.mulf %252, %228 : vector<2x128xf32>
    %262 = arith.addf %260, %261 : vector<2x128xf32>
    %263 = arith.truncf %262 : vector<2x128xf32> to vector<2x128xbf16>
    %c0_73 = arith.constant 0 : index
    %c0_74 = arith.constant 0 : index
    %264 = vector.load %arg8[%c0_73, %c0_74] : memref<128x384xbf16, #tpu.memory_space<vmem>>, vector<128x384xbf16>
    %cst_75 = arith.constant dense<0.000000e+00> : vector<2x384xf32>
    %265 = tpu.matmul %263, %264, %cst_75 {dimension_numbers = #tpu.dot_dimension_numbers<[1], [0], [0], [1], [0, 0, 1, 1], [], []>} : vector<2x128xbf16>, vector<128x384xbf16>, vector<2x384xf32> -> vector<2x384xf32>
    %c0_76 = arith.constant 0 : index
    %c0_77 = arith.constant 0 : index
    %266 = vector.load %arg10[%c0_76, %c0_77] : memref<1x384xf32, #tpu.memory_space<vmem>>, vector<1x384xf32>
    %267 = vector.broadcast %266 : vector<1x384xf32> to vector<2x384xf32>
    %268 = arith.addf %265, %267 : vector<2x384xf32>
    %269 = vector.extract_strided_slice %23 {offsets = [7, 0, 0], sizes = [1, 2, 384], strides = [1, 1, 1]} : vector<8x2x384xf32> to vector<1x2x384xf32>
    %270 = vector.shape_cast %269 : vector<1x2x384xf32> to vector<2x384xf32>
    %271 = vector.extract_strided_slice %270 {offsets = [0, 0], sizes = [2, 128], strides = [1, 1]} : vector<2x384xf32> to vector<2x128xf32>
    %272 = vector.extract_strided_slice %268 {offsets = [0, 0], sizes = [2, 128], strides = [1, 1]} : vector<2x384xf32> to vector<2x128xf32>
    %273 = arith.addf %271, %272 : vector<2x128xf32>
    %274 = arith.negf %273 : vector<2x128xf32>
    %275 = math.exp %274 : vector<2x128xf32>
    %cst_78 = arith.constant 1.000000e+00 : f32
    %276 = vector.broadcast %cst_78 : f32 to vector<2x128xf32>
    %277 = arith.addf %276, %275 : vector<2x128xf32>
    %278 = arith.divf %276, %277 : vector<2x128xf32>
    %279 = vector.extract_strided_slice %270 {offsets = [0, 128], sizes = [2, 128], strides = [1, 1]} : vector<2x384xf32> to vector<2x128xf32>
    %280 = vector.extract_strided_slice %268 {offsets = [0, 128], sizes = [2, 128], strides = [1, 1]} : vector<2x384xf32> to vector<2x128xf32>
    %281 = arith.addf %279, %280 : vector<2x128xf32>
    %282 = arith.negf %281 : vector<2x128xf32>
    %283 = math.exp %282 : vector<2x128xf32>
    %cst_79 = arith.constant 1.000000e+00 : f32
    %284 = vector.broadcast %cst_79 : f32 to vector<2x128xf32>
    %285 = arith.addf %284, %283 : vector<2x128xf32>
    %286 = arith.divf %284, %285 : vector<2x128xf32>
    %287 = vector.extract_strided_slice %270 {offsets = [0, 256], sizes = [2, 128], strides = [1, 1]} : vector<2x384xf32> to vector<2x128xf32>
    %288 = vector.extract_strided_slice %268 {offsets = [0, 256], sizes = [2, 128], strides = [1, 1]} : vector<2x384xf32> to vector<2x128xf32>
    %289 = arith.mulf %278, %288 : vector<2x128xf32>
    %290 = arith.addf %287, %289 : vector<2x128xf32>
    %291 = math.tanh %290 : vector<2x128xf32>
    %cst_80 = arith.constant 1.000000e+00 : f32
    %292 = vector.broadcast %cst_80 : f32 to vector<2x128xf32>
    %293 = arith.subf %292, %286 : vector<2x128xf32>
    %294 = arith.mulf %293, %291 : vector<2x128xf32>
    %295 = arith.mulf %286, %262 : vector<2x128xf32>
    %296 = arith.addf %294, %295 : vector<2x128xf32>
    %c0_81 = arith.constant 0 : index
    %c0_82 = arith.constant 0 : index
    %297 = vector.load %arg2[%c0_81, %c0_82] : memref<2x8xf32, #tpu.memory_space<vmem>>, vector<2x8xf32>
    %298 = vector.shape_cast %297 : vector<2x8xf32> to vector<2x8x1xf32>
    %c0_83 = arith.constant 0 : index
    %c0_84 = arith.constant 0 : index
    %c0_85 = arith.constant 0 : index
    %299 = vector.load %arg1[%c0_83, %c0_84, %c0_85] : memref<2x8x768xbf16, #tpu.memory_space<vmem>>, vector<2x8x768xbf16>
    %300 = arith.extf %299 : vector<2x8x768xbf16> to vector<2x8x768xf32>
    %301 = vector.broadcast %298 : vector<2x8x1xf32> to vector<2x8x768xf32>
    %302 = arith.mulf %300, %301 : vector<2x8x768xf32>
    %cst_86 = arith.constant dense<0.000000e+00> : vector<2x768xf32>
    %303 = vector.multi_reduction <add>, %302, %cst_86 [1] : vector<2x8x768xf32> to vector<2x768xf32>
    %cst_87 = arith.constant dense<0.000000e+00> : vector<2x1xf32>
    %304 = vector.multi_reduction <add>, %298, %cst_87 [1] : vector<2x8x1xf32> to vector<2x1xf32>
    %cst_88 = arith.constant 1.000000e+00 : f32
    %305 = vector.broadcast %cst_88 : f32 to vector<2x1xf32>
    %306 = arith.maximumf %304, %305 : vector<2x1xf32>
    %307 = vector.broadcast %306 : vector<2x1xf32> to vector<2x768xf32>
    %308 = arith.divf %303, %307 : vector<2x768xf32>
    %309 = arith.truncf %308 : vector<2x768xf32> to vector<2x768xbf16>
    %c0_i32_89 = arith.constant 0 : i32
    %310 = tpu.memref_slice %arg18[%c0_i32_89] : memref<2x!tpu.dma_semaphore, #tpu.memory_space<semaphore_mem>> -> memref<1x!tpu.dma_semaphore, #tpu.memory_space<semaphore_mem>>
    %311 = tpu.memref_squeeze %310 : memref<1x!tpu.dma_semaphore, #tpu.memory_space<semaphore_mem>> -> memref<!tpu.dma_semaphore, #tpu.memory_space<semaphore_mem>>
    tpu.wait_dma2 semaphore(%311 : memref<!tpu.dma_semaphore, #tpu.memory_space<semaphore_mem>>) src(%arg5 : memref<768x768xbf16, #tpu.memory_space<any>>) dst(%arg15 : memref<768x768xbf16, #tpu.memory_space<vmem>>)
    %c0_90 = arith.constant 0 : index
    %c0_91 = arith.constant 0 : index
    %312 = vector.load %arg15[%c0_90, %c0_91] : memref<768x768xbf16, #tpu.memory_space<vmem>>, vector<768x768xbf16>
    %cst_92 = arith.constant dense<0.000000e+00> : vector<2x768xf32>
    %313 = tpu.matmul %309, %312, %cst_92 {dimension_numbers = #tpu.dot_dimension_numbers<[1], [0], [0], [1], [0, 0, 1, 1], [], []>} : vector<2x768xbf16>, vector<768x768xbf16>, vector<2x768xf32> -> vector<2x768xf32>
    %c0_93 = arith.constant 0 : index
    %c0_94 = arith.constant 0 : index
    %314 = vector.load %arg6[%c0_93, %c0_94] : memref<1x768xf32, #tpu.memory_space<vmem>>, vector<1x768xf32>
    %315 = vector.broadcast %314 : vector<1x768xf32> to vector<2x768xf32>
    %316 = arith.addf %313, %315 : vector<2x768xf32>
    %317 = math.tanh %316 : vector<2x768xf32>
    %c1_i32_95 = arith.constant 1 : i32
    %318 = tpu.memref_slice %arg18[%c1_i32_95] : memref<2x!tpu.dma_semaphore, #tpu.memory_space<semaphore_mem>> -> memref<1x!tpu.dma_semaphore, #tpu.memory_space<semaphore_mem>>
    %319 = tpu.memref_squeeze %318 : memref<1x!tpu.dma_semaphore, #tpu.memory_space<semaphore_mem>> -> memref<!tpu.dma_semaphore, #tpu.memory_space<semaphore_mem>>
    tpu.wait_dma2 semaphore(%319 : memref<!tpu.dma_semaphore, #tpu.memory_space<semaphore_mem>>) src(%arg12 : memref<768x128xbf16, #tpu.memory_space<any>>) dst(%arg16 : memref<768x128xbf16, #tpu.memory_space<vmem>>)
    %320 = arith.truncf %296 : vector<2x128xf32> to vector<2x128xbf16>
    %c0_96 = arith.constant 0 : index
    %c0_97 = arith.constant 0 : index
    %321 = vector.load %arg11[%c0_96, %c0_97] : memref<128x128xbf16, #tpu.memory_space<vmem>>, vector<128x128xbf16>
    %cst_98 = arith.constant dense<0.000000e+00> : vector<2x128xf32>
    %322 = tpu.matmul %320, %321, %cst_98 {dimension_numbers = #tpu.dot_dimension_numbers<[1], [0], [0], [1], [0, 0, 1, 1], [], []>} : vector<2x128xbf16>, vector<128x128xbf16>, vector<2x128xf32> -> vector<2x128xf32>
    %323 = arith.truncf %317 : vector<2x768xf32> to vector<2x768xbf16>
    %c0_99 = arith.constant 0 : index
    %c0_100 = arith.constant 0 : index
    %324 = vector.load %arg16[%c0_99, %c0_100] : memref<768x128xbf16, #tpu.memory_space<vmem>>, vector<768x128xbf16>
    %cst_101 = arith.constant dense<0.000000e+00> : vector<2x128xf32>
    %325 = tpu.matmul %323, %324, %cst_101 {dimension_numbers = #tpu.dot_dimension_numbers<[1], [0], [0], [1], [0, 0, 1, 1], [], []>} : vector<2x768xbf16>, vector<768x128xbf16>, vector<2x128xf32> -> vector<2x128xf32>
    %326 = arith.addf %322, %325 : vector<2x128xf32>
    %c0_102 = arith.constant 0 : index
    %c0_103 = arith.constant 0 : index
    %327 = vector.load %arg13[%c0_102, %c0_103] : memref<1x128xf32, #tpu.memory_space<vmem>>, vector<1x128xf32>
    %328 = vector.broadcast %327 : vector<1x128xf32> to vector<2x128xf32>
    %329 = arith.addf %326, %328 : vector<2x128xf32>
    %cst_104 = arith.constant dense<0xFF800000> : vector<2xf32>
    %330 = vector.multi_reduction <maximumf>, %329, %cst_104 [1] : vector<2x128xf32> to vector<2xf32>
    %331 = vector.shape_cast %330 : vector<2xf32> to vector<2x1xf32>
    %332 = vector.broadcast %331 : vector<2x1xf32> to vector<2x128xf32>
    %333 = arith.subf %329, %332 : vector<2x128xf32>
    %334 = math.exp %333 : vector<2x128xf32>
    %cst_105 = arith.constant dense<0.000000e+00> : vector<2xf32>
    %335 = vector.multi_reduction <add>, %334, %cst_105 [1] : vector<2x128xf32> to vector<2xf32>
    %336 = vector.shape_cast %335 : vector<2xf32> to vector<2x1xf32>
    %337 = vector.broadcast %336 : vector<2x1xf32> to vector<2x128xf32>
    %338 = arith.divf %334, %337 : vector<2x128xf32>
    %c0_106 = arith.constant 0 : index
    %c0_107 = arith.constant 0 : index
    %339 = vector.load %arg14[%c0_106, %c0_107] : memref<2x128xf32, #tpu.memory_space<vmem>>, vector<2x128xf32>
    tpu.vector_store %arg14[%c0_106, %c0_107], %338 {strides = array<i32>} : memref<2x128xf32, #tpu.memory_space<vmem>>, vector<2x128xf32>,
    return
  }
}

</mosaic_0001>

<bundles_post_ra>
// kernel: text_and_video_forward.1
= control target key start
LH: loop header
LB: loop body
LE: loop exit
PB: predicated region body
PF: predicated region fallthrough
CT: control target
= control target key end

     0   :  { %19 = vsyncpa [#allocation7], 0  ;;  %s7531_s0 = inlined_call_operand.vmem [shape: f32[2,8,1024], index: 0, kind: input, shape index: {}]   ;;  %s7532_s1 = inlined_call_operand.vmem [shape: bf16[2,8,768], index: 1, kind: input, shape index: {}]   ;;  %s7533_s2 = inlined_call_operand.vmem [shape: f32[2,8], index: 2, kind: input, shape index: {}]   ;;  %s7534_s3 = inlined_call_operand.vmem [shape: f32[32,4], index: 3, kind: input, shape index: {}]   ;;  %s7535_s4 = inlined_call_operand.vmem [shape: f32[32,1], index: 4, kind: input, shape index: {}]   ;;  %s7536_s5 = inlined_call_operand.hbm [shape: bf16[768,768], index: 5, kind: input, shape index: {}]   ;;  %s7537_s6 = inlined_call_operand.hbm [shape: f32[1,768], index: 6, kind: input, shape index: {}]   ;;  %s7538_s7 = inlined_call_operand.hbm [shape: bf16[32,384], index: 7, kind: input, shape index: {}]   ;;  %s7539_s8 = inlined_call_operand.hbm [shape: bf16[128,384], index: 8, kind: input, shape index: {}]   ;;  %s7540_s9 = inlined_call_operand.hbm [shape: f32[1,384], index: 9, kind: input, shape index: {}]   ;;  %s7541_s10 = inlined_call_operand.hbm [shape: f32[1,384], index: 10, kind: input, shape index: {}]   ;;  %s7542_s11 = inlined_call_operand.hbm [shape: bf16[128,128], index: 11, kind: input, shape index: {}]   ;;  %s7543_s12 = inlined_call_operand.hbm [shape: bf16[768,128], index: 12, kind: input, shape index: {}]   ;;  %s7544_s13 = inlined_call_operand.hbm [shape: f32[1,128], index: 13, kind: input, shape index: {}]   ;;  %s7545_s14 = inlined_call_operand.hbm [shape: f32[2,128], index: 14, kind: output, shape index: {}]  }
   0x1   :  { %20 = vsyncpa [#allocation10], 0 }
   0x2   :  { %21 = vsyncpa [#allocation13], 0 }
   0x3   :  { %22 = vsyncpa [#allocation16], 0 }
   0x4   :  { %23 = vsyncpa [#allocation8], 0  ;;  %s6588_s29 = smov [#allocation9]  }
   0x5   :  { %s49_s30 = sshll.u32 %s6588_s29, 4  ;;  %s50_s30 = int_to_ptr.vmem [resolvable:$true] %s49_s30 }
   0x6   :  { %s6374_s15 = scalar_lea.vmem %s50_s30, 768  ;;  %p6379_p1 = scmp.lt.s32.totalorder %s50_s30, %s50_s30 }
   0x7   :  { %p6375_p0 = scmp.ne.s32.totalorder %s50_s30, %s6374_s15  ;;  %p6380_p2 = scmp.lt.s32.totalorder %s6374_s15, %s6374_s15 }
   0x9   :  { %p6381_p3 = por %p6380_p2, %p6379_p1 }
   0xb   :  { %p6382_p4 = pnand %p6381_p3, %p6375_p0 }
   0xd   :  { %6385 = shalt.err (!%p6382_p4)
}
   0xe   :  { %s6589_s16 = smov 192   ;;  %s6590_s17 = smov 12  }
   0xf   :  { %55 = dma.hbm_to_vmem [thread:$0]  %s7538_s7, 768, %s50_s30, [#allocation10], %s6589_s16, %s6589_s16, %s6590_s17  }
  0x10   :  { %s6591_s20 = smov [#allocation12]   ;;  %s6592_s22 = smov [#allocation15]  }
  0x11   :  { %s74_s21 = sshll.u32 %s6591_s20, 4  ;;  %s93_s23 = sshll.u32 %s6592_s22, 4  ;;  %s75_s21 = int_to_ptr.vmem [resolvable:$true] %s74_s21  ;;  %s94_s23 = int_to_ptr.vmem [resolvable:$true] %s93_s23 }
  0x12   :  { %s6394_s24 = scalar_lea.vmem %s75_s21, 48  ;;  %s6398_s25 = scalar_lea.vmem %s75_s21, 64 }
  0x13   :  { %p6395_p5 = scmp.ne.s32.totalorder %s75_s21, %s6394_s24  ;;  %p6399_p6 = scmp.lt.s32.totalorder %s75_s21, %s75_s21 }
  0x14   :  { %p6400_p7 = scmp.lt.s32.totalorder %s6398_s25, %s6394_s24 }
  0x16   :  { %p6401_p8 = por %p6400_p7, %p6399_p6 }
  0x18   :  { %p6402_p9 = pnand %p6401_p8, %p6395_p5 }
  0x1a   :  { %6405 = shalt.err (!%p6402_p9)
}
  0x1b   :  { %77 = dma.hbm_to_vmem [thread:$0]  %s7540_s9, 48, %s75_s21, [#allocation13]  }
  0x1c   :  { %s6414_s28 = scalar_lea.vmem %s94_s23, 1024  ;;  %p6419_p11 = scmp.lt.s32.totalorder %s94_s23, %s94_s23 }
  0x1d   :  { %p6415_p10 = scmp.ne.s32.totalorder %s94_s23, %s6414_s28  ;;  %p6420_p12 = scmp.lt.s32.totalorder %s6414_s28, %s6414_s28 }
  0x1f   :  { %p6421_p13 = por %p6420_p12, %p6419_p11 }
  0x21   :  { %p6422_p0 = pnand %p6421_p13, %p6415_p10 }
  0x23   :  { %6425 = shalt.err (!%p6422_p0)
}
  0x24   :  { %s6593_s7 = smov 64   ;;  %s6594_s29 = smov 4  }
  0x25   :  { %99 = dma.hbm_to_vmem [thread:$0]  %s7542_s11, 1024, %s94_s23, [#allocation16], %s6593_s7, %s6593_s7, %s6594_s29  }
  0x26   :  { %s6595_s18 = smov [#allocation6]   ;;  %s6596_s20 = smov [#allocation11]  }
  0x27   :  { %s40_s19 = sshll.u32 %s6595_s18, 4  ;;  %s61_s22 = sshll.u32 %s6596_s20, 4  ;;  %s41_s19 = int_to_ptr.vmem [resolvable:$true] %s40_s19  ;;  %s62_s22 = int_to_ptr.vmem [resolvable:$true] %s61_s22 }
  0x28   :  { %s6434_s9 = scalar_lea.vmem %s41_s19, 96  ;;  %p6439_p2 = scmp.lt.s32.totalorder %s41_s19, %s41_s19 }
  0x29   :  { %p6435_p1 = scmp.ne.s32.totalorder %s41_s19, %s6434_s9  ;;  %p6440_p3 = scmp.lt.s32.totalorder %s6434_s9, %s6434_s9 }
  0x2b   :  { %p6441_p4 = por %p6440_p3, %p6439_p2 }
  0x2d   :  { %p6442_p5 = pnand %p6441_p4, %p6435_p1 }
  0x2f   :  { %6445 = shalt.err (!%p6442_p5)
}
  0x30   :  { %43 = dma.hbm_to_vmem [thread:$0]  %s7537_s6, 96, %s41_s19, [#allocation7]  }
  0x31   :  { %s6454_s25 = scalar_lea.vmem %s62_s22, 3072  ;;  %p6459_p7 = scmp.lt.s32.totalorder %s62_s22, %s62_s22 }
  0x32   :  { %p6455_p6 = scmp.ne.s32.totalorder %s62_s22, %s6454_s25  ;;  %p6460_p8 = scmp.lt.s32.totalorder %s6454_s25, %s6454_s25 }
  0x34   :  { %p6461_p9 = por %p6460_p8, %p6459_p7 }
  0x36   :  { %p6462_p10 = pnand %p6461_p9, %p6455_p6 }
  0x38   :  { %6465 = shalt.err (!%p6462_p10)
}
  0x39   :  { %67 = dma.hbm_to_vmem [thread:$0]  %s7539_s8, 3072, %s62_s22, [#allocation10], %s6589_s16, %s6589_s16, %s6590_s17  }
  0x3a   :  { %s6597_s26 = smov [#allocation14]   ;;  %s6598_s28 = smov [#allocation17]  }
  0x3b   :  { %s84_s27 = sshll.u32 %s6597_s26, 4  ;;  %s106_s6 = sshll.u32 %s6598_s28, 4  ;;  %s85_s27 = int_to_ptr.vmem [resolvable:$true] %s84_s27  ;;  %s107_s6 = int_to_ptr.vmem [resolvable:$true] %s106_s6 }
  0x3c   :  { %s6474_s7 = scalar_lea.vmem %s85_s27, 48  ;;  %s6478_s29 = scalar_lea.vmem %s85_s27, 64 }
  0x3d   :  { %p6475_p11 = scmp.ne.s32.totalorder %s85_s27, %s6474_s7  ;;  %p6479_p12 = scmp.lt.s32.totalorder %s85_s27, %s85_s27 }
  0x3e   :  { %p6480_p13 = scmp.lt.s32.totalorder %s6478_s29, %s6474_s7 }
  0x40   :  { %p6481_p0 = por %p6480_p13, %p6479_p12 }
  0x42   :  { %p6482_p1 = pnand %p6481_p0, %p6475_p11 }
  0x44   :  { %6485 = shalt.err (!%p6482_p1)
}
  0x45   :  { %87 = dma.hbm_to_vmem [thread:$0]  %s7541_s10, 48, %s85_s27, [#allocation13]  }
  0x46   :  { %s6494_s18 = scalar_lea.vmem %s107_s6, 16  ;;  %s6498_s8 = scalar_lea.vmem %s107_s6, 32 }
  0x47   :  { %p6495_p2 = scmp.ne.s32.totalorder %s107_s6, %s6494_s18  ;;  %p6499_p3 = scmp.lt.s32.totalorder %s107_s6, %s107_s6 }
  0x48   :  { %p6500_p4 = scmp.lt.s32.totalorder %s6498_s8, %s6494_s18 }
  0x4a   :  { %p6501_p5 = por %p6500_p4, %p6499_p3 }
  0x4c   :  { %p6502_p6 = pnand %p6501_p5, %p6495_p2 }
  0x4e   :  { %6505 = shalt.err (!%p6502_p6)
}
  0x4f   :  { %109 = dma.hbm_to_vmem [thread:$0]  %s7544_s13, 16, %s107_s6, [#allocation16]  }
  0x50   :  { %6570 = dma.done.wait [#allocation7], 96  }
  0x51   :  { %6571 = vsyncadd [#allocation7], 4294967200 }
  0x52   :  { %6572 = dma.done.wait [#allocation10], 3840  }
  0x53   :  { %6573 = vsyncadd [#allocation10], 4294963456 }
  0x54   :  { %6574 = dma.done.wait [#allocation13], 96  }
  0x55   :  { %6575 = vsyncadd [#allocation13], 4294967200 }
  0x56   :  { %6576 = dma.done.wait [#allocation16], 1040  }
  0x57   :  { %6577 = vsyncadd [#allocation16], 4294966256  ;;  %s6599_s10 = smov [#allocation2]   ;;  %s6600_s20 = smov [#allocation3]  }
  0x58   :  { %s139_s19 = sshll.u32 %s6599_s10, 4  ;;  %s151_s22 = sshll.u32 %s6600_s20, 4  ;;  %s140_s19 = int_to_ptr.vmem [resolvable:$true] %s139_s19  ;;  %s152_s22 = int_to_ptr.vmem [resolvable:$true] %s151_s22 }
  0x59   :  { %s6514_s9 = scalar_lea.vmem %s140_s19, 36864  ;;  %p6519_p8 = scmp.lt.s32.totalorder %s140_s19, %s140_s19 }
  0x5a   :  { %p6515_p7 = scmp.ne.s32.totalorder %s140_s19, %s6514_s9  ;;  %p6520_p9 = scmp.lt.s32.totalorder %s6514_s9, %s6514_s9 }
  0x5c   :  { %p6521_p10 = por %p6520_p9, %p6519_p8 }
  0x5e   :  { %p6522_p11 = pnand %p6521_p10, %p6515_p7 }
  0x60   :  { %6525 = shalt.err (!%p6522_p11)  }
  0x61   :  { %142 = dma.hbm_to_vmem [thread:$0]  %s7536_s5, 36864, %s140_s19, [#allocation5] }
  0x62   :  { %s6534_s24 = scalar_lea.vmem %s152_s22, 6144  ;;  %p6539_p13 = scmp.lt.s32.totalorder %s152_s22, %s152_s22 }
  0x63   :  { %p6535_p12 = scmp.ne.s32.totalorder %s152_s22, %s6534_s24  ;;  %p6540_p0 = scmp.lt.s32.totalorder %s6534_s24, %s6534_s24 }
  0x65   :  { %p6541_p1 = por %p6540_p0, %p6539_p13 }
  0x67   :  { %p6542_p2 = pnand %p6541_p1, %p6535_p12 }
  0x69   :  { %6545 = shalt.err (!%p6542_p2)  }
  0x6a   :  { %154 = dma.hbm_to_vmem [thread:$0]  %s7543_s12, 6144, %s152_s22, [#allocation5 + $0x1]  ;;  %v6721_v0 = vld [vmem:[%s7535_s4] sm:$0xff]  ;;  %v6726_v1 = vld [vmem:[%s7535_s4 + $0x8] sm:$0xff]  ;;  %v6731_v2 = vld [vmem:[%s7535_s4 + $0x10] sm:$0xff] }
  0x6b   :  { %7547 = vst [vmem:[#allocation32_spill] sm:$0xff] %v6721_v0  ;;  %7548 = vst [vmem:[#allocation33_spill] sm:$0xff] %v6726_v1  ;;  %v6736_v3 = vld [vmem:[%s7535_s4 + $0x18] sm:$0xff]  ;;  %v6741_v4 = vld [vmem:[%s7534_s3] sm:$0xff]  ;;  %s6758_s4 = smov 0  }
  0x6c   :  { %7549 = vst [vmem:[#allocation34_spill] sm:$0xff] %v6731_v2  ;;  %v6746_v5 = vld [vmem:[%s7534_s3 + $0x8] sm:$0xff]  ;;  %v6751_v6 = vld [vmem:[%s7534_s3 + $0x10] sm:$0xff]  ;;  %v6756_v7 = vld [vmem:[%s7534_s3 + $0x18] sm:$0xff] }
  0x6d LB: > { %v6601_v8 = vmov 0   ;;  %v6602_v9 = vmov 1   ;;  %v6603_v10 = vmov 2   ;;  %v6604_v11 = vmov 3   ;;  %s169_s3 = sshra.s32 %s6586_s4, 3  ;;  %s172_s19 = sand.u32 7, %s6586_s4  ;;  %s6586_s4 = sphi %s6758_s4, %s168_s4  }
  0x6e   : > { %5706 = vset.pattern.permute.xlu1 %v6601_v8  ;;  %5705 = vset.pattern.permute.xlu0 %v6601_v8  ;;  %s5336_s20 = sshll.u32 %s169_s3, 6  ;;  %v7546_v12 = vlaneseq  ;;  %vm556_vm0 = vcmask 130112   ;;  %vm563_vm1 = vcmask 195712   ;;  %s4940_s24 = sshll.u32 %s6586_s4, 1  ;;  %vm570_vm2 = vcmask 261312  }
  0x6f   : > { %219 = vperm.xlu1 %5706, %v6751_v6   ;;  %209 = vperm.xlu0 %5705, %v6741_v4   ;;  %s175_s22 = sadd.s32 %s5336_s20, %s172_s19  ;;  %vm591_vm3 = vcmask 1041409   ;;  %vm596_vm4 = vcmask 254976   ;;  %s595_s25 = scalar_lea.vmem [#allocation4], %s4940_s24 }
  0x70   : > { %s176_s21 = scalar_lea.vmem %s7531_s0, %s175_s22  ;;  %v6789_v15 = vshrl.u32 %v7546_v12, 7  ;;  %s168_s4 = sadd.s32 1, %s6586_s4  }
  0x71   : > { %v177_v16 = vld [vmem:[%s176_s21] ss:$8 sm:$0xf]  ;;  %p165_p3 = scmp.ge.s32.totalorder %s168_s4, 8  }
  0x72   : > { %v7550_v1 = vld [vmem:[#allocation33_spill] sm:$0xff]  ;;  %v7551_v0 = vld [vmem:[#allocation32_spill] sm:$0xff]  ;;  %v6792_v24 = vsub.s32 0, %v6789_v15  ;;  %v6795_v25 = vsub.s32 1, %v6789_v15  ;;  %vm6608_vm5 = vmmov (%p165_p3), 0   ;;  %vm708_vm6 = vcmask (%p165_p3), 261120  }
  0x73   : > { %224 = vperm.xlu1 %5706, %v6756_v7   ;;  %214 = vperm.xlu0 %5705, %v6746_v5   ;;  %v7552_v2 = vld [vmem:[#allocation34_spill] sm:$0xff] }
  0x74   : > { %v178_v17 = vld [vmem:[%s176_s21] ss:$8 sm:$0xf0] }
  0x75   : > { %v4938_v18 = vld [vmem:[%s176_s21 + $0x40] ss:$8 sm:$0xf]  ;;  %v179_v22 = vor.u32 %v178_v17, %v177_v16 }
  0x76   : > { %v4939_v19 = vld [vmem:[%s176_s21 + $0x40] ss:$8 sm:$0xf0] }
  0x77   : > { %250 = vperm.xlu1 %5706, %v7550_v1   ;;  %245 = vperm.xlu0 %5705, %v7551_v0   ;;  %v184_v23 = vor.u32 %v4939_v19, %v4938_v18  ;;  %v279_v26 = vrot.slane %v179_v22, 2  ;;  %v349_v30 = vrot.slane %v179_v22, 4  ;;  %v419_v32 = vrot.slane %v179_v22, 6 }
  0x78   : > { %v190_v33 = vrot.slane %v179_v22, %v6792_v24  ;;  %v194_v35 = vrot.slane %v179_v22, %v6795_v25 }
  0x79   : > { %v280_v29 = vrot.slane %v184_v23, 2  ;;  %v350_v31 = vrot.slane %v184_v23, 4  ;;  %v420_v34 = vrot.slane %v184_v23, 6  ;;  %v198_v36 = vrot.slane %v184_v23, %v6792_v24 }
  0x7a   : > { %v202_v37 = vrot.slane %v184_v23, %v6795_v25  ;;  %v6802_v38 = vrot.slane %v279_v26, %v6792_v24  ;;  %v6805_v39 = vrot.slane %v279_v26, %v6795_v25  ;;  %v6814_v42 = vrot.slane %v349_v30, %v6792_v24 }
  0x7b   : > { %5708 = vset.pattern.permute.xlu1 %v6602_v9  ;;  %5707 = vset.pattern.permute.xlu0 %v6602_v9  ;;  %v6808_v40 = vrot.slane %v280_v29, %v6792_v24  ;;  %v6811_v41 = vrot.slane %v280_v29, %v6795_v25  ;;  %v6817_v45 = vrot.slane %v349_v30, %v6795_v25 }
  0x7c   : > { %306 = vperm.xlu1 %5708, %v6746_v5   ;;  %302 = vperm.xlu0 %5707, %v6741_v4   ;;  %v6820_v46 = vrot.slane %v350_v31, %v6792_v24  ;;  %v6823_v47 = vrot.slane %v350_v31, %v6795_v25  ;;  %v6826_v48 = vrot.slane %v419_v32, %v6792_v24 }
  0x7d   : > { %v6829_v50 = vrot.slane %v419_v32, %v6795_v25  ;;  %v6832_v51 = vrot.slane %v420_v34, %v6792_v24  ;;  %v6835_v52 = vrot.slane %v420_v34, %v6795_v25 }
  0x80   : > { %5709 = vset.pattern.permute.xlu1 %v6601_v8  ;;  %310 = vperm.xlu0 %5707, %v6751_v6  }
  0x81   : > { %255 = vperm.xlu1 %5709, %v7552_v2  }
  0x84   : > { %314 = vperm.xlu0 %5707, %v6756_v7  }
  0x85   : > { %260 = vperm.xlu1 %5709, %v6736_v3  }
  0x88   : > { %5711 = vset.pattern.permute.xlu0 %v6603_v10 }
  0x89   : > { %5710 = vset.pattern.permute.xlu1 %v6603_v10  ;;  %376 = vperm.xlu0 %5711, %v6746_v5  }
  0x8a   : > { %372 = vperm.xlu1 %5710, %v6741_v4  }
  0x8d   : > { %5712 = vset.pattern.permute.xlu0 %v6604_v11 }
  0x8e   : > { %380 = vperm.xlu1 %5710, %v6751_v6   ;;  %442 = vperm.xlu0 %5712, %v6741_v4  }
  0x92   : > { %384 = vperm.xlu1 %5710, %v6756_v7   ;;  %454 = vperm.xlu0 %5712, %v6756_v7  }
  0x96   : > { %5713 = vset.pattern.permute.xlu1 %v6604_v11 }
  0x97   : > { %446 = vperm.xlu1 %5713, %v6746_v5  }
  0x9b   : > { %450 = vperm.xlu1 %5713, %v6751_v6  }
  0xea   : > { %v220_v13 = vpop.permute.xlu1 %219  ;;  %v210_v14 = vpop.permute.xlu0 %209 }
  0xeb   : > { %v231_v49 = vmul.f32 %v220_v13, %v190_v33  ;;  %v232_v53 = vmul.f32 %v220_v13, %v194_v35  ;;  %v239_v54 = vmul.f32 %v220_v13, %v198_v36  ;;  %v227_v57 = vmul.f32 %v210_v14, %v190_v33 }
  0xec   : > { %v228_v58 = vmul.f32 %v210_v14, %v194_v35  ;;  %v240_v61 = vmul.f32 %v220_v13, %v202_v37  ;;  %v235_v62 = vmul.f32 %v210_v14, %v198_v36  ;;  %v236_v63 = vmul.f32 %v210_v14, %v202_v37 }
  0xee   : > { %v225_v20 = vpop.permute.xlu1 %224  ;;  %v215_v21 = vpop.permute.xlu0 %214 }
  0xef   : > { %v229_v55 = vmul.f32 %v215_v21, %v190_v33  ;;  %v230_v56 = vmul.f32 %v215_v21, %v194_v35  ;;  %v237_v59 = vmul.f32 %v215_v21, %v198_v36  ;;  %v238_v60 = vmul.f32 %v215_v21, %v202_v37 }
  0xf0   : > { %v233_v8 = vmul.f32 %v225_v20, %v190_v33  ;;  %v234_v10 = vmul.f32 %v225_v20, %v194_v35  ;;  %v241_v11 = vmul.f32 %v225_v20, %v198_v36  ;;  %v242_v16 = vmul.f32 %v225_v20, %v202_v37 }
  0xf2   : > { %v251_v27 = vpop.permute.xlu1 %250  ;;  %v246_v28 = vpop.permute.xlu0 %245 }
  0xf3   : > { %v265_v19 = vadd.f32 %v251_v27, %v229_v55  ;;  %v266_v22 = vadd.f32 %v251_v27, %v230_v56  ;;  %v273_v29 = vadd.f32 %v251_v27, %v237_v59  ;;  %v274_v30 = vadd.f32 %v251_v27, %v238_v60 }
  0xf4   : > { %v263_v21 = vadd.f32 %v246_v28, %v227_v57  ;;  %v264_v13 = vadd.f32 %v246_v28, %v228_v58  ;;  %v271_v31 = vadd.f32 %v246_v28, %v235_v62  ;;  %v272_v14 = vadd.f32 %v246_v28, %v236_v63 }
  0xf7   : > { %v307_v43 = vpop.permute.xlu1 %306  ;;  %v303_v44 = vpop.permute.xlu0 %302 }
  0xf8   : > { %v319_v17 = vmul.f32 %v307_v43, %v6802_v38  ;;  %v320_v23 = vmul.f32 %v307_v43, %v6805_v39  ;;  %v327_v26 = vmul.f32 %v307_v43, %v6808_v40  ;;  %v328_v32 = vmul.f32 %v307_v43, %v6811_v41 }
  0xf9   : > { %v317_v33 = vmul.f32 %v303_v44, %v6802_v38  ;;  %v318_v35 = vmul.f32 %v303_v44, %v6805_v39  ;;  %v325_v36 = vmul.f32 %v303_v44, %v6808_v40  ;;  %v326_v37 = vmul.f32 %v303_v44, %v6811_v41 }
  0xfa   : > { %v335_v34 = vadd.f32 %v319_v17, %v265_v19  ;;  %v336_v56 = vadd.f32 %v320_v23, %v266_v22  ;;  %v343_v59 = vadd.f32 %v327_v26, %v273_v29  ;;  %v344_v62 = vadd.f32 %v328_v32, %v274_v30 }
  0xfb   : > { %v311_v9 = vpop.permute.xlu0 %310  ;;  %v333_v63 = vadd.f32 %v317_v33, %v263_v21  ;;  %v334_v23 = vadd.f32 %v318_v35, %v264_v13  ;;  %v341_v26 = vadd.f32 %v325_v36, %v271_v31 }
  0xfc   : > { %v256_v18 = vpop.permute.xlu1 %255  ;;  %v321_v57 = vmul.f32 %v311_v9, %v6802_v38  ;;  %v322_v43 = vmul.f32 %v311_v9, %v6805_v39  ;;  %v329_v60 = vmul.f32 %v311_v9, %v6808_v40  ;;  %v330_v19 = vmul.f32 %v311_v9, %v6811_v41 }
  0xfd   : > { %v267_v27 = vadd.f32 %v256_v18, %v231_v49  ;;  %v268_v58 = vadd.f32 %v256_v18, %v232_v53  ;;  %v275_v28 = vadd.f32 %v256_v18, %v239_v54  ;;  %v276_v17 = vadd.f32 %v256_v18, %v240_v61 }
  0xfe   : > { %v342_v53 = vadd.f32 %v326_v37, %v272_v14 }
  0xff   : > { %v315_v20 = vpop.permute.xlu0 %314  ;;  %v337_v54 = vadd.f32 %v321_v57, %v267_v27  ;;  %v338_v1 = vadd.f32 %v322_v43, %v268_v58  ;;  %v345_v2 = vadd.f32 %v329_v60, %v275_v28  ;;  %v346_v18 = vadd.f32 %v330_v19, %v276_v17 }
 0x100   : > { %v261_v55 = vpop.permute.xlu1 %260  ;;  %v323_v44 = vmul.f32 %v315_v20, %v6802_v38  ;;  %v324_v22 = vmul.f32 %v315_v20, %v6805_v39  ;;  %v332_v38 = vmul.f32 %v315_v20, %v6811_v41 }
 0x101   : > { %v269_v12 = vadd.f32 %v261_v55, %v233_v8  ;;  %v270_v0 = vadd.f32 %v261_v55, %v234_v10  ;;  %v277_v9 = vadd.f32 %v261_v55, %v241_v11  ;;  %v331_v8 = vmul.f32 %v315_v20, %v6808_v40 }
 0x102   : > { %v278_v10 = vadd.f32 %v261_v55, %v242_v16 }
 0x103   : > { %v6855_v39 = vadd.f32 %v323_v44, %v269_v12  ;;  %v6857_v21 = vadd.f32 %v324_v22, %v270_v0  ;;  %v347_v55 = vadd.f32 %v331_v8, %v277_v9 }
 0x104   : > { %v377_v49 = vpop.permute.xlu0 %376  ;;  %v348_v27 = vadd.f32 %v332_v38, %v278_v10 }
 0x105   : > { %v373_v29 = vpop.permute.xlu1 %372  ;;  %v389_v13 = vmul.f32 %v377_v49, %v6814_v42  ;;  %v390_v31 = vmul.f32 %v377_v49, %v6817_v45  ;;  %v397_v14 = vmul.f32 %v377_v49, %v6820_v46  ;;  %v398_v32 = vmul.f32 %v377_v49, %v6823_v47 }
 0x106   : > { %v387_v30 = vmul.f32 %v373_v29, %v6814_v42  ;;  %v388_v61 = vmul.f32 %v373_v29, %v6817_v45  ;;  %v395_v33 = vmul.f32 %v373_v29, %v6820_v46  ;;  %v396_v40 = vmul.f32 %v373_v29, %v6823_v47 }
 0x107   : > { %v405_v58 = vadd.f32 %v389_v13, %v335_v34  ;;  %v406_v19 = vadd.f32 %v390_v31, %v336_v56  ;;  %v413_v44 = vadd.f32 %v397_v14, %v343_v59  ;;  %v414_v22 = vadd.f32 %v398_v32, %v344_v62 }
 0x108   : > { %v403_v12 = vadd.f32 %v387_v30, %v333_v63  ;;  %v404_v16 = vadd.f32 %v388_v61, %v334_v23  ;;  %v411_v49 = vadd.f32 %v395_v33, %v341_v26  ;;  %v412_v29 = vadd.f32 %v396_v40, %v342_v53 }
 0x109   : > { %v381_v11 = vpop.permute.xlu1 %380  ;;  %v443_v35 = vpop.permute.xlu0 %442 }
 0x10a   : > { %v391_v41 = vmul.f32 %v381_v11, %v6814_v42  ;;  %v399_v0 = vmul.f32 %v381_v11, %v6820_v46  ;;  %v400_v20 = vmul.f32 %v381_v11, %v6823_v47  ;;  %v457_v36 = vmul.f32 %v443_v35, %v6826_v48 }
 0x10b   : > { %v458_v37 = vmul.f32 %v443_v35, %v6829_v50  ;;  %v392_v57 = vmul.f32 %v381_v11, %v6817_v45  ;;  %v465_v28 = vmul.f32 %v443_v35, %v6832_v51  ;;  %v466_v43 = vmul.f32 %v443_v35, %v6835_v52 }
 0x10c   : > { %v473_v63 = vadd.f32 %v457_v36, %v403_v12  ;;  %v415_v30 = vadd.f32 %v399_v0, %v345_v2  ;;  %v416_v61 = vadd.f32 %v400_v20, %v346_v18  ;;  %v407_v9 = vadd.f32 %v391_v41, %v337_v54 }
 0x10d   : > { %v385_v60 = vpop.permute.xlu1 %384  ;;  %v474_v17 = vadd.f32 %v458_v37, %v404_v16  ;;  %v455_v23 = vpop.permute.xlu0 %454  ;;  %v481_v11 = vadd.f32 %v465_v28, %v411_v49  ;;  %v482_v35 = vadd.f32 %v466_v43, %v412_v29  ;;  %v408_v12 = vadd.f32 %v392_v57, %v338_v1 }
 0x10e   : > { %v401_v8 = vmul.f32 %v385_v60, %v6820_v46  ;;  %v402_v34 = vmul.f32 %v385_v60, %v6823_v47  ;;  %v489_v38 = vmax.f32 %v473_v63, 0.0  ;;  %v393_v13 = vmul.f32 %v385_v60, %v6814_v42 }
 0x10f   : > { %v490_v10 = vmax.f32 %v474_v17, 0.0  ;;  %v394_v56 = vmul.f32 %v385_v60, %v6817_v45  ;;  %v463_v59 = vmul.f32 %v455_v23, %v6826_v48  ;;  %v464_v62 = vmul.f32 %v455_v23, %v6829_v50 }
 0x110   : > { %v471_v42 = vmul.f32 %v455_v23, %v6832_v51  ;;  %v472_v1 = vmul.f32 %v455_v23, %v6835_v52  ;;  %v417_v45 = vadd.f32 %v401_v8, %v347_v55  ;;  %v418_v18 = vadd.f32 %v402_v34, %v348_v27 }
 0x111   : > { %v505_v26 = vadd.f32 %v490_v10, %v489_v38  ;;  %v497_v41 = vmax.f32 %v481_v11, 0.0  ;;  %v498_v16 = vmax.f32 %v482_v35, 0.0  ;;  %v409_v0 = vadd.f32 %v393_v13, %v6855_v39 }
 0x112   : > { %v447_v2 = vpop.permute.xlu1 %446  ;;  %v410_v20 = vadd.f32 %v394_v56, %v6857_v21  ;;  %v487_v17 = vadd.f32 %v471_v42, %v417_v45  ;;  %v7553_v56 = vlaneseq }
 0x113   : > { %v459_v53 = vmul.f32 %v447_v2, %v6826_v48  ;;  %v460_v46 = vmul.f32 %v447_v2, %v6829_v50  ;;  %v467_v47 = vmul.f32 %v447_v2, %v6832_v51  ;;  %v468_v54 = vmul.f32 %v447_v2, %v6835_v52  ;;  %506 = vadd.xlane.f32.xlu1 %v505_v26 }
 0x114   : > { %v479_v23 = vadd.f32 %v463_v59, %v409_v0  ;;  %v503_v34 = vmax.f32 %v487_v17, 0.0  ;;  %v546_v59 = vand.u32 127, %v7553_v56 }
 0x115   : > { %v475_v31 = vadd.f32 %v459_v53, %v405_v58  ;;  %v476_v14 = vadd.f32 %v460_v46, %v406_v19  ;;  %v483_v32 = vadd.f32 %v467_v47, %v413_v44  ;;  %v484_v33 = vadd.f32 %v468_v54, %v414_v22 }
 0x116   : > { %v451_v40 = vpop.permute.xlu1 %450  ;;  %v488_v19 = vadd.f32 %v472_v1, %v418_v18  ;;  %v495_v10 = vmax.f32 %v479_v23, 0.0  ;;  %v558_v26 = vadd.s32 4294967280, %v546_v59  ;;  %v565_v46 = vadd.s32 4294967272, %v546_v59 }
 0x117   : > { %v461_v36 = vmul.f32 %v451_v40, %v6826_v48  ;;  %v462_v37 = vmul.f32 %v451_v40, %v6829_v50  ;;  %v469_v57 = vmul.f32 %v451_v40, %v6832_v51  ;;  %v470_v55 = vmul.f32 %v451_v40, %v6835_v52 }
 0x118   : > { %v491_v27 = vmax.f32 %v475_v31, 0.0  ;;  %v492_v58 = vmax.f32 %v476_v14, 0.0  ;;  %v499_v28 = vmax.f32 %v483_v32, 0.0  ;;  %v500_v43 = vmax.f32 %v484_v33, 0.0 }
 0x119   : > { %v485_v60 = vadd.f32 %v469_v57, %v415_v30  ;;  %v486_v63 = vadd.f32 %v470_v55, %v416_v61  ;;  %v477_v22 = vadd.f32 %v461_v36, %v407_v9  ;;  %v478_v21 = vadd.f32 %v462_v37, %v408_v12 }
 0x11a   : > { %v508_v44 = vadd.f32 %v492_v58, %v491_v27  ;;  %v520_v39 = vadd.f32 %v500_v43, %v499_v28  ;;  %v517_v50 = vadd.f32 %v498_v16, %v497_v41  ;;  %v480_v52 = vadd.f32 %v464_v62, %v410_v20 }
 0x11b   : > { %v501_v49 = vmax.f32 %v485_v60, 0.0  ;;  %v502_v48 = vmax.f32 %v486_v63, 0.0  ;;  %v493_v29 = vmax.f32 %v477_v22, 0.0  ;;  %v494_v8 = vmax.f32 %v478_v21, 0.0  ;;  %v5714_v21 = vld [vmem:[#allocation9 + $0x1c] ss:$12 sps:$4 sm:$0xff] (%p165_p3)  }
 0x11c   : > { %509 = vadd.xlane.f32.xlu0 %v508_v44  ;;  %521 = vadd.xlane.f32.xlu1 %v520_v39  ;;  %v504_v38 = vmax.f32 %v488_v19, 0.0  ;;  %v496_v13 = vmax.f32 %v480_v52, 0.0  ;;  %v551_v62 = vadd.s32 4294967288, %v546_v59  ;;  %v549_v54 = vsub.s32 %v546_v59, %v6789_v15 }
 0x11d   : > { %v523_v51 = vadd.f32 %v502_v48, %v501_v49  ;;  %v511_v30 = vadd.f32 %v494_v8, %v493_v29  ;;  %v561_v18 = vsub.s32 %v558_v26, %v6789_v15  ;;  %v568_v32 = vsub.s32 %v565_v46, %v6789_v15  ;;  %v5716_v49 = vld [vmem:[#allocation9 + $0x18] ss:$12 sps:$4 sm:$0xff] (%p165_p3)   ;;  %724 = vmatprep.subr.bf16.mxu0 (%p165_p3), %v5714_v21  ;;  %v5719_v29 = vld [vmem:[#allocation9 + $0x20] ss:$12 sps:$4 sm:$0xff] (%p165_p3)  }
 0x11e   : > { %v526_v61 = vadd.f32 %v504_v38, %v503_v34  ;;  %v514_v9 = vadd.f32 %v496_v13, %v495_v10  ;;  %v554_v42 = vsub.s32 %v551_v62, %v6789_v15  ;;  %v6605_v48 = vmov (%p165_p3), 0.0   ;;  %725 = vmatpush1.bf16.msra.mxu0 (%p165_p3), %v5716_v49  ;;  %v5720_v8 = vld [vmem:[#allocation9] ss:$12 sps:$4 sm:$0xff] (%p165_p3)   ;;  %v5721_v34 = vld [vmem:[#allocation9 + $0x8] ss:$12 sps:$4 sm:$0xff] (%p165_p3)  }
 0x11f   :  { %5487 = vmatprep.subr.bf16.mxu1 (%p165_p3), %v6605_v48  ;;  %v6607_v23 = vmov (%p165_p3), 1983009808   ;;  %5491 = vmatprep.mubr.msk.bf16.mxu1 (%p165_p3), %vm6608_vm5, %v6605_v48 }
 0x120   : > { %518 = vadd.xlane.f32.xlu0 %v517_v50  ;;  %524 = vadd.xlane.f32.xlu1 %v523_v51  ;;  %v6606_v50 = vmov (%p165_p3), 0   ;;  %v5717_v51 = vld [vmem:[#allocation9 + $0x4] ss:$12 sps:$4 sm:$0xff] (%p165_p3)   ;;  %v617_v52 = vunpack.c.l.s4 (%p165_p3), %v6607_v23 }
 0x121   :  { %744 = vmatprep.mubr.bf16.mxu0 (%p165_p3), %v6606_v50  ;;  %726 = vmatprep.subr.bf16.mxu0 (%p165_p3), %v5717_v51 }
 0x122   :  { %v618_v38 = vunpack.c.0.s8 (%p165_p3), %v617_v52  ;;  %5488 = vmatpush3.bf16.msra.mxu1 (%p165_p3), %v5719_v29  ;;  %727 = vmatpush1.bf16.msra.mxu0 (%p165_p3), %v5720_v8 }
 0x123   :  { %5489 = vmatprep.subr.bf16.mxu1 (%p165_p3), %v6605_v48 }
 0x124   : > { %512 = vadd.xlane.f32.xlu0 %v511_v30  ;;  %527 = vadd.xlane.f32.xlu1 %v526_v61  ;;  %v6903_v30 = vld [vmem:[#allocation11 + $0xac] ss:$12 sps:$4 sm:$0xff] (%p165_p3)   ;;  %v6907_v7 = vsub.s32 (%p165_p3), %v618_v38, %v6789_v15 }
 0x125   :  { %1057 = vmatprep.subr.bf16.mxu0 (%p165_p3), %v6903_v30 }
 0x126   :  { %5490 = vmatpush3.bf16.msra.mxu1 (%p165_p3), %v5721_v34 }
 0x127   :  { %5495 = vmatprep.subr.bf16.mxu1 (%p165_p3), %v6605_v48 }
 0x128   : > { %515 = vadd.xlane.f32.xlu0 %v514_v9 }
 0x19c   : > { %v507_v11 = vpop.xlane.xlu1 %506 }
 0x19d   : > { %v529_v40 = vmul.f32 0.00390625, %v507_v11 }
 0x19f   : > { %v550_v27 = vrot.slane %v529_v40, %v549_v54  ;;  %v6947_v40 = vld [vmem:[#allocation11 + $0x60] ss:$12 sps:$4 sm:$0xff] (%p165_p3)  }
 0x1a5   : > { %v510_v35 = vpop.xlane.xlu0 %509  ;;  %v522_v12 = vpop.xlane.xlu1 %521 }
 0x1a6   : > { %v530_v1 = vmul.f32 0.00390625, %v510_v35  ;;  %v534_v45 = vmul.f32 0.00390625, %v522_v12 }
 0x1a8   : > { %v555_v20 = vrot.slane %v530_v1, %v554_v42  ;;  %v579_v36 = vrot.slane %v534_v45, %v554_v42  ;;  %v6919_v42 = vld [vmem:[#allocation11 + $0x94] ss:$12 sps:$4 sm:$0xff] (%p165_p3)   ;;  %v6921_v1 = vld [vmem:[#allocation11 + $0x90] ss:$12 sps:$4 sm:$0xff] (%p165_p3)  }
 0x1a9   : > { %v519_v2 = vpop.xlane.xlu0 %518  ;;  %v525_v53 = vpop.xlane.xlu1 %524  ;;  %v6924_v45 = vld [vmem:[#allocation11 + $0xb0] ss:$12 sps:$4 sm:$0xff] (%p165_p3)  }
 0x1aa   : > { %v533_v47 = vmul.f32 0.00390625, %v519_v2  ;;  %v535_v31 = vmul.f32 0.00390625, %v525_v53  ;;  %v557_v60 = vsel %vm556_vm0, %v555_v20, %v550_v27  ;;  %v6960_v20 = vld [vmem:[#allocation11 + $0x34] ss:$12 sps:$4 sm:$0xff] (%p165_p3)   ;;  %v6977_v27 = vld [vmem:[#allocation11 + $0x18] ss:$12 sps:$4 sm:$0xff] (%p165_p3)  }
 0x1ac   : > { %v575_v41 = vrot.slane %v533_v47, %v549_v54  ;;  %v584_v37 = vrot.slane %v535_v31, %v561_v18  ;;  %v6917_v47 = vld [vmem:[#allocation11 + $0xa8] ss:$12 sps:$4 sm:$0xff] (%p165_p3)   ;;  %v6933_v31 = vld [vmem:[#allocation11 + $0x98] ss:$12 sps:$4 sm:$0xff] (%p165_p3)  }
 0x1ad   : > { %v513_v14 = vpop.xlane.xlu0 %512  ;;  %v528_v33 = vpop.xlane.xlu1 %527 }
 0x1ae   : > { %v531_v16 = vmul.f32 0.00390625, %v513_v14  ;;  %v536_v0 = vmul.f32 0.00390625, %v528_v33  ;;  %v580_v58 = vsel %vm556_vm0, %v579_v36, %v575_v41  ;;  %v6937_v14 = vld [vmem:[#allocation11 + $0x78] ss:$12 sps:$4 sm:$0xff] (%p165_p3)   ;;  %v6943_v33 = vld [vmem:[#allocation11 + $0x80] ss:$12 sps:$4 sm:$0xff] (%p165_p3)  }
 0x1af   : > { %v585_v17 = vsel %vm563_vm1, %v584_v37, %v580_v58  ;;  %v6950_v41 = vld [vmem:[#allocation11 + $0x4c] ss:$12 sps:$4 sm:$0xff] (%p165_p3)   ;;  %v6963_v36 = vld [vmem:[#allocation11 + $0x50] ss:$12 sps:$4 sm:$0xff] (%p165_p3)  }
 0x1b0   : > { %v562_v57 = vrot.slane %v531_v16, %v561_v18  ;;  %v589_v28 = vrot.slane %v536_v0, %v568_v32  ;;  %v6928_v18 = vld [vmem:[#allocation11 + $0x7c] ss:$12 sps:$4 sm:$0xff] (%p165_p3)   ;;  %v6980_v58 = vld [vmem:[#allocation11 + $0x4] ss:$12 sps:$4 sm:$0xff] (%p165_p3)  }
 0x1b1   : > { %v516_v55 = vpop.xlane.xlu0 %515  ;;  %v6953_v16 = vld [vmem:[#allocation11 + $0x68] ss:$12 sps:$4 sm:$0xff] (%p165_p3)   ;;  %v6967_v37 = vld [vmem:[#allocation11 + $0x30] ss:$12 sps:$4 sm:$0xff] (%p165_p3)  }
 0x1b2   : > { %v532_v43 = vmul.f32 0.00390625, %v516_v55  ;;  %v564_v19 = vsel %vm563_vm1, %v562_v57, %v557_v60  ;;  %v590_v44 = vsel %vm570_vm2, %v589_v28, %v585_v17  ;;  %v6957_v0 = vld [vmem:[#allocation11 + $0x48] ss:$12 sps:$4 sm:$0xff] (%p165_p3)   ;;  %v6973_v55 = vld [vmem:[#allocation11 + $0x38] ss:$12 sps:$4 sm:$0xff] (%p165_p3)  }
 0x1b3   :  { %v6970_v57 = vld [vmem:[#allocation11 + $0x1c] ss:$12 sps:$4 sm:$0xff] (%p165_p3)   ;;  %v6983_v28 = vld [vmem:[#allocation11 + $0x20] ss:$12 sps:$4 sm:$0xff] (%p165_p3)  }
 0x1b4   : > { %v569_v63 = vrot.slane %v532_v43, %v568_v32  ;;  %167 = sbr.rel (!%p165_p3) target bundleno = 109 (0x6d), region = 116  ;;  %v6940_v32 = vld [vmem:[#allocation11 + $0x64] ss:$12 sps:$4 sm:$0xff] (%p165_p3)   ;;  %v6987_v43 = vld [vmem:[#allocation11] ss:$12 sps:$4 sm:$0xff] (%p165_p3)  }
 0x1b5   :  { %v6991_v60 = vld [vmem:[#allocation11 + $0x8] ss:$12 sps:$4 sm:$0xff] (%p165_p3)   ;;  %v659_v17 = vld [vmem:[#allocation12] sm:$0x7] (%p165_p3) }
 0x1b6   : > { %v571_v39 = vsel %vm570_vm2, %v569_v63, %v564_v19  ;;  %v7036_v63 = vsub.s32 (%p165_p3), 2, %v6789_v15 }
 0x1b7   : > { %v592_v22 = vsel %vm591_vm3, %v590_v44, %v571_v39  ;;  %v664_v44 = vrot.slane (%p165_p3), %v659_v17, %v6792_v24  ;;  %v668_v39 = vrot.slane (%p165_p3), %v659_v17, %v6795_v25 }
 0x1b8   : > { %597 = vst.msk [vmem:[%s595_s25] sm:$0x3] %vm596_vm4, %v592_v22  ;;  %v672_v19 = vrot.slane (%p165_p3), %v659_v17, %v7036_v63 }
 0x1bf   :  { %v598_v3 = vld [vmem:[#allocation4] sm:$0x3]  ;;  %v599_v4 = vld [vmem:[#allocation4 + $0x2] sm:$0x3]  ;;  %v600_v5 = vld [vmem:[#allocation4 + $0x4] sm:$0x3] }
 0x1c0   :  { %v601_v6 = vld [vmem:[#allocation4 + $0x6] sm:$0x3]  ;;  %v602_v61 = vld [vmem:[#allocation4 + $0x8] sm:$0x3]  ;;  %v603_v10 = vld [vmem:[#allocation4 + $0xa] sm:$0x3]  ;;  %v614_v9 = vcombine.low %v598_v3, %v599_v4 }
 0x1c1   :  { %v604_v13 = vld [vmem:[#allocation4 + $0xc] sm:$0x3]  ;;  %v615_v11 = vcombine.low %v600_v5, %v601_v6  ;;  %v605_v35 = vld [vmem:[#allocation4 + $0xe] sm:$0x3]  ;;  %v631_v12 = vcombine.low %v602_v61, %v603_v10 }
 0x1c2   :  { %v622_v56 = vrot.slane %v614_v9, %v6907_v7  ;;  %v632_v62 = vcombine.low %v604_v13, %v605_v35 }
 0x1c3   :  { %v629_v59 = vrot.slane %v615_v11, %v6907_v7  ;;  %v639_v2 = vrot.slane %v631_v12, %v6907_v7 }
 0x1c4   :  { %v646_v53 = vrot.slane %v632_v62, %v6907_v7 }
 0x1c5   :  { %v630_v26 = vcombine.low %v622_v56, %v629_v59 }
 0x1c6   :  { %v647_v46 = vcombine.low %v639_v2, %v646_v53 }
 0x1c8   :  { %v650_v54 = vpack.c.bf16 %v647_v46, %v630_v26 }
 0x1ca   :  { %4947 = vmatmul.mubr.msk.bf16.vlgmr.msra.gmra.mxu0 %vm708_vm6, %v650_v54  ;;  %5492 = vmatmul.mubr.msk.bf16.vlgmr.msra.gmra.mxu1 %vm708_vm6, %v650_v54 }
 0x1cb   :  { %1058 = vmatpush1.bf16.msra.mxu0 %v6917_v47  ;;  %1089 = vmatprep.mubr.bf16.mxu0 %v6606_v50 }
 0x1cc   :  { %1059 = vmatprep.subr.bf16.mxu0 %v6919_v42  ;;  %5511 = vmatprep.mubr.msk.bf16.mxu1 %vm6608_vm5, %v6605_v48 }
 0x1cd   :  { %5496 = vmatpush3.bf16.msra.mxu1 %v6924_v45 }
 0x1ce   :  { %5497 = vmatprep.subr.bf16.mxu1 %v6605_v48 }
 0x1cf   :  { %1060 = vmatpush1.bf16.msra.mxu0 %v6921_v1 }
 0x1d0   :  { %1061 = vmatprep.subr.bf16.mxu0 %v6928_v18 }
 0x1d1   :  { %5498 = vmatpush3.bf16.msra.mxu1 %v6933_v31 }
 0x1d2   :  { %5499 = vmatprep.subr.bf16.mxu1 %v6605_v48 }
 0x1d3   :  { %1062 = vmatpush1.bf16.msra.mxu0 %v6937_v14 }
 0x1d4   :  { %1063 = vmatprep.subr.bf16.mxu0 %v6940_v32 }
 0x1d5   :  { %5500 = vmatpush3.bf16.msra.mxu1 %v6943_v33 }
 0x1d6   :  { %5501 = vmatprep.subr.bf16.mxu1 %v6605_v48 }
 0x1d7   :  { %1064 = vmatpush1.bf16.msra.mxu0 %v6947_v40 }
 0x1d8   :  { %1065 = vmatprep.subr.bf16.mxu0 %v6950_v41 }
 0x1d9   :  { %5502 = vmatpush3.bf16.msra.mxu1 %v6953_v16 }
 0x1da   :  { %5503 = vmatprep.subr.bf16.mxu1 %v6605_v48 }
 0x1db   :  { %1066 = vmatpush1.bf16.msra.mxu0 %v6957_v0 }
 0x1dc   :  { %1067 = vmatprep.subr.bf16.mxu0 %v6960_v20 }
 0x1dd   :  { %5504 = vmatpush3.bf16.msra.mxu1 %v6963_v36 }
 0x1de   :  { %5505 = vmatprep.subr.bf16.mxu1 %v6605_v48 }
 0x1df   :  { %1068 = vmatpush1.bf16.msra.mxu0 %v6967_v37 }
 0x1e0   :  { %1069 = vmatprep.subr.bf16.mxu0 %v6970_v57 }
 0x1e1   :  { %5506 = vmatpush3.bf16.msra.mxu1 %v6973_v55 }
 0x1e2   :  { %5507 = vmatprep.subr.bf16.mxu1 %v6605_v48 }
 0x1e3   :  { %1070 = vmatpush1.bf16.msra.mxu0 %v6977_v27 }
 0x1e4   :  { %1071 = vmatprep.subr.bf16.mxu0 %v6980_v58 }
 0x1e5   :  { %5508 = vmatpush3.bf16.msra.mxu1 %v6983_v28 }
 0x1e6   :  { %5509 = vmatprep.subr.bf16.mxu1 %v6605_v48 }
 0x1e7   :  { %1072 = vmatpush1.bf16.msra.mxu0 %v6987_v43 }
 0x1e8   :  { %1164 = vmatprep.subr.bf16.mxu0 %v6903_v30 }
 0x1e9   :  { %5510 = vmatpush3.bf16.msra.mxu1 %v6991_v60 }
 0x1ea   :  { %1090 = vmatmul.mubr.bf16.vlgmr.msra.gmra.mxu0 %v6606_v50  ;;  %5515 = vmatprep.subr.bf16.mxu1 %v6605_v48 }
 0x1eb   :  { %1165 = vmatpush1.bf16.msra.mxu0 %v6917_v47  ;;  %1196 = vmatprep.mubr.bf16.mxu0 %v6606_v50 }
 0x1ec   :  { %5512 = vmatmul.mubr.bf16.vlgmr.msra.gmra.mxu1 %v6606_v50  ;;  %1166 = vmatprep.subr.bf16.mxu0 %v6919_v42 }
 0x1ed   :  { %5516 = vmatpush3.bf16.msra.mxu1 %v6924_v45  ;;  %5531 = vmatprep.mubr.msk.bf16.mxu1 %vm6608_vm5, %v6605_v48 }
 0x1ee   :  { %5517 = vmatprep.subr.bf16.mxu1 %v6605_v48 }
 0x1ef   :  { %1167 = vmatpush1.bf16.msra.mxu0 %v6921_v1 }
 0x1f0   :  { %1168 = vmatprep.subr.bf16.mxu0 %v6928_v18 }
 0x1f1   :  { %5518 = vmatpush3.bf16.msra.mxu1 %v6933_v31 }
 0x1f2   :  { %5519 = vmatprep.subr.bf16.mxu1 %v6605_v48 }
 0x1f3   :  { %1169 = vmatpush1.bf16.msra.mxu0 %v6937_v14 }
 0x1f4   :  { %1170 = vmatprep.subr.bf16.mxu0 %v6940_v32 }
 0x1f5   :  { %5520 = vmatpush3.bf16.msra.mxu1 %v6943_v33 }
 0x1f6   :  { %5521 = vmatprep.subr.bf16.mxu1 %v6605_v48 }
 0x1f7   :  { %1171 = vmatpush1.bf16.msra.mxu0 %v6947_v40 }
 0x1f8   :  { %1172 = vmatprep.subr.bf16.mxu0 %v6950_v41 }
 0x1f9   :  { %5522 = vmatpush3.bf16.msra.mxu1 %v6953_v16 }
 0x1fa   :  { %5523 = vmatprep.subr.bf16.mxu1 %v6605_v48 }
 0x1fb   :  { %1173 = vmatpush1.bf16.msra.mxu0 %v6957_v0 }
 0x1fc   :  { %1174 = vmatprep.subr.bf16.mxu0 %v6960_v20 }
 0x1fd   :  { %5524 = vmatpush3.bf16.msra.mxu1 %v6963_v36 }
 0x1fe   :  { %5525 = vmatprep.subr.bf16.mxu1 %v6605_v48 }
 0x1ff   :  { %1175 = vmatpush1.bf16.msra.mxu0 %v6967_v37 }
 0x200   :  { %1176 = vmatprep.subr.bf16.mxu0 %v6970_v57 }
 0x201   :  { %5526 = vmatpush3.bf16.msra.mxu1 %v6973_v55 }
 0x202   :  { %5527 = vmatprep.subr.bf16.mxu1 %v6605_v48 }
 0x203   :  { %1177 = vmatpush1.bf16.msra.mxu0 %v6977_v27 }
 0x204   :  { %1178 = vmatprep.subr.bf16.mxu0 %v6980_v58 }
 0x205   :  { %5528 = vmatpush3.bf16.msra.mxu1 %v6983_v28 }
 0x206   :  { %5529 = vmatprep.subr.bf16.mxu1 %v6605_v48 }
 0x207   :  { %1179 = vmatpush1.bf16.msra.mxu0 %v6987_v43 }
 0x208   :  { %1271 = vmatprep.subr.bf16.mxu0 %v6903_v30 }
 0x209   :  { %5530 = vmatpush3.bf16.msra.mxu1 %v6991_v60 }
 0x20a   :  { %5535 = vmatprep.subr.bf16.mxu1 %v6605_v48 }
 0x28a   :  { %v746_v22 = vpop.f32.mrf.mxu0  ;;  %v789_v21 = vpop.f32.mrf.mxu1 }
 0x28b   :  { %v790_v49 = vadd.f32 %v789_v21, %v672_v19  ;;  %v747_v52 = vadd.f32 %v746_v22, %v664_v44 }
 0x28c   :  { %v748_v51 = vpop.f32.mrf.mxu0  ;;  %v5493_v23 = vpop.f32.mrf.mxu1 }
 0x28d   :  { %v749_v29 = vadd.f32 %v748_v51, %v668_v39  ;;  %v804_v8 = vcombine.high %v790_v49, %v790_v49  ;;  %v825_v34 = vrot.slane %v790_v49, %v6907_v7  ;;  %v912_v49 = vld [vmem:[#allocation14] sm:$0x7] }
 0x28e   :  { %v750_v38 = vpop.f32.mrf.mxu0  ;;  %v792_v3 = vpop.f32.mrf.mxu1  ;;  %v7064_v51 = vrot.slane %v912_v49, %v6792_v24 }
 0x28f   :  { %v802_v4 = vcombine.low %v747_v52, %v749_v29  ;;  %v803_v5 = vcombine.high %v747_v52, %v749_v29  ;;  %v832_v6 = vrot.slane %v804_v8, %v6907_v7  ;;  %v751_v61 = vadd.f32 %v750_v38, %v664_v44 }
 0x290   :  { %v752_v10 = vpop.f32.mrf.mxu0  ;;  %v793_v13 = vadd.f32 %v792_v3, %v672_v19  ;;  %v5494_v9 = vpop.f32.mrf.mxu1  ;;  %v7067_v29 = vrot.slane %v912_v49, %v6795_v25 }
 0x291   :  { %v811_v11 = vrot.slane %v802_v4, %v6907_v7  ;;  %v818_v35 = vrot.slane %v803_v5, %v6907_v7  ;;  %v753_v12 = vadd.f32 %v752_v10, %v668_v39 }
 0x292   :  { %v839_v56 = vcombine.high %v793_v13, %v793_v13  ;;  %v860_v46 = vrot.slane %v793_v13, %v6907_v7 }
 0x293   :  { %v7045_v59 = vcombine.high %v811_v11, %v825_v34  ;;  %v7047_v62 = vcombine.low %v818_v35, %v832_v6  ;;  %v7049_v2 = vcombine.high %v818_v35, %v832_v6  ;;  %v837_v26 = vcombine.low %v751_v61, %v753_v12 }
 0x294   :  { %v838_v53 = vcombine.high %v751_v61, %v753_v12  ;;  %v867_v54 = vrot.slane %v839_v56, %v6907_v7  ;;  %v833_v52 = vcombine.low %v811_v11, %v825_v34 }
 0x295   :  { %v846_v17 = vrot.slane %v837_v26, %v6907_v7  ;;  %v7072_v26 = vrot.slane %v912_v49, %v7036_v63 }
 0x296   :  { %v853_v19 = vrot.slane %v838_v53, %v6907_v7  ;;  %v1145_v9 = vrot.slane %v833_v52, 2 }
 0x297   :  { %v7055_v44 = vcombine.low %v846_v17, %v860_v46  ;;  %v7057_v39 = vcombine.high %v846_v17, %v860_v46 }
 0x298   :  { %v7059_v22 = vcombine.low %v853_v19, %v867_v54  ;;  %v7061_v21 = vcombine.high %v853_v19, %v867_v54 }
 0x2aa   :  { %v1091_v23 = vpop.f32.mrf.mxu0 }
 0x2ab   :  { %v1092_v8 = vadd.f32 %v1091_v23, %v7064_v51  ;;  %v1155_v23 = vrot.slane %v833_v52, 4 }
 0x2ac   :  { %v1093_v7 = vpop.f32.mrf.mxu0  ;;  %v1132_v38 = vpop.f32.mrf.mxu1 }
 0x2ad   :  { %v1138_v3 = vadd.f32 %v1092_v8, %v833_v52  ;;  %v1094_v61 = vadd.f32 %v1093_v7, %v7067_v29  ;;  %v1133_v54 = vadd.f32 %v1132_v38, %v7072_v26 }
 0x2ae   :  { %v1095_v4 = vpop.f32.mrf.mxu0  ;;  %v5513_v5 = vpop.f32.mrf.mxu1 }
 0x2af   :  { %v4973_v6 = vmul.f32 -1.442695, %v1138_v3  ;;  %v1147_v12 = vadd.f32 %v1145_v9, %v1094_v61 }
 0x2b0   :  { %v1096_v10 = vpop.f32.mrf.mxu0  ;;  %v1135_v13 = vpop.f32.mrf.mxu1 }
 0x2b1   :  { %5754 = vpow2.f32 %v4973_v6  ;;  %v4974_v34 = vmul.f32 -1.442695, %v1147_v12 }
 0x2b2   :  { %v5514_v35 = vpop.f32.mrf.mxu1 }
 0x2b3   :  { %5756 = vpow2.f32 %v4974_v34 }
 0x2be   :  { %v5755_v11 = vpop.eup %5754 }
 0x2bf   :  { %v1142_v56 = vadd.f32 1.0, %v5755_v11 }
 0x2c0   :  { %v5757_v53 = vpop.eup %5756 }
 0x2c1   :  { %5758 = vrcp.f32 %v1142_v56  ;;  %v1151_v46 = vadd.f32 1.0, %v5757_v53 }
 0x2c3   :  { %5760 = vrcp.f32 %v1151_v46 }
 0x2ce   :  { %v5759_v17 = vpop.eup %5758 }
 0x2cf   :  { %v1154_v19 = vmul.f32 %v5759_v17, %v1133_v54  ;;  %v1252_v54 = vrot.slane %v7045_v59, 2 }
 0x2d0   :  { %v5761_v7 = vpop.eup %5760 }
 0x2d1   :  { %v1157_v8 = vadd.f32 %v1155_v23, %v1154_v19  ;;  %v1159_v3 = vsub.f32 1.0, %v5761_v7  ;;  %v1161_v6 = vmul.f32 0.0, %v5761_v7 }
 0x2d3   :  { %5762 = vtanh.f32 %v1157_v8 }
 0x2e0   :  { %v5763_v4 = vpop.eup %5762 }
 0x2e1   :  { %v1160_v5 = vmul.f32 %v5763_v4, %v1159_v3 }
 0x2e3   :  { %v7075_v61 = vadd.f32 %v1161_v6, %v1160_v5 }
 0x2e5   :  { %v1163_v49 = vpack.c.bf16 %v7075_v61, %v7075_v61 }
 0x2e7   :  { %1197 = vmatmul.mubr.bf16.vlgmr.msra.gmra.mxu0 %v1163_v49  ;;  %5532 = vmatmul.mubr.bf16.vlgmr.msra.gmra.mxu1 %v1163_v49  ;;  %v1262_v49 = vrot.slane %v7045_v59, 4 }
 0x2e8   :  { %1272 = vmatpush1.bf16.msra.mxu0 %v6917_v47  ;;  %5536 = vmatpush3.bf16.msra.mxu1 %v6924_v45 }
 0x2e9   :  { %1273 = vmatprep.subr.bf16.mxu0 %v6919_v42  ;;  %5537 = vmatprep.subr.bf16.mxu1 %v6605_v48 }
 0x2ea   :  { %1303 = vmatprep.mubr.bf16.mxu0 %v6606_v50  ;;  %5551 = vmatprep.mubr.msk.bf16.mxu1 %vm6608_vm5, %v6605_v48 }
 0x2ec   :  { %1274 = vmatpush1.bf16.msra.mxu0 %v6921_v1  ;;  %5538 = vmatpush3.bf16.msra.mxu1 %v6933_v31 }
 0x2ed   :  { %1275 = vmatprep.subr.bf16.mxu0 %v6928_v18  ;;  %5539 = vmatprep.subr.bf16.mxu1 %v6605_v48 }
 0x2f0   :  { %1276 = vmatpush1.bf16.msra.mxu0 %v6937_v14  ;;  %5540 = vmatpush3.bf16.msra.mxu1 %v6943_v33 }
 0x2f1   :  { %1277 = vmatprep.subr.bf16.mxu0 %v6940_v32  ;;  %5541 = vmatprep.subr.bf16.mxu1 %v6605_v48 }
 0x2f4   :  { %1278 = vmatpush1.bf16.msra.mxu0 %v6947_v40  ;;  %5542 = vmatpush3.bf16.msra.mxu1 %v6953_v16 }
 0x2f5   :  { %1279 = vmatprep.subr.bf16.mxu0 %v6950_v41  ;;  %5543 = vmatprep.subr.bf16.mxu1 %v6605_v48 }
 0x2f8   :  { %1280 = vmatpush1.bf16.msra.mxu0 %v6957_v0  ;;  %5544 = vmatpush3.bf16.msra.mxu1 %v6963_v36 }
 0x2f9   :  { %1281 = vmatprep.subr.bf16.mxu0 %v6960_v20  ;;  %5545 = vmatprep.subr.bf16.mxu1 %v6605_v48 }
 0x2fc   :  { %1282 = vmatpush1.bf16.msra.mxu0 %v6967_v37  ;;  %5546 = vmatpush3.bf16.msra.mxu1 %v6973_v55 }
 0x2fd   :  { %1283 = vmatprep.subr.bf16.mxu0 %v6970_v57  ;;  %5547 = vmatprep.subr.bf16.mxu1 %v6605_v48 }
 0x300   :  { %1284 = vmatpush1.bf16.msra.mxu0 %v6977_v27  ;;  %5548 = vmatpush3.bf16.msra.mxu1 %v6983_v28 }
 0x301   :  { %1285 = vmatprep.subr.bf16.mxu0 %v6980_v58  ;;  %5549 = vmatprep.subr.bf16.mxu1 %v6605_v48 }
 0x304   :  { %1286 = vmatpush1.bf16.msra.mxu0 %v6987_v43  ;;  %5550 = vmatpush3.bf16.msra.mxu1 %v6991_v60 }
 0x305   :  { %1378 = vmatprep.subr.bf16.mxu0 %v6903_v30  ;;  %5555 = vmatprep.subr.bf16.mxu1 %v6605_v48 }
 0x3a7   :  { %v1198_v52 = vpop.f32.mrf.mxu0  ;;  %v1239_v38 = vpop.f32.mrf.mxu1 }
 0x3a8   :  { %v1199_v10 = vadd.f32 %v1198_v52, %v7064_v51  ;;  %v1240_v4 = vadd.f32 %v1239_v38, %v7072_v26 }
 0x3a9   :  { %v1200_v13 = vpop.f32.mrf.mxu0  ;;  %v5533_v9 = vpop.f32.mrf.mxu1 }
 0x3aa   :  { %v1245_v35 = vadd.f32 %v1199_v10, %v7045_v59  ;;  %v1201_v56 = vadd.f32 %v1200_v13, %v7067_v29 }
 0x3ab   :  { %v1202_v12 = vpop.f32.mrf.mxu0  ;;  %v1242_v34 = vpop.f32.mrf.mxu1 }
 0x3ac   :  { %v4975_v11 = vmul.f32 -1.442695, %v1245_v35  ;;  %v1254_v17 = vadd.f32 %v1252_v54, %v1201_v56 }
 0x3ad   :  { %v1203_v53 = vpop.f32.mrf.mxu0  ;;  %v5534_v46 = vpop.f32.mrf.mxu1 }
 0x3ae   :  { %5764 = vpow2.f32 %v4975_v11  ;;  %v4976_v19 = vmul.f32 -1.442695, %v1254_v17 }
 0x3b0   :  { %5766 = vpow2.f32 %v4976_v19 }
 0x3bb   :  { %v5765_v23 = vpop.eup %5764 }
 0x3bc   :  { %v1249_v8 = vadd.f32 1.0, %v5765_v23 }
 0x3bd   :  { %v5767_v7 = vpop.eup %5766 }
 0x3be   :  { %5768 = vrcp.f32 %v1249_v8  ;;  %v1258_v3 = vadd.f32 1.0, %v5767_v7 }
 0x3c0   :  { %5770 = vrcp.f32 %v1258_v3  ;;  %v1359_v3 = vrot.slane %v7047_v62, 2 }
 0x3cb   :  { %v5769_v5 = vpop.eup %5768 }
 0x3cc   :  { %v1261_v6 = vmul.f32 %v5769_v5, %v1240_v4 }
 0x3cd   :  { %v5771_v10 = vpop.eup %5770 }
 0x3ce   :  { %v1264_v52 = vadd.f32 %v1262_v49, %v1261_v6  ;;  %v1266_v13 = vsub.f32 1.0, %v5771_v10  ;;  %v1268_v12 = vmul.f32 %v5771_v10, %v7075_v61 }
 0x3d0   :  { %5772 = vtanh.f32 %v1264_v52 }
 0x3dd   :  { %v5773_v9 = vpop.eup %5772 }
 0x3de   :  { %v1267_v35 = vmul.f32 %v5773_v9, %v1266_v13 }
 0x3e0   :  { %v7121_v34 = vadd.f32 %v1268_v12, %v1267_v35  ;;  %v1369_v12 = vrot.slane %v7047_v62, 4 }
 0x3e2   :  { %v1270_v11 = vpack.c.bf16 %v7121_v34, %v7121_v34 }
 0x3e4   :  { %1304 = vmatmul.mubr.bf16.vlgmr.msra.gmra.mxu0 %v1270_v11  ;;  %5552 = vmatmul.mubr.bf16.vlgmr.msra.gmra.mxu1 %v1270_v11 }
 0x3e5   :  { %1379 = vmatpush1.bf16.msra.mxu0 %v6917_v47  ;;  %5556 = vmatpush3.bf16.msra.mxu1 %v6924_v45 }
 0x3e6   :  { %1380 = vmatprep.subr.bf16.mxu0 %v6919_v42  ;;  %5557 = vmatprep.subr.bf16.mxu1 %v6605_v48 }
 0x3e7   :  { %1410 = vmatprep.mubr.bf16.mxu0 %v6606_v50  ;;  %5571 = vmatprep.mubr.msk.bf16.mxu1 %vm6608_vm5, %v6605_v48 }
 0x3e9   :  { %1381 = vmatpush1.bf16.msra.mxu0 %v6921_v1  ;;  %5558 = vmatpush3.bf16.msra.mxu1 %v6933_v31 }
 0x3ea   :  { %1382 = vmatprep.subr.bf16.mxu0 %v6928_v18  ;;  %5559 = vmatprep.subr.bf16.mxu1 %v6605_v48 }
 0x3ed   :  { %1383 = vmatpush1.bf16.msra.mxu0 %v6937_v14  ;;  %5560 = vmatpush3.bf16.msra.mxu1 %v6943_v33 }
 0x3ee   :  { %1384 = vmatprep.subr.bf16.mxu0 %v6940_v32  ;;  %5561 = vmatprep.subr.bf16.mxu1 %v6605_v48 }
 0x3f1   :  { %1385 = vmatpush1.bf16.msra.mxu0 %v6947_v40  ;;  %5562 = vmatpush3.bf16.msra.mxu1 %v6953_v16 }
 0x3f2   :  { %1386 = vmatprep.subr.bf16.mxu0 %v6950_v41  ;;  %5563 = vmatprep.subr.bf16.mxu1 %v6605_v48 }
 0x3f5   :  { %1387 = vmatpush1.bf16.msra.mxu0 %v6957_v0  ;;  %5564 = vmatpush3.bf16.msra.mxu1 %v6963_v36 }
 0x3f6   :  { %1388 = vmatprep.subr.bf16.mxu0 %v6960_v20  ;;  %5565 = vmatprep.subr.bf16.mxu1 %v6605_v48 }
 0x3f9   :  { %1389 = vmatpush1.bf16.msra.mxu0 %v6967_v37  ;;  %5566 = vmatpush3.bf16.msra.mxu1 %v6973_v55 }
 0x3fa   :  { %1390 = vmatprep.subr.bf16.mxu0 %v6970_v57  ;;  %5567 = vmatprep.subr.bf16.mxu1 %v6605_v48 }
 0x3fd   :  { %1391 = vmatpush1.bf16.msra.mxu0 %v6977_v27  ;;  %5568 = vmatpush3.bf16.msra.mxu1 %v6983_v28 }
 0x3fe   :  { %1392 = vmatprep.subr.bf16.mxu0 %v6980_v58  ;;  %5569 = vmatprep.subr.bf16.mxu1 %v6605_v48 }
 0x401   :  { %1393 = vmatpush1.bf16.msra.mxu0 %v6987_v43  ;;  %5570 = vmatpush3.bf16.msra.mxu1 %v6991_v60 }
 0x402   :  { %1485 = vmatprep.subr.bf16.mxu0 %v6903_v30  ;;  %5575 = vmatprep.subr.bf16.mxu1 %v6605_v48 }
 0x4a4   :  { %v1305_v59 = vpop.f32.mrf.mxu0  ;;  %v1346_v61 = vpop.f32.mrf.mxu1 }
 0x4a5   :  { %v1306_v38 = vadd.f32 %v1305_v59, %v7064_v51  ;;  %v1347_v13 = vadd.f32 %v1346_v61, %v7072_v26 }
 0x4a6   :  { %v1307_v56 = vpop.f32.mrf.mxu0  ;;  %v5553_v53 = vpop.f32.mrf.mxu1 }
 0x4a7   :  { %v1352_v46 = vadd.f32 %v1306_v38, %v7047_v62  ;;  %v1308_v23 = vadd.f32 %v1307_v56, %v7067_v29 }
 0x4a8   :  { %v1309_v54 = vpop.f32.mrf.mxu0  ;;  %v1349_v17 = vpop.f32.mrf.mxu1 }
 0x4a9   :  { %v4977_v19 = vmul.f32 -1.442695, %v1352_v46  ;;  %v1361_v4 = vadd.f32 %v1359_v3, %v1308_v23 }
 0x4aa   :  { %v1310_v8 = vpop.f32.mrf.mxu0  ;;  %v5554_v7 = vpop.f32.mrf.mxu1 }
 0x4ab   :  { %5774 = vpow2.f32 %v4977_v19  ;;  %v4978_v5 = vmul.f32 -1.442695, %v1361_v4 }
 0x4ad   :  { %5776 = vpow2.f32 %v4978_v5 }
 0x4b8   :  { %v5775_v6 = vpop.eup %5774 }
 0x4b9   :  { %v1356_v49 = vadd.f32 1.0, %v5775_v6 }
 0x4ba   :  { %v5777_v52 = vpop.eup %5776 }
 0x4bb   :  { %5778 = vrcp.f32 %v1356_v49  ;;  %v1365_v10 = vadd.f32 1.0, %v5777_v52  ;;  %v1466_v52 = vrot.slane %v7049_v2, 2 }
 0x4bd   :  { %5780 = vrcp.f32 %v1365_v10 }
 0x4c8   :  { %v5779_v9 = vpop.eup %5778 }
 0x4c9   :  { %v1368_v35 = vmul.f32 %v5779_v9, %v1347_v13 }
 0x4ca   :  { %v5781_v59 = vpop.eup %5780 }
 0x4cb   :  { %v1371_v11 = vadd.f32 %v1369_v12, %v1368_v35  ;;  %v1373_v38 = vsub.f32 1.0, %v5781_v59  ;;  %v1375_v46 = vmul.f32 %v5781_v59, %v7121_v34 }
 0x4cd   :  { %5782 = vtanh.f32 %v1371_v11 }
 0x4da   :  { %v5783_v56 = vpop.eup %5782 }
 0x4db   :  { %v1374_v53 = vmul.f32 %v5783_v56, %v1373_v38 }
 0x4dd   :  { %v7167_v54 = vadd.f32 %v1375_v46, %v1374_v53  ;;  %v1476_v53 = vrot.slane %v7049_v2, 4 }
 0x4df   :  { %v1377_v17 = vpack.c.bf16 %v7167_v54, %v7167_v54 }
 0x4e1   :  { %1411 = vmatmul.mubr.bf16.vlgmr.msra.gmra.mxu0 %v1377_v17  ;;  %5572 = vmatmul.mubr.bf16.vlgmr.msra.gmra.mxu1 %v1377_v17 }
 0x4e2   :  { %1486 = vmatpush1.bf16.msra.mxu0 %v6917_v47  ;;  %5576 = vmatpush3.bf16.msra.mxu1 %v6924_v45 }
 0x4e3   :  { %1487 = vmatprep.subr.bf16.mxu0 %v6919_v42  ;;  %5577 = vmatprep.subr.bf16.mxu1 %v6605_v48 }
 0x4e4   :  { %1517 = vmatprep.mubr.bf16.mxu0 %v6606_v50  ;;  %5591 = vmatprep.mubr.msk.bf16.mxu1 %vm6608_vm5, %v6605_v48 }
 0x4e6   :  { %1488 = vmatpush1.bf16.msra.mxu0 %v6921_v1  ;;  %5578 = vmatpush3.bf16.msra.mxu1 %v6933_v31 }
 0x4e7   :  { %1489 = vmatprep.subr.bf16.mxu0 %v6928_v18  ;;  %5579 = vmatprep.subr.bf16.mxu1 %v6605_v48 }
 0x4ea   :  { %1490 = vmatpush1.bf16.msra.mxu0 %v6937_v14  ;;  %5580 = vmatpush3.bf16.msra.mxu1 %v6943_v33 }
 0x4eb   :  { %1491 = vmatprep.subr.bf16.mxu0 %v6940_v32  ;;  %5581 = vmatprep.subr.bf16.mxu1 %v6605_v48 }
 0x4ee   :  { %1492 = vmatpush1.bf16.msra.mxu0 %v6947_v40  ;;  %5582 = vmatpush3.bf16.msra.mxu1 %v6953_v16 }
 0x4ef   :  { %1493 = vmatprep.subr.bf16.mxu0 %v6950_v41  ;;  %5583 = vmatprep.subr.bf16.mxu1 %v6605_v48 }
 0x4f2   :  { %1494 = vmatpush1.bf16.msra.mxu0 %v6957_v0  ;;  %5584 = vmatpush3.bf16.msra.mxu1 %v6963_v36 }
 0x4f3   :  { %1495 = vmatprep.subr.bf16.mxu0 %v6960_v20  ;;  %5585 = vmatprep.subr.bf16.mxu1 %v6605_v48 }
 0x4f6   :  { %1496 = vmatpush1.bf16.msra.mxu0 %v6967_v37  ;;  %5586 = vmatpush3.bf16.msra.mxu1 %v6973_v55 }
 0x4f7   :  { %1497 = vmatprep.subr.bf16.mxu0 %v6970_v57  ;;  %5587 = vmatprep.subr.bf16.mxu1 %v6605_v48 }
 0x4fa   :  { %1498 = vmatpush1.bf16.msra.mxu0 %v6977_v27  ;;  %5588 = vmatpush3.bf16.msra.mxu1 %v6983_v28 }
 0x4fb   :  { %1499 = vmatprep.subr.bf16.mxu0 %v6980_v58  ;;  %5589 = vmatprep.subr.bf16.mxu1 %v6605_v48 }
 0x4fe   :  { %1500 = vmatpush1.bf16.msra.mxu0 %v6987_v43  ;;  %5590 = vmatpush3.bf16.msra.mxu1 %v6991_v60 }
 0x4ff   :  { %1592 = vmatprep.subr.bf16.mxu0 %v6903_v30  ;;  %5595 = vmatprep.subr.bf16.mxu1 %v6605_v48 }
 0x5a1   :  { %v1412_v62 = vpop.f32.mrf.mxu0  ;;  %v1453_v34 = vpop.f32.mrf.mxu1 }
 0x5a2   :  { %v1413_v61 = vadd.f32 %v1412_v62, %v7064_v51  ;;  %v1454_v59 = vadd.f32 %v1453_v34, %v7072_v26 }
 0x5a3   :  { %v1414_v19 = vpop.f32.mrf.mxu0  ;;  %v5573_v23 = vpop.f32.mrf.mxu1 }
 0x5a4   :  { %v1459_v8 = vadd.f32 %v1413_v61, %v7049_v2  ;;  %v1415_v5 = vadd.f32 %v1414_v19, %v7067_v29 }
 0x5a5   :  { %v1416_v7 = vpop.f32.mrf.mxu0  ;;  %v1456_v3 = vpop.f32.mrf.mxu1 }
 0x5a6   :  { %v4979_v4 = vmul.f32 -1.442695, %v1459_v8  ;;  %v1468_v10 = vadd.f32 %v1466_v52, %v1415_v5 }
 0x5a7   :  { %v1417_v6 = vpop.f32.mrf.mxu0  ;;  %v5574_v49 = vpop.f32.mrf.mxu1 }
 0x5a8   :  { %5784 = vpow2.f32 %v4979_v4  ;;  %v4980_v13 = vmul.f32 -1.442695, %v1468_v10 }
 0x5aa   :  { %5786 = vpow2.f32 %v4980_v13 }
 0x5b5   :  { %v5785_v9 = vpop.eup %5784 }
 0x5b6   :  { %v1463_v35 = vadd.f32 1.0, %v5785_v9 }
 0x5b7   :  { %v5787_v12 = vpop.eup %5786 }
 0x5b8   :  { %5788 = vrcp.f32 %v1463_v35  ;;  %v1472_v11 = vadd.f32 1.0, %v5787_v12 }
 0x5ba   :  { %5790 = vrcp.f32 %v1472_v11 }
 0x5c5   :  { %v5789_v38 = vpop.eup %5788 }
 0x5c6   :  { %v1475_v56 = vmul.f32 %v5789_v38, %v1454_v59 }
 0x5c7   :  { %v5791_v17 = vpop.eup %5790 }
 0x5c8   :  { %v1478_v46 = vadd.f32 %v1476_v53, %v1475_v56  ;;  %v1480_v62 = vsub.f32 1.0, %v5791_v17  ;;  %v1482_v23 = vmul.f32 %v5791_v17, %v7167_v54 }
 0x5ca   :  { %5792 = vtanh.f32 %v1478_v46 }
 0x5d7   :  { %v5793_v61 = vpop.eup %5792 }
 0x5d8   :  { %v1481_v19 = vmul.f32 %v5793_v61, %v1480_v62  ;;  %v1583_v62 = vrot.slane %v7055_v44, 4 }
 0x5da   :  { %v7213_v8 = vadd.f32 %v1482_v23, %v1481_v19 }
 0x5dc   :  { %v1484_v7 = vpack.c.bf16 %v7213_v8, %v7213_v8 }
 0x5de   :  { %1518 = vmatmul.mubr.bf16.vlgmr.msra.gmra.mxu0 %v1484_v7  ;;  %5592 = vmatmul.mubr.bf16.vlgmr.msra.gmra.mxu1 %v1484_v7 }
 0x5df   :  { %1593 = vmatpush1.bf16.msra.mxu0 %v6917_v47  ;;  %5596 = vmatpush3.bf16.msra.mxu1 %v6924_v45 }
 0x5e0   :  { %1594 = vmatprep.subr.bf16.mxu0 %v6919_v42  ;;  %5597 = vmatprep.subr.bf16.mxu1 %v6605_v48 }
 0x5e1   :  { %1624 = vmatprep.mubr.bf16.mxu0 %v6606_v50  ;;  %5611 = vmatprep.mubr.msk.bf16.mxu1 %vm6608_vm5, %v6605_v48 }
 0x5e3   :  { %1595 = vmatpush1.bf16.msra.mxu0 %v6921_v1  ;;  %5598 = vmatpush3.bf16.msra.mxu1 %v6933_v31 }
 0x5e4   :  { %1596 = vmatprep.subr.bf16.mxu0 %v6928_v18  ;;  %5599 = vmatprep.subr.bf16.mxu1 %v6605_v48 }
 0x5e7   :  { %1597 = vmatpush1.bf16.msra.mxu0 %v6937_v14  ;;  %5600 = vmatpush3.bf16.msra.mxu1 %v6943_v33 }
 0x5e8   :  { %1598 = vmatprep.subr.bf16.mxu0 %v6940_v32  ;;  %5601 = vmatprep.subr.bf16.mxu1 %v6605_v48 }
 0x5eb   :  { %1599 = vmatpush1.bf16.msra.mxu0 %v6947_v40  ;;  %5602 = vmatpush3.bf16.msra.mxu1 %v6953_v16 }
 0x5ec   :  { %1600 = vmatprep.subr.bf16.mxu0 %v6950_v41  ;;  %5603 = vmatprep.subr.bf16.mxu1 %v6605_v48 }
 0x5ef   :  { %1601 = vmatpush1.bf16.msra.mxu0 %v6957_v0  ;;  %5604 = vmatpush3.bf16.msra.mxu1 %v6963_v36 }
 0x5f0   :  { %1602 = vmatprep.subr.bf16.mxu0 %v6960_v20  ;;  %5605 = vmatprep.subr.bf16.mxu1 %v6605_v48 }
 0x5f3   :  { %1603 = vmatpush1.bf16.msra.mxu0 %v6967_v37  ;;  %5606 = vmatpush3.bf16.msra.mxu1 %v6973_v55 }
 0x5f4   :  { %1604 = vmatprep.subr.bf16.mxu0 %v6970_v57  ;;  %5607 = vmatprep.subr.bf16.mxu1 %v6605_v48 }
 0x5f7   :  { %1605 = vmatpush1.bf16.msra.mxu0 %v6977_v27  ;;  %5608 = vmatpush3.bf16.msra.mxu1 %v6983_v28 }
 0x5f8   :  { %1606 = vmatprep.subr.bf16.mxu0 %v6980_v58  ;;  %5609 = vmatprep.subr.bf16.mxu1 %v6605_v48 }
 0x5fb   :  { %1607 = vmatpush1.bf16.msra.mxu0 %v6987_v43  ;;  %5610 = vmatpush3.bf16.msra.mxu1 %v6991_v60 }
 0x5fc   :  { %1699 = vmatprep.subr.bf16.mxu0 %v6903_v30  ;;  %5615 = vmatprep.subr.bf16.mxu1 %v6605_v48  ;;  %v1573_v30 = vrot.slane %v7055_v44, 2 }
 0x69e   :  { %v1519_v2 = vpop.f32.mrf.mxu0  ;;  %v1560_v54 = vpop.f32.mrf.mxu1 }
 0x69f   :  { %v1520_v34 = vadd.f32 %v1519_v2, %v7064_v51  ;;  %v1561_v53 = vadd.f32 %v1560_v54, %v7072_v26 }
 0x6a0   :  { %v1521_v3 = vpop.f32.mrf.mxu0  ;;  %v5593_v4 = vpop.f32.mrf.mxu1 }
 0x6a1   :  { %v1566_v5 = vadd.f32 %v1520_v34, %v7055_v44  ;;  %v1522_v10 = vadd.f32 %v1521_v3, %v7067_v29  ;;  %v1690_v44 = vrot.slane %v7057_v39, 4 }
 0x6a2   :  { %v1523_v6 = vpop.f32.mrf.mxu0  ;;  %v1563_v49 = vpop.f32.mrf.mxu1 }
 0x6a3   :  { %v4981_v52 = vmul.f32 -1.442695, %v1566_v5  ;;  %v1575_v35 = vadd.f32 %v1573_v30, %v1522_v10  ;;  %v5840_v30 = vld [vmem:[#allocation11 + $0xb0] ss:$12 sps:$4 sm:$0xff]  }
 0x6a4   :  { %v1524_v13 = vpop.f32.mrf.mxu0  ;;  %v5594_v9 = vpop.f32.mrf.mxu1 }
 0x6a5   :  { %5794 = vpow2.f32 %v4981_v52  ;;  %v4982_v12 = vmul.f32 -1.442695, %v1575_v35  ;;  %v5839_v9 = vld [vmem:[#allocation11 + $0xa8] ss:$12 sps:$4 sm:$0xff]   ;;  %v5842_v35 = vld [vmem:[#allocation11 + $0x90] ss:$12 sps:$4 sm:$0xff]  }
 0x6a7   :  { %5796 = vpow2.f32 %v4982_v12  ;;  %v5843_v12 = vld [vmem:[#allocation11 + $0x98] ss:$12 sps:$4 sm:$0xff]  }
 0x6b2   :  { %v5795_v11 = vpop.eup %5794 }
 0x6b3   :  { %v1570_v59 = vadd.f32 1.0, %v5795_v11  ;;  %v5844_v11 = vld [vmem:[#allocation11 + $0x7c] ss:$12 sps:$4 sm:$0xff]  }
 0x6b4   :  { %v5797_v38 = vpop.eup %5796 }
 0x6b5   :  { %5798 = vrcp.f32 %v1570_v59  ;;  %v1579_v56 = vadd.f32 1.0, %v5797_v38  ;;  %v5845_v59 = vld [vmem:[#allocation11 + $0x78] ss:$12 sps:$4 sm:$0xff]   ;;  %v5846_v38 = vld [vmem:[#allocation11 + $0x80] ss:$12 sps:$4 sm:$0xff]  }
 0x6b7   :  { %5800 = vrcp.f32 %v1579_v56  ;;  %v5847_v56 = vld [vmem:[#allocation11 + $0x64] ss:$12 sps:$4 sm:$0xff]  }
 0x6c2   :  { %v5799_v46 = vpop.eup %5798 }
 0x6c3   :  { %v1582_v17 = vmul.f32 %v5799_v46, %v1561_v53  ;;  %v5849_v53 = vld [vmem:[#allocation11 + $0x68] ss:$12 sps:$4 sm:$0xff]   ;;  %v5850_v46 = vld [vmem:[#allocation11 + $0x4c] ss:$12 sps:$4 sm:$0xff]  }
 0x6c4   :  { %v5801_v19 = vpop.eup %5800 }
 0x6c5   :  { %v1585_v61 = vadd.f32 %v1583_v62, %v1582_v17  ;;  %v1587_v23 = vsub.f32 1.0, %v5801_v19  ;;  %v1589_v34 = vmul.f32 %v5801_v19, %v7213_v8  ;;  %v5851_v17 = vld [vmem:[#allocation11 + $0x48] ss:$12 sps:$4 sm:$0xff]   ;;  %v5852_v62 = vld [vmem:[#allocation11 + $0x50] ss:$12 sps:$4 sm:$0xff]  }
 0x6c6   :  { %v5854_v19 = vld [vmem:[#allocation11 + $0x30] ss:$12 sps:$4 sm:$0xff]  }
 0x6c7   :  { %5802 = vtanh.f32 %v1585_v61  ;;  %v5853_v61 = vld [vmem:[#allocation11 + $0x34] ss:$12 sps:$4 sm:$0xff]  }
 0x6d4   :  { %v5803_v7 = vpop.eup %5802 }
 0x6d5   :  { %v1588_v2 = vmul.f32 %v5803_v7, %v1587_v23  ;;  %v5855_v23 = vld [vmem:[#allocation11 + $0x38] ss:$12 sps:$4 sm:$0xff]   ;;  %v5856_v7 = vld [vmem:[#allocation11 + $0x1c] ss:$12 sps:$4 sm:$0xff]  }
 0x6d7   :  { %v7259_v3 = vadd.f32 %v1589_v34, %v1588_v2  ;;  %v5857_v2 = vld [vmem:[#allocation11 + $0x18] ss:$12 sps:$4 sm:$0xff]   ;;  %v5858_v34 = vld [vmem:[#allocation11 + $0x20] ss:$12 sps:$4 sm:$0xff]  }
 0x6d9   :  { %v1591_v4 = vpack.c.bf16 %v7259_v3, %v7259_v3 }
 0x6db   :  { %1625 = vmatmul.mubr.bf16.vlgmr.msra.gmra.mxu0 %v1591_v4  ;;  %5612 = vmatmul.mubr.bf16.vlgmr.msra.gmra.mxu1 %v1591_v4  ;;  %v5860_v4 = vld [vmem:[#allocation11] ss:$12 sps:$4 sm:$0xff]  }
 0x6dc   :  { %1700 = vmatpush1.bf16.msra.mxu0 %v6917_v47  ;;  %5616 = vmatpush3.bf16.msra.mxu1 %v6924_v45  ;;  %v5838_v47 = vld [vmem:[#allocation11 + $0xac] ss:$12 sps:$4 sm:$0xff]  }
 0x6dd   :  { %1701 = vmatprep.subr.bf16.mxu0 %v6919_v42  ;;  %5617 = vmatprep.subr.bf16.mxu1 %v6605_v48 }
 0x6de   :  { %1731 = vmatprep.mubr.bf16.mxu0 %v6606_v50  ;;  %5631 = vmatprep.mubr.msk.bf16.mxu1 %vm6608_vm5, %v6605_v48 }
 0x6e0   :  { %1702 = vmatpush1.bf16.msra.mxu0 %v6921_v1  ;;  %5618 = vmatpush3.bf16.msra.mxu1 %v6933_v31 }
 0x6e1   :  { %1703 = vmatprep.subr.bf16.mxu0 %v6928_v18  ;;  %5619 = vmatprep.subr.bf16.mxu1 %v6605_v48 }
 0x6e4   :  { %1704 = vmatpush1.bf16.msra.mxu0 %v6937_v14  ;;  %5620 = vmatpush3.bf16.msra.mxu1 %v6943_v33 }
 0x6e5   :  { %1705 = vmatprep.subr.bf16.mxu0 %v6940_v32  ;;  %5621 = vmatprep.subr.bf16.mxu1 %v6605_v48 }
 0x6e8   :  { %1706 = vmatpush1.bf16.msra.mxu0 %v6947_v40  ;;  %5622 = vmatpush3.bf16.msra.mxu1 %v6953_v16 }
 0x6e9   :  { %1707 = vmatprep.subr.bf16.mxu0 %v6950_v41  ;;  %5623 = vmatprep.subr.bf16.mxu1 %v6605_v48 }
 0x6ec   :  { %1708 = vmatpush1.bf16.msra.mxu0 %v6957_v0  ;;  %5624 = vmatpush3.bf16.msra.mxu1 %v6963_v36 }
 0x6ed   :  { %1709 = vmatprep.subr.bf16.mxu0 %v6960_v20  ;;  %5625 = vmatprep.subr.bf16.mxu1 %v6605_v48  ;;  %v1680_v20 = vrot.slane %v7057_v39, 2 }
 0x6f0   :  { %1710 = vmatpush1.bf16.msra.mxu0 %v6967_v37  ;;  %5626 = vmatpush3.bf16.msra.mxu1 %v6973_v55 }
 0x6f1   :  { %1711 = vmatprep.subr.bf16.mxu0 %v6970_v57  ;;  %5627 = vmatprep.subr.bf16.mxu1 %v6605_v48 }
 0x6f4   :  { %1712 = vmatpush1.bf16.msra.mxu0 %v6977_v27  ;;  %5628 = vmatpush3.bf16.msra.mxu1 %v6983_v28 }
 0x6f5   :  { %1713 = vmatprep.subr.bf16.mxu0 %v6980_v58  ;;  %5629 = vmatprep.subr.bf16.mxu1 %v6605_v48 }
 0x6f8   :  { %1714 = vmatpush1.bf16.msra.mxu0 %v6987_v43  ;;  %5630 = vmatpush3.bf16.msra.mxu1 %v6991_v60 }
 0x6f9   :  { %1806 = vmatprep.subr.bf16.mxu0 %v5838_v47  ;;  %5635 = vmatprep.subr.bf16.mxu1 %v6605_v48  ;;  %v5861_v47 = vld [vmem:[#allocation11 + $0x8] ss:$12 sps:$4 sm:$0xff]  }
 0x79b   :  { %v1626_v42 = vpop.f32.mrf.mxu0  ;;  %v1667_v1 = vpop.f32.mrf.mxu1 }
 0x79c   :  { %v1627_v45 = vadd.f32 %v1626_v42, %v7064_v51  ;;  %v1668_v28 = vadd.f32 %v1667_v1, %v7072_v26  ;;  %v1912_v42 = vld [vmem:[%s7533_s2] sm:$0x3] }
 0x79d   :  { %v1628_v18 = vpop.f32.mrf.mxu0  ;;  %v5613_v31 = vpop.f32.mrf.mxu1  ;;  %v1916_v1 = vrot.slane %v1912_v42, %v6792_v24 }
 0x79e   :  { %v1673_v14 = vadd.f32 %v1627_v45, %v7057_v39  ;;  %v1629_v41 = vadd.f32 %v1628_v18, %v7067_v29  ;;  %v5841_v39 = vld [vmem:[#allocation11 + $0x94] ss:$12 sps:$4 sm:$0xff]   ;;  %v1923_v45 = vrot.slane %v1912_v42, %v6795_v25 }
 0x79f   :  { %v1630_v32 = vpop.f32.mrf.mxu0  ;;  %v1670_v33 = vpop.f32.mrf.mxu1  ;;  %1918 = vbcast.lane.b32.xlu0 %v1916_v1, 256 }
 0x7a0   :  { %v4983_v40 = vmul.f32 -1.442695, %v1673_v14  ;;  %v1682_v36 = vadd.f32 %v1680_v20, %v1629_v41 }
 0x7a1   :  { %v1631_v16 = vpop.f32.mrf.mxu0  ;;  %v5614_v0 = vpop.f32.mrf.mxu1 }
 0x7a2   :  { %5804 = vpow2.f32 %v4983_v40  ;;  %v4984_v37 = vmul.f32 -1.442695, %v1682_v36 }
 0x7a3   :  { %1925 = vbcast.lane.b32.xlu0 %v1923_v45, 256 }
 0x7a4   :  { %5806 = vpow2.f32 %v4984_v37 }
 0x7af   :  { %v5805_v57 = vpop.eup %5804 }
 0x7b0   :  { %v1677_v55 = vadd.f32 1.0, %v5805_v57  ;;  %v1787_v57 = vrot.slane %v7059_v22, 2 }
 0x7b1   :  { %v5807_v27 = vpop.eup %5806 }
 0x7b2   :  { %5808 = vrcp.f32 %v1677_v55  ;;  %v1686_v58 = vadd.f32 1.0, %v5807_v27 }
 0x7b4   :  { %5810 = vrcp.f32 %v1686_v58 }
 0x7bf   :  { %v5809_v43 = vpop.eup %5808 }
 0x7c0   :  { %v1689_v60 = vmul.f32 %v5809_v43, %v1668_v28 }
 0x7c1   :  { %v5811_v54 = vpop.eup %5810 }
 0x7c2   :  { %v1692_v8 = vadd.f32 %v1690_v44, %v1689_v60  ;;  %v1694_v5 = vsub.f32 1.0, %v5811_v54  ;;  %v1696_v52 = vmul.f32 %v5811_v54, %v7259_v3  ;;  %v5859_v3 = vld [vmem:[#allocation11 + $0x4] ss:$12 sps:$4 sm:$0xff]  }
 0x7c4   :  { %5812 = vtanh.f32 %v1692_v8 }
 0x7d1   :  { %v5813_v6 = vpop.eup %5812 }
 0x7d2   :  { %v1695_v49 = vmul.f32 %v5813_v6, %v1694_v5  ;;  %v1797_v5 = vrot.slane %v7059_v22, 4 }
 0x7d4   :  { %v7304_v10 = vadd.f32 %v1696_v52, %v1695_v49 }
 0x7d6   :  { %v1698_v13 = vpack.c.bf16 %v7304_v10, %v7304_v10 }
 0x7d8   :  { %1732 = vmatmul.mubr.bf16.vlgmr.msra.gmra.mxu0 %v1698_v13  ;;  %5632 = vmatmul.mubr.bf16.vlgmr.msra.gmra.mxu1 %v1698_v13 }
 0x7d9   :  { %1807 = vmatpush1.bf16.msra.mxu0 %v5839_v9  ;;  %5636 = vmatpush3.bf16.msra.mxu1 %v5840_v30 }
 0x7da   :  { %1808 = vmatprep.subr.bf16.mxu0 %v5841_v39  ;;  %5637 = vmatprep.subr.bf16.mxu1 %v6605_v48 }
 0x7db   :  { %1838 = vmatprep.mubr.bf16.mxu0 %v6606_v50  ;;  %5651 = vmatprep.mubr.msk.bf16.mxu1 %vm6608_vm5, %v6605_v48  ;;  %v5848_v50 = vld [vmem:[#allocation11 + $0x60] ss:$12 sps:$4 sm:$0xff]  }
 0x7dd   :  { %1809 = vmatpush1.bf16.msra.mxu0 %v5842_v35  ;;  %5638 = vmatpush3.bf16.msra.mxu1 %v5843_v12 }
 0x7de   :  { %1810 = vmatprep.subr.bf16.mxu0 %v5844_v11  ;;  %5639 = vmatprep.subr.bf16.mxu1 %v6605_v48 }
 0x7e1   :  { %1811 = vmatpush1.bf16.msra.mxu0 %v5845_v59  ;;  %5640 = vmatpush3.bf16.msra.mxu1 %v5846_v38 }
 0x7e2   :  { %1812 = vmatprep.subr.bf16.mxu0 %v5847_v56  ;;  %5641 = vmatprep.subr.bf16.mxu1 %v6605_v48 }
 0x7e5   :  { %1813 = vmatpush1.bf16.msra.mxu0 %v5848_v50  ;;  %5642 = vmatpush3.bf16.msra.mxu1 %v5849_v53 }
 0x7e6   :  { %1814 = vmatprep.subr.bf16.mxu0 %v5850_v46  ;;  %5643 = vmatprep.subr.bf16.mxu1 %v6605_v48 }
 0x7e9   :  { %1815 = vmatpush1.bf16.msra.mxu0 %v5851_v17  ;;  %5644 = vmatpush3.bf16.msra.mxu1 %v5852_v62 }
 0x7ea   :  { %1816 = vmatprep.subr.bf16.mxu0 %v5853_v61  ;;  %5645 = vmatprep.subr.bf16.mxu1 %v6605_v48  ;;  %v1927_v61 = vld [vmem:[%s7532_s1] sm:$0xff] }
 0x7ed   :  { %1817 = vmatpush1.bf16.msra.mxu0 %v5854_v19  ;;  %5646 = vmatpush3.bf16.msra.mxu1 %v5855_v23  ;;  %v1928_v19 = vld [vmem:[%s7532_s1 + $0x8] sm:$0xff]  ;;  %v1929_v23 = vld [vmem:[%s7532_s1 + $0x10] sm:$0xff] }
 0x7ee   :  { %1818 = vmatprep.subr.bf16.mxu0 %v5856_v7  ;;  %5647 = vmatprep.subr.bf16.mxu1 %v6605_v48  ;;  %v1933_v7 = vunpack.c.l.bf16 %v1927_v61 }
 0x7f1   :  { %1819 = vmatpush1.bf16.msra.mxu0 %v5857_v2  ;;  %5648 = vmatpush3.bf16.msra.mxu1 %v5858_v34  ;;  %v1934_v2 = vunpack.c.h.bf16 %v1927_v61  ;;  %v1935_v34 = vunpack.c.l.bf16 %v1928_v19 }
 0x7f2   :  { %1820 = vmatprep.subr.bf16.mxu0 %v5859_v3  ;;  %5649 = vmatprep.subr.bf16.mxu1 %v6605_v48  ;;  %v1936_v3 = vunpack.c.h.bf16 %v1928_v19 }
 0x7f5   :  { %1821 = vmatpush1.bf16.msra.mxu0 %v5860_v4  ;;  %5650 = vmatpush3.bf16.msra.mxu1 %v5861_v47  ;;  %v1937_v4 = vunpack.c.l.bf16 %v1929_v23  ;;  %v1938_v47 = vunpack.c.h.bf16 %v1929_v23 }
 0x811   :  { %v1919_v12 = vpop.permute.xlu0 %1918 }
 0x812   :  { %v2029_v11 = vrot.slane %v1919_v12, 4  ;;  %v1945_v45 = vmul.f32 %v1933_v7, %v1919_v12 }
 0x814   :  { %v2030_v59 = vadd.f32 %v2029_v11, %v1919_v12 }
 0x816   :  { %v2031_v38 = vrot.slane %v2030_v59, 2 }
 0x818   :  { %v2032_v50 = vadd.f32 %v2031_v38, %v2030_v59 }
 0x81a   :  { %v2033_v46 = vrot.slane %v2032_v50, 1 }
 0x81c   :  { %v2034_v17 = vadd.f32 %v2033_v46, %v2032_v50 }
 0x81e   :  { %v2041_v42 = vmax.f32 %v2034_v17, 1.0 }
 0x898   :  { %v1733_v18 = vpop.f32.mrf.mxu0  ;;  %v1774_v31 = vpop.f32.mrf.mxu1 }
 0x899   :  { %v1734_v14 = vadd.f32 %v1733_v18, %v7064_v51  ;;  %v1775_v44 = vadd.f32 %v1774_v31, %v7072_v26  ;;  %v1946_v18 = vmul.f32 %v1934_v2, %v1919_v12  ;;  %v1947_v31 = vmul.f32 %v1935_v34, %v1919_v12 }
 0x89a   :  { %v1735_v32 = vpop.f32.mrf.mxu0  ;;  %v5633_v33 = vpop.f32.mrf.mxu1 }
 0x89b   :  { %v1780_v40 = vadd.f32 %v1734_v14, %v7059_v22  ;;  %v1736_v20 = vadd.f32 %v1735_v32, %v7067_v29  ;;  %v7334_v22 = vpop.permute.xlu0 %1925  ;;  %v1948_v14 = vmul.f32 %v1936_v3, %v1919_v12  ;;  %v1949_v32 = vmul.f32 %v1937_v4, %v1919_v12 }
 0x89c   :  { %v1737_v41 = vpop.f32.mrf.mxu0  ;;  %v1777_v16 = vpop.f32.mrf.mxu1  ;;  %v2035_v56 = vrot.slane %v7334_v22, 4  ;;  %v1950_v33 = vmul.f32 %v1938_v47, %v1919_v12 }
 0x89d   :  { %v4985_v0 = vmul.f32 -1.442695, %v1780_v40  ;;  %v1789_v55 = vadd.f32 %v1787_v57, %v1736_v20  ;;  %v1930_v40 = vld [vmem:[%s7532_s1 + $0x18] sm:$0xff]  ;;  %v1957_v16 = vrot.slane %v1945_v45, 4  ;;  %v1969_v20 = vrot.slane %v1947_v31, 4 }
 0x89e   :  { %v1738_v36 = vpop.f32.mrf.mxu0  ;;  %v5634_v37 = vpop.f32.mrf.mxu1  ;;  %v2036_v53 = vadd.f32 %v2035_v56, %v7334_v22  ;;  %v1981_v57 = vrot.slane %v1949_v32, 4 }
 0x89f   :  { %5814 = vpow2.f32 %v4985_v0  ;;  %v4986_v27 = vmul.f32 -1.442695, %v1789_v55  ;;  %v1963_v0 = vrot.slane %v1946_v18, 4  ;;  %v1975_v36 = vrot.slane %v1948_v14, 4  ;;  %v1931_v37 = vld [vmem:[%s7532_s1 + $0x20] sm:$0xff] }
 0x8a0   :  { %v1987_v55 = vrot.slane %v1950_v33, 4 }
 0x8a1   :  { %5816 = vpow2.f32 %v4986_v27  ;;  %v1939_v27 = vunpack.c.l.bf16 %v1930_v40 }
 0x8a3   :  { %v1951_v17 = vmul.f32 %v1939_v27, %v7334_v22 }
 0x8ac   :  { %v5815_v58 = vpop.eup %5814 }
 0x8ad   :  { %v1784_v28 = vadd.f32 1.0, %v5815_v58  ;;  %v1940_v58 = vunpack.c.h.bf16 %v1930_v40  ;;  %v1993_v40 = vrot.slane %v1951_v17, 4 }
 0x8ae   :  { %v5817_v43 = vpop.eup %5816 }
 0x8af   :  { %5818 = vrcp.f32 %v1784_v28  ;;  %v1793_v60 = vadd.f32 1.0, %v5817_v43  ;;  %v1958_v28 = vadd.f32 %v1957_v16, %v1945_v45  ;;  %v1964_v43 = vadd.f32 %v1963_v0, %v1946_v18 }
 0x8b1   :  { %5820 = vrcp.f32 %v1793_v60  ;;  %v1970_v60 = vadd.f32 %v1969_v20, %v1947_v31 }
 0x8bc   :  { %v5819_v8 = vpop.eup %5818 }
 0x8bd   :  { %v1796_v54 = vmul.f32 %v5819_v8, %v1775_v44  ;;  %v1976_v44 = vadd.f32 %v1975_v36, %v1948_v14  ;;  %v1932_v8 = vld [vmem:[%s7532_s1 + $0x28] sm:$0xff] }
 0x8be   :  { %v5821_v49 = vpop.eup %5820  ;;  %v1943_v11 = vunpack.c.l.bf16 %v1932_v8  ;;  %v1944_v59 = vunpack.c.h.bf16 %v1932_v8 }
 0x8bf   :  { %v1799_v6 = vadd.f32 %v1797_v5, %v1796_v54  ;;  %v1801_v52 = vsub.f32 1.0, %v5821_v49  ;;  %v1803_v30 = vmul.f32 %v5821_v49, %v7304_v10  ;;  %v2037_v10 = vrot.slane %v2036_v53, 2 }
 0x8c0   :  { %v1982_v54 = vadd.f32 %v1981_v57, %v1949_v32  ;;  %v1988_v5 = vadd.f32 %v1987_v55, %v1950_v33  ;;  %v1942_v49 = vunpack.c.h.bf16 %v1931_v37  ;;  %v1955_v14 = vmul.f32 %v1943_v11, %v7334_v22 }
 0x8c1   :  { %5822 = vtanh.f32 %v1799_v6  ;;  %v2038_v62 = vadd.f32 %v2037_v10, %v2036_v53  ;;  %v1941_v6 = vunpack.c.l.bf16 %v1931_v37  ;;  %v1956_v32 = vmul.f32 %v1944_v59, %v7334_v22 }
 0x8c2   :  { %5824 = vrcp.f32 %v2041_v42  ;;  %v1989_v12 = vrot.slane %v1988_v5, 2  ;;  %v1954_v4 = vmul.f32 %v1942_v49, %v7334_v22 }
 0x8c3   :  { %v2039_v1 = vrot.slane %v2038_v62, 1  ;;  %v1953_v3 = vmul.f32 %v1941_v6, %v7334_v22 }
 0x8c4   :  { %v1990_v10 = vadd.f32 %v1989_v12, %v1988_v5  ;;  %v2011_v20 = vrot.slane %v1954_v4, 4 }
 0x8c5   :  { %v7350_v41 = vadd.f32 %v2039_v1, %v2038_v62  ;;  %v1952_v62 = vmul.f32 %v1940_v58, %v7334_v22  ;;  %v2005_v0 = vrot.slane %v1953_v3, 4 }
 0x8c6   :  { %v1991_v34 = vrot.slane %v1990_v10, 1  ;;  %v2012_v49 = vadd.f32 %v2011_v20, %v1954_v4 }
 0x8c7   :  { %v1999_v16 = vrot.slane %v1952_v62, 4  ;;  %v2006_v6 = vadd.f32 %v2005_v0, %v1953_v3 }
 0x8c8   :  { %v1992_v31 = vadd.f32 %v1991_v34, %v1990_v10  ;;  %v2013_v11 = vrot.slane %v2012_v49, 2 }
 0x8c9   :  { %v2007_v12 = vrot.slane %v2006_v6, 2 }
 0x8cb   :  { %v2008_v10 = vadd.f32 %v2007_v12, %v2006_v6 }
 0x8ce   :  { %v5823_v13 = vpop.eup %5822 }
 0x8cf   :  { %v1802_v9 = vmul.f32 %v5823_v13, %v1801_v52  ;;  %v1959_v52 = vrot.slane %v1958_v28, 2  ;;  %v1965_v13 = vrot.slane %v1964_v43, 2  ;;  %v5825_v33 = vpop.eup %5824 }
 0x8d0   :  { %v7374_v58 = vmul.f32 %v5825_v33, %v1992_v31 }
 0x8d1   :  { %v7330_v39 = vadd.f32 %v1803_v30, %v1802_v9  ;;  %v1971_v9 = vrot.slane %v1970_v60, 2  ;;  %v1977_v30 = vrot.slane %v1976_v44, 2  ;;  %v1960_v38 = vadd.f32 %v1959_v52, %v1958_v28 }
 0x8d2   :  { %v1966_v56 = vadd.f32 %v1965_v13, %v1964_v43  ;;  %v1994_v28 = vadd.f32 %v1993_v40, %v1951_v17  ;;  %v2000_v43 = vadd.f32 %v1999_v16, %v1952_v62  ;;  %v2062_v5 = vpack.c.bf16 %v7374_v58, %v7374_v58 }
 0x8d3   :  { %v1805_v35 = vpack.c.bf16 %v7330_v39, %v7330_v39  ;;  %v1972_v50 = vadd.f32 %v1971_v9, %v1970_v60  ;;  %v1978_v53 = vadd.f32 %v1977_v30, %v1976_v44  ;;  %v1961_v61 = vrot.slane %v1960_v38, 1 }
 0x8d4   :  { %v1967_v19 = vrot.slane %v1966_v56, 1  ;;  %v2017_v52 = vrot.slane %v1955_v14, 4  ;;  %v2023_v13 = vrot.slane %v1956_v32, 4  ;;  %v1995_v9 = vrot.slane %v1994_v28, 2 }
 0x8d5   :  { %1839 = vmatmul.mubr.bf16.vlgmr.msra.gmra.mxu0 %v1805_v35  ;;  %5652 = vmatmul.mubr.bf16.vlgmr.msra.gmra.mxu1 %v1805_v35  ;;  %v1983_v35 = vrot.slane %v1982_v54, 2  ;;  %v1973_v23 = vrot.slane %v1972_v50, 1  ;;  %v1979_v7 = vrot.slane %v1978_v53, 1  ;;  %v1962_v47 = vadd.f32 %v1961_v61, %v1960_v38 }
 0x8d6   :  { %v1968_v42 = vadd.f32 %v1967_v19, %v1966_v56  ;;  %v2001_v30 = vrot.slane %v2000_v43, 2  ;;  %v2018_v59 = vadd.f32 %v2017_v52, %v1955_v14  ;;  %v2024_v38 = vadd.f32 %v2023_v13, %v1956_v32 }
 0x8d7   :  { %v1984_v46 = vadd.f32 %v1983_v35, %v1982_v54  ;;  %v1974_v1 = vadd.f32 %v1973_v23, %v1972_v50  ;;  %v1980_v45 = vadd.f32 %v1979_v7, %v1978_v53  ;;  %v7364_v36 = vmul.f32 %v5825_v33, %v1962_v47 }
 0x8d8   :  { %v7366_v37 = vmul.f32 %v5825_v33, %v1968_v42  ;;  %v2042_v35 = vmax.f32 %v7350_v41, 1.0  ;;  %v2019_v56 = vrot.slane %v2018_v59, 2  ;;  %v2025_v50 = vrot.slane %v2024_v38, 2 }
 0x8d9   :  { %v1985_v2 = vrot.slane %v1984_v46, 1  ;;  %v7368_v57 = vmul.f32 %v5825_v33, %v1974_v1  ;;  %v7370_v55 = vmul.f32 %v5825_v33, %v1980_v45  ;;  %v2057_v22 = vpack.c.bf16 %v7364_v36, %v7364_v36 }
 0x8da   :  { %v2058_v60 = vpack.c.bf16 %v7366_v37, %v7366_v37  ;;  %5826 = vrcp.f32 %v2042_v35  ;;  %v1996_v53 = vadd.f32 %v1995_v9, %v1994_v28  ;;  %v2014_v17 = vadd.f32 %v2013_v11, %v2012_v49 }
 0x8db   :  { %v1986_v18 = vadd.f32 %v1985_v2, %v1984_v46  ;;  %v2059_v44 = vpack.c.bf16 %v7368_v57, %v7368_v57  ;;  %v2060_v8 = vpack.c.bf16 %v7370_v55, %v7370_v55  ;;  %v2002_v46 = vadd.f32 %v2001_v30, %v2000_v43 }
 0x8dc   :  { %v2020_v62 = vadd.f32 %v2019_v56, %v2018_v59  ;;  %v2026_v61 = vadd.f32 %v2025_v50, %v2024_v38  ;;  %v1997_v19 = vrot.slane %v1996_v53, 1  ;;  %v2009_v7 = vrot.slane %v2008_v10, 1 }
 0x8dd   :  { %v7372_v27 = vmul.f32 %v5825_v33, %v1986_v18  ;;  %v2003_v23 = vrot.slane %v2002_v46, 1  ;;  %v2015_v2 = vrot.slane %v2014_v17, 1 }
 0x8de   :  { %v2021_v34 = vrot.slane %v2020_v62, 1  ;;  %v2027_v3 = vrot.slane %v2026_v61, 1  ;;  %v1998_v41 = vadd.f32 %v1997_v19, %v1996_v53  ;;  %v2010_v47 = vadd.f32 %v2009_v7, %v2008_v10 }
 0x8df   :  { %v2061_v54 = vpack.c.bf16 %v7372_v27, %v7372_v27  ;;  %v2004_v4 = vadd.f32 %v2003_v23, %v2002_v46  ;;  %v2016_v42 = vadd.f32 %v2015_v2, %v2014_v17  ;;  %v1894_v46 = vrot.slane %v7061_v21, 2 }
 0x8e0   :  { %v2022_v1 = vadd.f32 %v2021_v34, %v2020_v62  ;;  %v2028_v45 = vadd.f32 %v2027_v3, %v2026_v61  ;;  %v1904_v34 = vrot.slane %v7061_v21, 4 }
 0x8e7   :  { %v5827_v18 = vpop.eup %5826 }
 0x8e8   :  { %v7389_v31 = vmul.f32 %v5827_v18, %v1998_v41  ;;  %v2052_v14 = vmul.f32 %v5827_v18, %v2004_v4  ;;  %v7391_v32 = vmul.f32 %v5827_v18, %v2010_v47  ;;  %v2054_v33 = vmul.f32 %v5827_v18, %v2016_v42 }
 0x8e9   :  { %v7393_v40 = vmul.f32 %v5827_v18, %v2022_v1  ;;  %v7395_v16 = vmul.f32 %v5827_v18, %v2028_v45 }
 0x8ea   :  { %v2063_v0 = vpack.c.bf16 %v7389_v31, %v7389_v31  ;;  %v2064_v20 = vpack.c.bf16 %v2052_v14, %v2052_v14  ;;  %v2065_v28 = vpack.c.bf16 %v7391_v32, %v7391_v32  ;;  %v2066_v43 = vpack.c.bf16 %v2054_v33, %v2054_v33 }
 0x8eb   :  { %v2067_v6 = vpack.c.bf16 %v7393_v40, %v7393_v40  ;;  %v2068_v49 = vpack.c.bf16 %v7395_v16, %v7395_v16 }
 0x995   :  { %v1840_v52 = vpop.f32.mrf.mxu0  ;;  %v1881_v13 = vpop.f32.mrf.mxu1 }
 0x996   :  { %v1841_v9 = vadd.f32 %v1840_v52, %v7064_v51  ;;  %v1882_v23 = vadd.f32 %v1881_v13, %v7072_v26 }
 0x997   :  { %v1842_v30 = vpop.f32.mrf.mxu0  ;;  %v5653_v35 = vpop.f32.mrf.mxu1 }
 0x998   :  { %v1887_v12 = vadd.f32 %v1841_v9, %v7061_v21  ;;  %v1843_v56 = vadd.f32 %v1842_v30, %v7067_v29 }
 0x999   :  { %v1844_v11 = vpop.f32.mrf.mxu0  ;;  %v1884_v59 = vpop.f32.mrf.mxu1 }
 0x99a   :  { %v4987_v38 = vmul.f32 -1.442695, %v1887_v12  ;;  %v1896_v10 = vadd.f32 %v1894_v46, %v1843_v56 }
 0x99b   :  { %v1845_v50 = vpop.f32.mrf.mxu0  ;;  %v5654_v53 = vpop.f32.mrf.mxu1 }
 0x99c   :  { %5828 = vpow2.f32 %v4987_v38  ;;  %v4988_v17 = vmul.f32 -1.442695, %v1896_v10 }
 0x99e   :  { %5830 = vpow2.f32 %v4988_v17 }
 0x9a9   :  { %v5829_v62 = vpop.eup %5828 }
 0x9aa   :  { %v1891_v61 = vadd.f32 1.0, %v5829_v62 }
 0x9ab   :  { %v5831_v51 = vpop.eup %5830 }
 0x9ac   :  { %5832 = vrcp.f32 %v1891_v61  ;;  %v1900_v19 = vadd.f32 1.0, %v5831_v51 }
 0x9ae   :  { %5834 = vrcp.f32 %v1900_v19 }
 0x9b9   :  { %v5833_v7 = vpop.eup %5832 }
 0x9ba   :  { %v1903_v2 = vmul.f32 %v5833_v7, %v1882_v23 }
 0x9bb   :  { %v5835_v3 = vpop.eup %5834 }
 0x9bc   :  { %v1906_v29 = vadd.f32 %v1904_v34, %v1903_v2  ;;  %v1908_v41 = vsub.f32 1.0, %v5835_v3  ;;  %v1910_v42 = vmul.f32 %v5835_v3, %v7330_v39 }
 0x9be   :  { %5836 = vtanh.f32 %v1906_v29 }
 0x9cb   :  { %v5837_v4 = vpop.eup %5836 }
 0x9cc   :  { %v1909_v47 = vmul.f32 %v5837_v4, %v1908_v41 }
 0x9ce   :  { %v7412_v1 = vadd.f32 %v1910_v42, %v1909_v47 }
 0x9cf   :  { %6578 = dma.done.wait [#allocation5], 36864 }
 0x9d0   :  { %6579 = vsyncadd [#allocation5], 4294930432  ;;  %v2406_v26 = vunpack.c.l.b16 %v2058_v60  ;;  %v2412_v45 = vunpack.c.l.b16 %v2064_v20  ;;  %v2408_v21 = vunpack.c.l.b16 %v2060_v8  ;;  %v2414_v18 = vunpack.c.l.b16 %v2066_v43  ;;  %v5862_v37 = vld [vmem:[#allocation2 + $0x154] ss:$24 sps:$4 sm:$0xff]   ;;  %v5864_v60 = vld [vmem:[#allocation2 + $0x150] ss:$24 sps:$4 sm:$0xff]  }
 0x9d1   :  { %3876 = vmatprep.subr.bf16.mxu0 %v5862_v37  ;;  %v5865_v20 = vld [vmem:[#allocation2 + $0x454] ss:$24 sps:$4 sm:$0xff]   ;;  %v5867_v13 = vld [vmem:[#allocation2 + $0x450] ss:$24 sps:$4 sm:$0xff]   ;;  %v5868_v55 = vld [vmem:[#allocation2 + $0x124] ss:$24 sps:$4 sm:$0xff]   ;;  %v2407_v36 = vunpack.c.l.b16 %v2059_v44 }
 0x9d2   :  { %v2419_v14 = vsel %vm591_vm3, %v2412_v45, %v2406_v26  ;;  %v2421_v39 = vsel %vm591_vm3, %v2414_v18, %v2408_v21  ;;  %3877 = vmatpush1.bf16.msra.mxu0 %v5864_v60  ;;  %v5870_v8 = vld [vmem:[#allocation2 + $0x120] ss:$24 sps:$4 sm:$0xff]   ;;  %3917 = vmatprep.subr.bf16.mxu1 %v5865_v20  ;;  %v5871_v43 = vld [vmem:[#allocation2 + $0x424] ss:$24 sps:$4 sm:$0xff]   ;;  %v5874_v30 = vld [vmem:[#allocation2 + $0xf4] ss:$24 sps:$4 sm:$0xff]  }
 0x9d3   :  { %v7421_v33 = vpack.c.b16 %v2419_v14, %v2419_v14  ;;  %v7424_v52 = vpack.c.b16 %v2421_v39, %v2421_v39  ;;  %3918 = vmatpush1.bf16.msra.mxu1 %v5867_v13  ;;  %3878 = vmatprep.subr.bf16.mxu0 %v5868_v55  ;;  %v5873_v9 = vld [vmem:[#allocation2 + $0x420] ss:$24 sps:$4 sm:$0xff]   ;;  %v5876_v35 = vld [vmem:[#allocation2 + $0xf0] ss:$24 sps:$4 sm:$0xff]   ;;  %v5877_v12 = vld [vmem:[#allocation2 + $0x3f4] ss:$24 sps:$4 sm:$0xff]  }
 0x9d4   :  { %3919 = vmatprep.subr.bf16.mxu1 %v5871_v43  ;;  %v5880_v11 = vld [vmem:[#allocation2 + $0xc4] ss:$24 sps:$4 sm:$0xff]   ;;  %v5879_v59 = vld [vmem:[#allocation2 + $0x3f0] ss:$24 sps:$4 sm:$0xff]   ;;  %v5882_v56 = vld [vmem:[#allocation2 + $0xc0] ss:$24 sps:$4 sm:$0xff]  }
 0x9d5   :  { %3908 = vmatprep.mubr.bf16.mxu0 %v7421_v33  ;;  %3949 = vmatprep.mubr.bf16.mxu1 %v7424_v52  ;;  %v5883_v38 = vld [vmem:[#allocation2 + $0x3c4] ss:$24 sps:$4 sm:$0xff]   ;;  %v5886_v50 = vld [vmem:[#allocation2 + $0x94] ss:$24 sps:$4 sm:$0xff]   ;;  %v5885_v53 = vld [vmem:[#allocation2 + $0x3c0] ss:$24 sps:$4 sm:$0xff]  }
 0x9d6   :  { %3879 = vmatpush1.bf16.msra.mxu0 %v5870_v8  ;;  %v5889_v46 = vld [vmem:[#allocation2 + $0x394] ss:$24 sps:$4 sm:$0xff]   ;;  %v5888_v10 = vld [vmem:[#allocation2 + $0x90] ss:$24 sps:$4 sm:$0xff]   ;;  %v5892_v17 = vld [vmem:[#allocation2 + $0x64] ss:$24 sps:$4 sm:$0xff]  }
 0x9d7   :  { %3880 = vmatprep.subr.bf16.mxu0 %v5874_v30  ;;  %3920 = vmatpush1.bf16.msra.mxu1 %v5873_v9  ;;  %v5891_v62 = vld [vmem:[#allocation2 + $0x390] ss:$24 sps:$4 sm:$0xff]   ;;  %v5895_v61 = vld [vmem:[#allocation2 + $0x364] ss:$24 sps:$4 sm:$0xff]   ;;  %v5894_v51 = vld [vmem:[#allocation2 + $0x60] ss:$24 sps:$4 sm:$0xff]  }
 0x9d8   :  { %3921 = vmatprep.subr.bf16.mxu1 %v5877_v12  ;;  %v5898_v19 = vld [vmem:[#allocation2 + $0x34] ss:$24 sps:$4 sm:$0xff]   ;;  %v5897_v23 = vld [vmem:[#allocation2 + $0x360] ss:$24 sps:$4 sm:$0xff]   ;;  %v5900_v2 = vld [vmem:[#allocation2 + $0x30] ss:$24 sps:$4 sm:$0xff]  }
 0x9d9   :  { %v5901_v7 = vld [vmem:[#allocation2 + $0x334] ss:$24 sps:$4 sm:$0xff]   ;;  %v5904_v34 = vld [vmem:[#allocation2 + $0x4] ss:$24 sps:$4 sm:$0xff]   ;;  %v5903_v29 = vld [vmem:[#allocation2 + $0x330] ss:$24 sps:$4 sm:$0xff]  }
 0x9da   :  { %3881 = vmatpush1.bf16.msra.mxu0 %v5876_v35  ;;  %v5907_v3 = vld [vmem:[#allocation2 + $0x304] ss:$24 sps:$4 sm:$0xff]   ;;  %v5906_v41 = vld [vmem:[#allocation2] ss:$24 sps:$4 sm:$0xff]   ;;  %v5910_v4 = vld [vmem:[#allocation2 + $0x2d4] ss:$24 sps:$4 sm:$0xff]  }
 0x9db   :  { %3882 = vmatprep.subr.bf16.mxu0 %v5880_v11  ;;  %3922 = vmatpush1.bf16.msra.mxu1 %v5879_v59  ;;  %v5909_v47 = vld [vmem:[#allocation2 + $0x300] ss:$24 sps:$4 sm:$0xff]   ;;  %v5913_v42 = vld [vmem:[#allocation2 + $0x5d4] ss:$24 sps:$4 sm:$0xff]   ;;  %v5912_v26 = vld [vmem:[#allocation2 + $0x2d0] ss:$24 sps:$4 sm:$0xff]  }
 0x9dc   :  { %3923 = vmatprep.subr.bf16.mxu1 %v5883_v38  ;;  %v5916_v45 = vld [vmem:[#allocation2 + $0x2a4] ss:$24 sps:$4 sm:$0xff]   ;;  %v5915_v21 = vld [vmem:[#allocation2 + $0x5d0] ss:$24 sps:$4 sm:$0xff]   ;;  %v5918_v14 = vld [vmem:[#allocation2 + $0x2a0] ss:$24 sps:$4 sm:$0xff]  }
 0x9dd   :  { %v5919_v18 = vld [vmem:[#allocation2 + $0x5a4] ss:$24 sps:$4 sm:$0xff]   ;;  %v5922_v39 = vld [vmem:[#allocation2 + $0x274] ss:$24 sps:$4 sm:$0xff]   ;;  %v5921_v37 = vld [vmem:[#allocation2 + $0x5a0] ss:$24 sps:$4 sm:$0xff]  }
 0x9de   :  { %3883 = vmatpush1.bf16.msra.mxu0 %v5882_v56  ;;  %v5925_v60 = vld [vmem:[#allocation2 + $0x574] ss:$24 sps:$4 sm:$0xff]   ;;  %v5924_v20 = vld [vmem:[#allocation2 + $0x270] ss:$24 sps:$4 sm:$0xff]   ;;  %v5928_v13 = vld [vmem:[#allocation2 + $0x244] ss:$24 sps:$4 sm:$0xff]  }
 0x9df   :  { %3884 = vmatprep.subr.bf16.mxu0 %v5886_v50  ;;  %3924 = vmatpush1.bf16.msra.mxu1 %v5885_v53  ;;  %v5927_v55 = vld [vmem:[#allocation2 + $0x570] ss:$24 sps:$4 sm:$0xff]   ;;  %v5931_v8 = vld [vmem:[#allocation2 + $0x544] ss:$24 sps:$4 sm:$0xff]   ;;  %v5930_v43 = vld [vmem:[#allocation2 + $0x240] ss:$24 sps:$4 sm:$0xff]  }
 0x9e0   :  { %3925 = vmatprep.subr.bf16.mxu1 %v5889_v46  ;;  %v5934_v9 = vld [vmem:[#allocation2 + $0x214] ss:$24 sps:$4 sm:$0xff]   ;;  %v5933_v30 = vld [vmem:[#allocation2 + $0x540] ss:$24 sps:$4 sm:$0xff]   ;;  %v5936_v12 = vld [vmem:[#allocation2 + $0x210] ss:$24 sps:$4 sm:$0xff]  }
 0x9e1   :  { %v5937_v35 = vld [vmem:[#allocation2 + $0x514] ss:$24 sps:$4 sm:$0xff]   ;;  %v5940_v11 = vld [vmem:[#allocation2 + $0x1e4] ss:$24 sps:$4 sm:$0xff]   ;;  %v5939_v59 = vld [vmem:[#allocation2 + $0x510] ss:$24 sps:$4 sm:$0xff]  }
 0x9e2   :  { %3885 = vmatpush1.bf16.msra.mxu0 %v5888_v10  ;;  %v5943_v38 = vld [vmem:[#allocation2 + $0x4e4] ss:$24 sps:$4 sm:$0xff]   ;;  %v5942_v56 = vld [vmem:[#allocation2 + $0x1e0] ss:$24 sps:$4 sm:$0xff]   ;;  %v5946_v50 = vld [vmem:[#allocation2 + $0x1b4] ss:$24 sps:$4 sm:$0xff]  }
 0x9e3   :  { %3886 = vmatprep.subr.bf16.mxu0 %v5892_v17  ;;  %3926 = vmatpush1.bf16.msra.mxu1 %v5891_v62  ;;  %v5945_v53 = vld [vmem:[#allocation2 + $0x4e0] ss:$24 sps:$4 sm:$0xff]   ;;  %v5949_v46 = vld [vmem:[#allocation2 + $0x4b4] ss:$24 sps:$4 sm:$0xff]   ;;  %v5948_v10 = vld [vmem:[#allocation2 + $0x1b0] ss:$24 sps:$4 sm:$0xff]   ;;  %v2405_v17 = vunpack.c.l.b16 %v2057_v22  ;;  %v2411_v62 = vunpack.c.l.b16 %v2063_v0  ;;  %v2413_v22 = vunpack.c.l.b16 %v2065_v28 }
 0x9e4   :  { %3927 = vmatprep.subr.bf16.mxu1 %v5895_v61  ;;  %v5952_v61 = vld [vmem:[#allocation2 + $0x184] ss:$24 sps:$4 sm:$0xff]   ;;  %v5954_v0 = vld [vmem:[#allocation2 + $0x180] ss:$24 sps:$4 sm:$0xff]   ;;  %v5958_v32 = vld [vmem:[#allocation2 + $0x750] ss:$24 sps:$4 sm:$0xff]  }
 0x9e5   :  { %v5955_v31 = vld [vmem:[#allocation2 + $0x484] ss:$24 sps:$4 sm:$0xff]   ;;  %v2418_v58 = vsel %vm591_vm3, %v2411_v62, %v2405_v17  ;;  %v6009_v62 = vld [vmem:[#allocation2 + $0x2d8] ss:$24 sps:$4 sm:$0xff]  }
 0x9e6   :  { %3887 = vmatpush1.bf16.msra.mxu0 %v5894_v51  ;;  %v2410_v51 = vunpack.c.l.b16 %v2062_v5  ;;  %v5960_v5 = vld [vmem:[#allocation2 + $0x754] ss:$24 sps:$4 sm:$0xff]   ;;  %v7449_v57 = vpack.c.b16 %v2418_v58, %v2418_v58  ;;  %v6014_v17 = vld [vmem:[#allocation2 + $0x8a4] ss:$24 sps:$4 sm:$0xff]   ;;  %v6054_v40 = vld [vmem:[#allocation2 + $0x458] ss:$24 sps:$4 sm:$0xff]  }
 0x9e7   :  { %3888 = vmatprep.subr.bf16.mxu0 %v5898_v19  ;;  %3928 = vmatpush1.bf16.msra.mxu1 %v5897_v23  ;;  %v2416_v19 = vunpack.c.l.b16 %v2068_v49  ;;  %v5951_v23 = vld [vmem:[#allocation2 + $0x4b0] ss:$24 sps:$4 sm:$0xff]   ;;  %v5957_v49 = vld [vmem:[#allocation2 + $0x480] ss:$24 sps:$4 sm:$0xff]   ;;  %v5963_v44 = vld [vmem:[#allocation2 + $0x15c] ss:$24 sps:$4 sm:$0xff]  }
 0x9e8   :  { %3929 = vmatprep.subr.bf16.mxu1 %v5901_v7  ;;  %v2420_v7 = vsel %vm591_vm3, %v2413_v22, %v2407_v36  ;;  %v6023_v36 = vld [vmem:[#allocation2 + $0x27c] ss:$24 sps:$4 sm:$0xff]   ;;  %v6018_v22 = vld [vmem:[#allocation2 + $0x870] ss:$24 sps:$4 sm:$0xff]   ;;  %v6029_v58 = vld [vmem:[#allocation2 + $0x24c] ss:$24 sps:$4 sm:$0xff]  }
 0x9e9   :  { %v2423_v16 = vsel %vm591_vm3, %v2416_v19, %v2410_v51  ;;  %v6012_v51 = vld [vmem:[#allocation2 + $0x8a0] ss:$24 sps:$4 sm:$0xff]   ;;  %v6020_v19 = vld [vmem:[#allocation2 + $0x874] ss:$24 sps:$4 sm:$0xff]  }
 0x9ea   :  { %3889 = vmatpush1.bf16.msra.mxu0 %v5900_v2  ;;  %v7451_v28 = vpack.c.b16 %v2423_v16, %v2423_v16  ;;  %v7453_v2 = vpack.c.b16 %v2420_v7, %v2420_v7  ;;  %v6032_v16 = vld [vmem:[#allocation2 + $0x814] ss:$24 sps:$4 sm:$0xff]  }
 0x9eb   :  { %3890 = vmatprep.subr.bf16.mxu0 %v5904_v34  ;;  %3930 = vmatpush1.bf16.msra.mxu1 %v5903_v29  ;;  %v5966_v34 = vld [vmem:[#allocation2 + $0x724] ss:$24 sps:$4 sm:$0xff]   ;;  %v5961_v29 = vld [vmem:[#allocation2 + $0x158] ss:$24 sps:$4 sm:$0xff]  }
 0x9ec   :  { %3931 = vmatprep.subr.bf16.mxu1 %v5907_v3  ;;  %v5969_v3 = vld [vmem:[#allocation2 + $0x12c] ss:$24 sps:$4 sm:$0xff]   ;;  %v6035_v7 = vld [vmem:[#allocation2 + $0x21c] ss:$24 sps:$4 sm:$0xff]  }
 0x9ee   :  { %3891 = vmatpush1.bf16.msra.mxu0 %v5906_v41  ;;  %v5964_v41 = vld [vmem:[#allocation2 + $0x720] ss:$24 sps:$4 sm:$0xff]  }
 0x9ef   :  { %3892 = vmatprep.subr.bf16.mxu0 %v5910_v4  ;;  %3932 = vmatpush1.bf16.msra.mxu1 %v5909_v47  ;;  %v5972_v4 = vld [vmem:[#allocation2 + $0x6f4] ss:$24 sps:$4 sm:$0xff]   ;;  %v5967_v47 = vld [vmem:[#allocation2 + $0x128] ss:$24 sps:$4 sm:$0xff]  }
 0x9f0   :  { %3933 = vmatprep.subr.bf16.mxu1 %v5913_v42  ;;  %v5975_v42 = vld [vmem:[#allocation2 + $0xfc] ss:$24 sps:$4 sm:$0xff]  }
 0x9f2   :  { %3893 = vmatpush2.bf16.msra.mxu0 %v5912_v26  ;;  %v5970_v26 = vld [vmem:[#allocation2 + $0x6f0] ss:$24 sps:$4 sm:$0xff]  }
 0x9f3   :  { %3894 = vmatprep.subr.bf16.mxu0 %v5916_v45  ;;  %3934 = vmatpush2.bf16.msra.mxu1 %v5915_v21  ;;  %v5978_v45 = vld [vmem:[#allocation2 + $0x6c4] ss:$24 sps:$4 sm:$0xff]   ;;  %v5973_v21 = vld [vmem:[#allocation2 + $0xf8] ss:$24 sps:$4 sm:$0xff]  }
 0x9f4   :  { %3935 = vmatprep.subr.bf16.mxu1 %v5919_v18  ;;  %v5981_v18 = vld [vmem:[#allocation2 + $0xcc] ss:$24 sps:$4 sm:$0xff]  }
 0x9f6   :  { %3895 = vmatpush2.bf16.msra.mxu0 %v5918_v14  ;;  %v5976_v14 = vld [vmem:[#allocation2 + $0x6c0] ss:$24 sps:$4 sm:$0xff]  }
 0x9f7   :  { %3896 = vmatprep.subr.bf16.mxu0 %v5922_v39  ;;  %3936 = vmatpush2.bf16.msra.mxu1 %v5921_v37  ;;  %v5984_v39 = vld [vmem:[#allocation2 + $0x694] ss:$24 sps:$4 sm:$0xff]   ;;  %v5979_v37 = vld [vmem:[#allocation2 + $0xc8] ss:$24 sps:$4 sm:$0xff]  }
 0x9f8   :  { %3937 = vmatprep.subr.bf16.mxu1 %v5925_v60  ;;  %v5987_v60 = vld [vmem:[#allocation2 + $0x9c] ss:$24 sps:$4 sm:$0xff]  }
 0x9fa   :  { %3897 = vmatpush2.bf16.msra.mxu0 %v5924_v20  ;;  %v5982_v20 = vld [vmem:[#allocation2 + $0x690] ss:$24 sps:$4 sm:$0xff]  }
 0x9fb   :  { %3898 = vmatprep.subr.bf16.mxu0 %v5928_v13  ;;  %3938 = vmatpush2.bf16.msra.mxu1 %v5927_v55  ;;  %v5990_v13 = vld [vmem:[#allocation2 + $0x664] ss:$24 sps:$4 sm:$0xff]   ;;  %v5985_v55 = vld [vmem:[#allocation2 + $0x98] ss:$24 sps:$4 sm:$0xff]  }
 0x9fc   :  { %3939 = vmatprep.subr.bf16.mxu1 %v5931_v8  ;;  %v5993_v8 = vld [vmem:[#allocation2 + $0x6c] ss:$24 sps:$4 sm:$0xff]  }
 0x9fe   :  { %3899 = vmatpush2.bf16.msra.mxu0 %v5930_v43  ;;  %v5988_v43 = vld [vmem:[#allocation2 + $0x660] ss:$24 sps:$4 sm:$0xff]  }
 0x9ff   :  { %3900 = vmatprep.subr.bf16.mxu0 %v5934_v9  ;;  %3940 = vmatpush2.bf16.msra.mxu1 %v5933_v30  ;;  %v5996_v9 = vld [vmem:[#allocation2 + $0x634] ss:$24 sps:$4 sm:$0xff]   ;;  %v5991_v30 = vld [vmem:[#allocation2 + $0x68] ss:$24 sps:$4 sm:$0xff]  }
 0xa00   :  { %3941 = vmatprep.subr.bf16.mxu1 %v5937_v35  ;;  %v5999_v35 = vld [vmem:[#allocation2 + $0x3c] ss:$24 sps:$4 sm:$0xff]  }
 0xa02   :  { %3901 = vmatpush2.bf16.msra.mxu0 %v5936_v12  ;;  %v5994_v12 = vld [vmem:[#allocation2 + $0x630] ss:$24 sps:$4 sm:$0xff]  }
 0xa03   :  { %3902 = vmatprep.subr.bf16.mxu0 %v5940_v11  ;;  %3942 = vmatpush2.bf16.msra.mxu1 %v5939_v59  ;;  %v6002_v11 = vld [vmem:[#allocation2 + $0x604] ss:$24 sps:$4 sm:$0xff]   ;;  %v5997_v59 = vld [vmem:[#allocation2 + $0x38] ss:$24 sps:$4 sm:$0xff]  }
 0xa04   :  { %3943 = vmatprep.subr.bf16.mxu1 %v5943_v38  ;;  %v6005_v38 = vld [vmem:[#allocation2 + $0xc] ss:$24 sps:$4 sm:$0xff]  }
 0xa06   :  { %3903 = vmatpush2.bf16.msra.mxu0 %v5942_v56  ;;  %v6000_v56 = vld [vmem:[#allocation2 + $0x600] ss:$24 sps:$4 sm:$0xff]  }
 0xa07   :  { %3904 = vmatprep.subr.bf16.mxu0 %v5946_v50  ;;  %3944 = vmatpush2.bf16.msra.mxu1 %v5945_v53  ;;  %v6008_v50 = vld [vmem:[#allocation2 + $0x8d4] ss:$24 sps:$4 sm:$0xff]   ;;  %v6003_v53 = vld [vmem:[#allocation2 + $0x8] ss:$24 sps:$4 sm:$0xff]  }
 0xa08   :  { %3945 = vmatprep.subr.bf16.mxu1 %v5949_v46  ;;  %v6011_v46 = vld [vmem:[#allocation2 + $0x2dc] ss:$24 sps:$4 sm:$0xff]  }
 0xa0a   :  { %3905 = vmatpush2.bf16.msra.mxu0 %v5948_v10  ;;  %v6006_v10 = vld [vmem:[#allocation2 + $0x8d0] ss:$24 sps:$4 sm:$0xff]  }
 0xa0b   :  { %3906 = vmatprep.subr.bf16.mxu0 %v5952_v61  ;;  %3946 = vmatpush2.bf16.msra.mxu1 %v5951_v23  ;;  %v6017_v61 = vld [vmem:[#allocation2 + $0x2ac] ss:$24 sps:$4 sm:$0xff]   ;;  %v6015_v23 = vld [vmem:[#allocation2 + $0x2a8] ss:$24 sps:$4 sm:$0xff]  }
 0xa0c   :  { %3947 = vmatprep.subr.bf16.mxu1 %v5955_v31  ;;  %v6026_v31 = vld [vmem:[#allocation2 + $0x844] ss:$24 sps:$4 sm:$0xff]  }
 0xa0e   :  { %3907 = vmatpush2.bf16.msra.mxu0 %v5954_v0  ;;  %v6021_v0 = vld [vmem:[#allocation2 + $0x278] ss:$24 sps:$4 sm:$0xff]  }
 0xa0f   :  { %3958 = vmatprep.subr.bf16.mxu0 %v5960_v5  ;;  %3948 = vmatpush2.bf16.msra.mxu1 %v5957_v49  ;;  %v6024_v5 = vld [vmem:[#allocation2 + $0x840] ss:$24 sps:$4 sm:$0xff]  }
 0xa10   :  { %3999 = vmatprep.subr.bf16.mxu1 %v5963_v44  ;;  %v6027_v49 = vld [vmem:[#allocation2 + $0x248] ss:$24 sps:$4 sm:$0xff]  }
 0xa11   :  { %3909 = vmatmul.mubr.bf16.vlgmr.msra.gmra.mxu0 %v7449_v57  ;;  %v6030_v44 = vld [vmem:[#allocation2 + $0x810] ss:$24 sps:$4 sm:$0xff]  }
 0xa12   :  { %3959 = vmatpush1.bf16.msra.mxu0 %v5958_v32  ;;  %3990 = vmatprep.mubr.bf16.mxu0 %v7451_v28  ;;  %v6038_v32 = vld [vmem:[#allocation2 + $0x7e4] ss:$24 sps:$4 sm:$0xff]  }
 0xa13   :  { %3950 = vmatmul.mubr.bf16.vlgmr.msra.gmra.mxu1 %v7453_v2  ;;  %3960 = vmatprep.subr.bf16.mxu0 %v5966_v34  ;;  %v6033_v34 = vld [vmem:[#allocation2 + $0x218] ss:$24 sps:$4 sm:$0xff]  }
 0xa14   :  { %4000 = vmatpush1.bf16.msra.mxu1 %v5961_v29  ;;  %4031 = vmatprep.mubr.bf16.mxu1 %v7421_v33  ;;  %v6041_v29 = vld [vmem:[#allocation2 + $0x1ec] ss:$24 sps:$4 sm:$0xff]  }
 0xa15   :  { %4001 = vmatprep.subr.bf16.mxu1 %v5969_v3  ;;  %v6036_v3 = vld [vmem:[#allocation2 + $0x7e0] ss:$24 sps:$4 sm:$0xff]  }
 0xa16   :  { %3961 = vmatpush1.bf16.msra.mxu0 %v5964_v41  ;;  %v6044_v41 = vld [vmem:[#allocation2 + $0x7b4] ss:$24 sps:$4 sm:$0xff]  }
 0xa17   :  { %3962 = vmatprep.subr.bf16.mxu0 %v5972_v4  ;;  %v6039_v4 = vld [vmem:[#allocation2 + $0x1e8] ss:$24 sps:$4 sm:$0xff]  }
 0xa18   :  { %4002 = vmatpush1.bf16.msra.mxu1 %v5967_v47  ;;  %v6047_v47 = vld [vmem:[#allocation2 + $0x1bc] ss:$24 sps:$4 sm:$0xff]  }
 0xa19   :  { %4003 = vmatprep.subr.bf16.mxu1 %v5975_v42  ;;  %v6042_v42 = vld [vmem:[#allocation2 + $0x7b0] ss:$24 sps:$4 sm:$0xff]  }
 0xa1a   :  { %3963 = vmatpush1.bf16.msra.mxu0 %v5970_v26  ;;  %v2409_v26 = vunpack.c.l.b16 %v2061_v54  ;;  %v6059_v54 = vld [vmem:[#allocation2 + $0x75c] ss:$24 sps:$4 sm:$0xff]  }
 0xa1b   :  { %3964 = vmatprep.subr.bf16.mxu0 %v5978_v45  ;;  %v2415_v45 = vunpack.c.l.b16 %v2067_v6  ;;  %v6062_v6 = vld [vmem:[#allocation2 + $0x42c] ss:$24 sps:$4 sm:$0xff]  }
 0xa1c   :  { %4004 = vmatpush1.bf16.msra.mxu1 %v5973_v21  ;;  %v6050_v21 = vld [vmem:[#allocation2 + $0x784] ss:$24 sps:$4 sm:$0xff]  }
 0xa1d   :  { %4005 = vmatprep.subr.bf16.mxu1 %v5981_v18  ;;  %v6045_v18 = vld [vmem:[#allocation2 + $0x1b8] ss:$24 sps:$4 sm:$0xff]  }
 0xa1e   :  { %3965 = vmatpush1.bf16.msra.mxu0 %v5976_v14  ;;  %v6053_v14 = vld [vmem:[#allocation2 + $0x18c] ss:$24 sps:$4 sm:$0xff]  }
 0xa1f   :  { %3966 = vmatprep.subr.bf16.mxu0 %v5984_v39  ;;  %v6048_v39 = vld [vmem:[#allocation2 + $0x780] ss:$24 sps:$4 sm:$0xff]  }
 0xa20   :  { %4006 = vmatpush1.bf16.msra.mxu1 %v5979_v37  ;;  %v2422_v37 = vsel %vm591_vm3, %v2415_v45, %v2409_v26  ;;  %v6117_v26 = vld [vmem:[#allocation2 + $0x878] ss:$24 sps:$4 sm:$0xff]   ;;  %v6125_v45 = vld [vmem:[#allocation2 + $0x84c] ss:$24 sps:$4 sm:$0xff]  }
 0xa21   :  { %4007 = vmatprep.subr.bf16.mxu1 %v5987_v60  ;;  %v6056_v60 = vld [vmem:[#allocation2 + $0x45c] ss:$24 sps:$4 sm:$0xff]   ;;  %v7466_v27 = vpack.c.b16 %v2422_v37, %v2422_v37  ;;  %v6126_v37 = vld [vmem:[#allocation2 + $0x518] ss:$24 sps:$4 sm:$0xff]  }
 0xa22   :  { %3967 = vmatpush1.bf16.msra.mxu0 %v5982_v20  ;;  %v6051_v20 = vld [vmem:[#allocation2 + $0x188] ss:$24 sps:$4 sm:$0xff]  }
 0xa23   :  { %3968 = vmatprep.subr.bf16.mxu0 %v5990_v13  ;;  %v6057_v13 = vld [vmem:[#allocation2 + $0x758] ss:$24 sps:$4 sm:$0xff]  }
 0xa24   :  { %4008 = vmatpush1.bf16.msra.mxu1 %v5985_v55  ;;  %v6065_v55 = vld [vmem:[#allocation2 + $0x72c] ss:$24 sps:$4 sm:$0xff]  }
 0xa25   :  { %4009 = vmatprep.subr.bf16.mxu1 %v5993_v8  ;;  %v6060_v8 = vld [vmem:[#allocation2 + $0x428] ss:$24 sps:$4 sm:$0xff]  }
 0xa26   :  { %3969 = vmatpush1.bf16.msra.mxu0 %v5988_v43  ;;  %v6068_v43 = vld [vmem:[#allocation2 + $0x3fc] ss:$24 sps:$4 sm:$0xff]  }
 0xa27   :  { %3970 = vmatprep.subr.bf16.mxu0 %v5996_v9  ;;  %v6063_v9 = vld [vmem:[#allocation2 + $0x728] ss:$24 sps:$4 sm:$0xff]  }
 0xa28   :  { %4010 = vmatpush1.bf16.msra.mxu1 %v5991_v30  ;;  %v6071_v30 = vld [vmem:[#allocation2 + $0x6fc] ss:$24 sps:$4 sm:$0xff]  }
 0xa29   :  { %4011 = vmatprep.subr.bf16.mxu1 %v5999_v35  ;;  %v6066_v35 = vld [vmem:[#allocation2 + $0x3f8] ss:$24 sps:$4 sm:$0xff]  }
 0xa2a   :  { %3971 = vmatpush1.bf16.msra.mxu0 %v5994_v12  ;;  %v6074_v12 = vld [vmem:[#allocation2 + $0x3cc] ss:$24 sps:$4 sm:$0xff]  }
 0xa2b   :  { %3972 = vmatprep.subr.bf16.mxu0 %v6002_v11  ;;  %v6069_v11 = vld [vmem:[#allocation2 + $0x6f8] ss:$24 sps:$4 sm:$0xff]  }
 0xa2c   :  { %4012 = vmatpush1.bf16.msra.mxu1 %v5997_v59  ;;  %v6077_v59 = vld [vmem:[#allocation2 + $0x6cc] ss:$24 sps:$4 sm:$0xff]  }
 0xa2d   :  { %4013 = vmatprep.subr.bf16.mxu1 %v6005_v38  ;;  %v6072_v38 = vld [vmem:[#allocation2 + $0x3c8] ss:$24 sps:$4 sm:$0xff]  }
 0xa2e   :  { %3973 = vmatpush1.bf16.msra.mxu0 %v6000_v56  ;;  %v6080_v56 = vld [vmem:[#allocation2 + $0x39c] ss:$24 sps:$4 sm:$0xff]  }
 0xa2f   :  { %3974 = vmatprep.subr.bf16.mxu0 %v6008_v50  ;;  %v6075_v50 = vld [vmem:[#allocation2 + $0x6c8] ss:$24 sps:$4 sm:$0xff]  }
 0xa30   :  { %4014 = vmatpush1.bf16.msra.mxu1 %v6003_v53  ;;  %v6083_v53 = vld [vmem:[#allocation2 + $0x69c] ss:$24 sps:$4 sm:$0xff]  }
 0xa31   :  { %4015 = vmatprep.subr.bf16.mxu1 %v6011_v46  ;;  %v6078_v46 = vld [vmem:[#allocation2 + $0x398] ss:$24 sps:$4 sm:$0xff]  }
 0xa32   :  { %3975 = vmatpush2.bf16.msra.mxu0 %v6006_v10  ;;  %v6086_v10 = vld [vmem:[#allocation2 + $0x36c] ss:$24 sps:$4 sm:$0xff]  }
 0xa33   :  { %3976 = vmatprep.subr.bf16.mxu0 %v6014_v17  ;;  %v6081_v17 = vld [vmem:[#allocation2 + $0x698] ss:$24 sps:$4 sm:$0xff]  }
 0xa34   :  { %4016 = vmatpush2.bf16.msra.mxu1 %v6009_v62  ;;  %v6089_v62 = vld [vmem:[#allocation2 + $0x66c] ss:$24 sps:$4 sm:$0xff]  }
 0xa35   :  { %4017 = vmatprep.subr.bf16.mxu1 %v6017_v61  ;;  %v6084_v61 = vld [vmem:[#allocation2 + $0x368] ss:$24 sps:$4 sm:$0xff]  }
 0xa36   :  { %3977 = vmatpush2.bf16.msra.mxu0 %v6012_v51  ;;  %v6092_v51 = vld [vmem:[#allocation2 + $0x33c] ss:$24 sps:$4 sm:$0xff]  }
 0xa37   :  { %3978 = vmatprep.subr.bf16.mxu0 %v6020_v19  ;;  %v6087_v19 = vld [vmem:[#allocation2 + $0x668] ss:$24 sps:$4 sm:$0xff]  }
 0xa38   :  { %4018 = vmatpush2.bf16.msra.mxu1 %v6015_v23  ;;  %v6095_v23 = vld [vmem:[#allocation2 + $0x63c] ss:$24 sps:$4 sm:$0xff]  }
 0xa39   :  { %4019 = vmatprep.subr.bf16.mxu1 %v6023_v36  ;;  %v6090_v36 = vld [vmem:[#allocation2 + $0x338] ss:$24 sps:$4 sm:$0xff]  }
 0xa3a   :  { %3979 = vmatpush2.bf16.msra.mxu0 %v6018_v22  ;;  %v6098_v22 = vld [vmem:[#allocation2 + $0x30c] ss:$24 sps:$4 sm:$0xff]  }
 0xa3b   :  { %3980 = vmatprep.subr.bf16.mxu0 %v6026_v31  ;;  %v6093_v31 = vld [vmem:[#allocation2 + $0x638] ss:$24 sps:$4 sm:$0xff]  }
 0xa3c   :  { %4020 = vmatpush2.bf16.msra.mxu1 %v6021_v0  ;;  %v6101_v0 = vld [vmem:[#allocation2 + $0x60c] ss:$24 sps:$4 sm:$0xff]  }
 0xa3d   :  { %4021 = vmatprep.subr.bf16.mxu1 %v6029_v58  ;;  %v6096_v58 = vld [vmem:[#allocation2 + $0x308] ss:$24 sps:$4 sm:$0xff]  }
 0xa3e   :  { %3981 = vmatpush2.bf16.msra.mxu0 %v6024_v5  ;;  %v6104_v5 = vld [vmem:[#allocation2 + $0x5dc] ss:$24 sps:$4 sm:$0xff]  }
 0xa3f   :  { %3982 = vmatprep.subr.bf16.mxu0 %v6032_v16  ;;  %v6099_v16 = vld [vmem:[#allocation2 + $0x608] ss:$24 sps:$4 sm:$0xff]  }
 0xa40   :  { %4022 = vmatpush2.bf16.msra.mxu1 %v6027_v49  ;;  %v6107_v49 = vld [vmem:[#allocation2 + $0x8dc] ss:$24 sps:$4 sm:$0xff]  }
 0xa41   :  { %4023 = vmatprep.subr.bf16.mxu1 %v6035_v7  ;;  %v6102_v7 = vld [vmem:[#allocation2 + $0x5d8] ss:$24 sps:$4 sm:$0xff]  }
 0xa42   :  { %3983 = vmatpush2.bf16.msra.mxu0 %v6030_v44  ;;  %v6110_v44 = vld [vmem:[#allocation2 + $0x5ac] ss:$24 sps:$4 sm:$0xff]  }
 0xa43   :  { %3984 = vmatprep.subr.bf16.mxu0 %v6038_v32  ;;  %v6105_v32 = vld [vmem:[#allocation2 + $0x8d8] ss:$24 sps:$4 sm:$0xff]  }
 0xa44   :  { %4024 = vmatpush2.bf16.msra.mxu1 %v6033_v34  ;;  %v6113_v34 = vld [vmem:[#allocation2 + $0x8ac] ss:$24 sps:$4 sm:$0xff]  }
 0xa45   :  { %4025 = vmatprep.subr.bf16.mxu1 %v6041_v29  ;;  %v6108_v29 = vld [vmem:[#allocation2 + $0x5a8] ss:$24 sps:$4 sm:$0xff]  }
 0xa46   :  { %3985 = vmatpush2.bf16.msra.mxu0 %v6036_v3  ;;  %v6116_v3 = vld [vmem:[#allocation2 + $0x57c] ss:$24 sps:$4 sm:$0xff]  }
 0xa47   :  { %3986 = vmatprep.subr.bf16.mxu0 %v6044_v41  ;;  %v6111_v41 = vld [vmem:[#allocation2 + $0x8a8] ss:$24 sps:$4 sm:$0xff]  }
 0xa48   :  { %4026 = vmatpush2.bf16.msra.mxu1 %v6039_v4  ;;  %v6119_v4 = vld [vmem:[#allocation2 + $0x87c] ss:$24 sps:$4 sm:$0xff]  }
 0xa49   :  { %4027 = vmatprep.subr.bf16.mxu1 %v6047_v47  ;;  %v6114_v47 = vld [vmem:[#allocation2 + $0x578] ss:$24 sps:$4 sm:$0xff]  }
 0xa4a   :  { %3987 = vmatpush2.bf16.msra.mxu0 %v6042_v42  ;;  %v6122_v42 = vld [vmem:[#allocation2 + $0x54c] ss:$24 sps:$4 sm:$0xff]  }
 0xa4b   :  { %3988 = vmatprep.subr.bf16.mxu0 %v6050_v21  ;;  %v6120_v21 = vld [vmem:[#allocation2 + $0x548] ss:$24 sps:$4 sm:$0xff]  }
 0xa4c   :  { %4028 = vmatpush2.bf16.msra.mxu1 %v6045_v18  ;;  %v6128_v18 = vld [vmem:[#allocation2 + $0x51c] ss:$24 sps:$4 sm:$0xff]  }
 0xa4d   :  { %4029 = vmatprep.subr.bf16.mxu1 %v6053_v14  ;;  %v6123_v14 = vld [vmem:[#allocation2 + $0x848] ss:$24 sps:$4 sm:$0xff]  }
 0xa4e   :  { %3989 = vmatpush2.bf16.msra.mxu0 %v6048_v39  ;;  %v6131_v39 = vld [vmem:[#allocation2 + $0x81c] ss:$24 sps:$4 sm:$0xff]  }
 0xa4f   :  { %4040 = vmatprep.subr.bf16.mxu0 %v6056_v60  ;;  %v6134_v60 = vld [vmem:[#allocation2 + $0x4ec] ss:$24 sps:$4 sm:$0xff]  }
 0xa50   :  { %4030 = vmatpush2.bf16.msra.mxu1 %v6051_v20  ;;  %v6129_v20 = vld [vmem:[#allocation2 + $0x818] ss:$24 sps:$4 sm:$0xff]  }
 0xa51   :  { %3991 = vmatmul.mubr.bf16.vlgmr.msra.gmra.mxu0 %v7466_v27  ;;  %4081 = vmatprep.subr.bf16.mxu1 %v6059_v54  ;;  %v6137_v54 = vld [vmem:[#allocation2 + $0x7ec] ss:$24 sps:$4 sm:$0xff]  }
 0xa52   :  { %4041 = vmatpush1.bf16.msra.mxu0 %v6054_v40  ;;  %4072 = vmatprep.mubr.bf16.mxu0 %v7424_v52  ;;  %v6132_v40 = vld [vmem:[#allocation2 + $0x4e8] ss:$24 sps:$4 sm:$0xff]  }
 0xa53   :  { %4032 = vmatmul.mubr.bf16.vlgmr.msra.gmra.mxu1 %v7449_v57  ;;  %4042 = vmatprep.subr.bf16.mxu0 %v6062_v6  ;;  %v6140_v6 = vld [vmem:[#allocation2 + $0x4bc] ss:$24 sps:$4 sm:$0xff]  }
 0xa54   :  { %4082 = vmatpush1.bf16.msra.mxu1 %v6057_v13  ;;  %4113 = vmatprep.mubr.bf16.mxu1 %v7451_v28  ;;  %v6135_v13 = vld [vmem:[#allocation2 + $0x7e8] ss:$24 sps:$4 sm:$0xff]  }
 0xa55   :  { %4083 = vmatprep.subr.bf16.mxu1 %v6065_v55  ;;  %v6143_v55 = vld [vmem:[#allocation2 + $0x7bc] ss:$24 sps:$4 sm:$0xff]  }
 0xa56   :  { %4043 = vmatpush1.bf16.msra.mxu0 %v6060_v8  ;;  %v6138_v8 = vld [vmem:[#allocation2 + $0x4b8] ss:$24 sps:$4 sm:$0xff]  }
 0xa57   :  { %4044 = vmatprep.subr.bf16.mxu0 %v6068_v43  ;;  %v6146_v43 = vld [vmem:[#allocation2 + $0x48c] ss:$24 sps:$4 sm:$0xff]  }
 0xa58   :  { %4084 = vmatpush1.bf16.msra.mxu1 %v6063_v9  ;;  %v6141_v9 = vld [vmem:[#allocation2 + $0x7b8] ss:$24 sps:$4 sm:$0xff]  }
 0xa59   :  { %4085 = vmatprep.subr.bf16.mxu1 %v6071_v30  ;;  %v6149_v30 = vld [vmem:[#allocation2 + $0x78c] ss:$24 sps:$4 sm:$0xff]  }
 0xa5a   :  { %4045 = vmatpush1.bf16.msra.mxu0 %v6066_v35  ;;  %v6144_v35 = vld [vmem:[#allocation2 + $0x488] ss:$24 sps:$4 sm:$0xff]  }
 0xa5b   :  { %4046 = vmatprep.subr.bf16.mxu0 %v6074_v12  ;;  %v6152_v12 = vld [vmem:[#allocation2 + $0x164] ss:$24 sps:$4 sm:$0xff]  }
 0xa5c   :  { %4086 = vmatpush1.bf16.msra.mxu1 %v6069_v11  ;;  %v6147_v11 = vld [vmem:[#allocation2 + $0x788] ss:$24 sps:$4 sm:$0xff]  }
 0xa5d   :  { %4087 = vmatprep.subr.bf16.mxu1 %v6077_v59  ;;  %v6155_v59 = vld [vmem:[#allocation2 + $0x464] ss:$24 sps:$4 sm:$0xff]  }
 0xa5e   :  { %4047 = vmatpush1.bf16.msra.mxu0 %v6072_v38  ;;  %v6150_v38 = vld [vmem:[#allocation2 + $0x160] ss:$24 sps:$4 sm:$0xff]  }
 0xa5f   :  { %4048 = vmatprep.subr.bf16.mxu0 %v6080_v56  ;;  %v6158_v56 = vld [vmem:[#allocation2 + $0x134] ss:$24 sps:$4 sm:$0xff]  }
 0xa60   :  { %4088 = vmatpush1.bf16.msra.mxu1 %v6075_v50  ;;  %v6153_v50 = vld [vmem:[#allocation2 + $0x460] ss:$24 sps:$4 sm:$0xff]  }
 0xa61   :  { %4089 = vmatprep.subr.bf16.mxu1 %v6083_v53  ;;  %v6161_v53 = vld [vmem:[#allocation2 + $0x434] ss:$24 sps:$4 sm:$0xff]  }
 0xa62   :  { %4049 = vmatpush1.bf16.msra.mxu0 %v6078_v46  ;;  %v6156_v46 = vld [vmem:[#allocation2 + $0x130] ss:$24 sps:$4 sm:$0xff]  }
 0xa63   :  { %4050 = vmatprep.subr.bf16.mxu0 %v6086_v10  ;;  %v6164_v10 = vld [vmem:[#allocation2 + $0x104] ss:$24 sps:$4 sm:$0xff]  }
 0xa64   :  { %4090 = vmatpush1.bf16.msra.mxu1 %v6081_v17  ;;  %v6159_v17 = vld [vmem:[#allocation2 + $0x430] ss:$24 sps:$4 sm:$0xff]  }
 0xa65   :  { %4091 = vmatprep.subr.bf16.mxu1 %v6089_v62  ;;  %v6167_v62 = vld [vmem:[#allocation2 + $0x404] ss:$24 sps:$4 sm:$0xff]  }
 0xa66   :  { %4051 = vmatpush1.bf16.msra.mxu0 %v6084_v61  ;;  %v6162_v61 = vld [vmem:[#allocation2 + $0x100] ss:$24 sps:$4 sm:$0xff]  }
 0xa67   :  { %4052 = vmatprep.subr.bf16.mxu0 %v6092_v51  ;;  %v6170_v51 = vld [vmem:[#allocation2 + $0xd4] ss:$24 sps:$4 sm:$0xff]  }
 0xa68   :  { %4092 = vmatpush1.bf16.msra.mxu1 %v6087_v19  ;;  %v6165_v19 = vld [vmem:[#allocation2 + $0x400] ss:$24 sps:$4 sm:$0xff]  }
 0xa69   :  { %4093 = vmatprep.subr.bf16.mxu1 %v6095_v23  ;;  %v6173_v23 = vld [vmem:[#allocation2 + $0x3d4] ss:$24 sps:$4 sm:$0xff]  }
 0xa6a   :  { %4053 = vmatpush1.bf16.msra.mxu0 %v6090_v36  ;;  %v6176_v36 = vld [vmem:[#allocation2 + $0xa4] ss:$24 sps:$4 sm:$0xff]  }
 0xa6b   :  { %4054 = vmatprep.subr.bf16.mxu0 %v6098_v22  ;;  %v6171_v22 = vld [vmem:[#allocation2 + $0x3d0] ss:$24 sps:$4 sm:$0xff]  }
 0xa6c   :  { %4094 = vmatpush1.bf16.msra.mxu1 %v6093_v31  ;;  %v6179_v31 = vld [vmem:[#allocation2 + $0x3a4] ss:$24 sps:$4 sm:$0xff]  }
 0xa6d   :  { %4095 = vmatprep.subr.bf16.mxu1 %v6101_v0  ;;  %v6182_v0 = vld [vmem:[#allocation2 + $0x74] ss:$24 sps:$4 sm:$0xff]  }
 0xa6e   :  { %4055 = vmatpush1.bf16.msra.mxu0 %v6096_v58  ;;  %v6177_v58 = vld [vmem:[#allocation2 + $0x3a0] ss:$24 sps:$4 sm:$0xff]  }
 0xa6f   :  { %4056 = vmatprep.subr.bf16.mxu0 %v6104_v5  ;;  %v6185_v5 = vld [vmem:[#allocation2 + $0x374] ss:$24 sps:$4 sm:$0xff]  }
 0xa70   :  { %4096 = vmatpush1.bf16.msra.mxu1 %v6099_v16  ;;  %v6180_v16 = vld [vmem:[#allocation2 + $0x70] ss:$24 sps:$4 sm:$0xff]  }
 0xa71   :  { %4097 = vmatprep.subr.bf16.mxu1 %v6107_v49  ;;  %v6188_v49 = vld [vmem:[#allocation2 + $0x44] ss:$24 sps:$4 sm:$0xff]  }
 0xa72   :  { %4057 = vmatpush2.bf16.msra.mxu0 %v6102_v7  ;;  %v6183_v7 = vld [vmem:[#allocation2 + $0x370] ss:$24 sps:$4 sm:$0xff]  }
 0xa73   :  { %4058 = vmatprep.subr.bf16.mxu0 %v6110_v44  ;;  %v6191_v44 = vld [vmem:[#allocation2 + $0x344] ss:$24 sps:$4 sm:$0xff]  }
 0xa74   :  { %4098 = vmatpush2.bf16.msra.mxu1 %v6105_v32  ;;  %v6186_v32 = vld [vmem:[#allocation2 + $0x40] ss:$24 sps:$4 sm:$0xff]  }
 0xa75   :  { %4099 = vmatprep.subr.bf16.mxu1 %v6113_v34  ;;  %v6194_v34 = vld [vmem:[#allocation2 + $0x14] ss:$24 sps:$4 sm:$0xff]  }
 0xa76   :  { %4059 = vmatpush2.bf16.msra.mxu0 %v6108_v29  ;;  %v6189_v29 = vld [vmem:[#allocation2 + $0x340] ss:$24 sps:$4 sm:$0xff]  }
 0xa77   :  { %4060 = vmatprep.subr.bf16.mxu0 %v6116_v3  ;;  %v6197_v3 = vld [vmem:[#allocation2 + $0x314] ss:$24 sps:$4 sm:$0xff]  }
 0xa78   :  { %4100 = vmatpush2.bf16.msra.mxu1 %v6111_v41  ;;  %v6192_v41 = vld [vmem:[#allocation2 + $0x10] ss:$24 sps:$4 sm:$0xff]  }
 0xa79   :  { %4101 = vmatprep.subr.bf16.mxu1 %v6119_v4  ;;  %v6200_v4 = vld [vmem:[#allocation2 + $0x2e4] ss:$24 sps:$4 sm:$0xff]  }
 0xa7a   :  { %4061 = vmatpush2.bf16.msra.mxu0 %v6114_v47  ;;  %v6195_v47 = vld [vmem:[#allocation2 + $0x310] ss:$24 sps:$4 sm:$0xff]  }
 0xa7b   :  { %4062 = vmatprep.subr.bf16.mxu0 %v6122_v42  ;;  %v6203_v42 = vld [vmem:[#allocation2 + $0x5e4] ss:$24 sps:$4 sm:$0xff]  }
 0xa7c   :  { %4102 = vmatpush2.bf16.msra.mxu1 %v6117_v26  ;;  %v6198_v26 = vld [vmem:[#allocation2 + $0x2e0] ss:$24 sps:$4 sm:$0xff]  }
 0xa7d   :  { %4103 = vmatprep.subr.bf16.mxu1 %v6125_v45  ;;  %v6206_v45 = vld [vmem:[#allocation2 + $0x2b4] ss:$24 sps:$4 sm:$0xff]  }
 0xa7e   :  { %4063 = vmatpush2.bf16.msra.mxu0 %v6120_v21  ;;  %v6201_v21 = vld [vmem:[#allocation2 + $0x5e0] ss:$24 sps:$4 sm:$0xff]  }
 0xa7f   :  { %4064 = vmatprep.subr.bf16.mxu0 %v6128_v18  ;;  %v6209_v18 = vld [vmem:[#allocation2 + $0x5b4] ss:$24 sps:$4 sm:$0xff]  }
 0xa80   :  { %4104 = vmatpush2.bf16.msra.mxu1 %v6123_v14  ;;  %v6204_v14 = vld [vmem:[#allocation2 + $0x2b0] ss:$24 sps:$4 sm:$0xff]  }
 0xa81   :  { %4105 = vmatprep.subr.bf16.mxu1 %v6131_v39  ;;  %v6212_v39 = vld [vmem:[#allocation2 + $0x284] ss:$24 sps:$4 sm:$0xff]  }
 0xa82   :  { %4065 = vmatpush2.bf16.msra.mxu0 %v6126_v37  ;;  %v6207_v37 = vld [vmem:[#allocation2 + $0x5b0] ss:$24 sps:$4 sm:$0xff]  }
 0xa83   :  { %4066 = vmatprep.subr.bf16.mxu0 %v6134_v60  ;;  %v6215_v60 = vld [vmem:[#allocation2 + $0x584] ss:$24 sps:$4 sm:$0xff]  }
 0xa84   :  { %4106 = vmatpush2.bf16.msra.mxu1 %v6129_v20  ;;  %v6210_v20 = vld [vmem:[#allocation2 + $0x280] ss:$24 sps:$4 sm:$0xff]  }
 0xa85   :  { %4107 = vmatprep.subr.bf16.mxu1 %v6137_v54  ;;  %v6218_v54 = vld [vmem:[#allocation2 + $0x254] ss:$24 sps:$4 sm:$0xff]  }
 0xa86   :  { %4067 = vmatpush2.bf16.msra.mxu0 %v6132_v40  ;;  %v6213_v40 = vld [vmem:[#allocation2 + $0x580] ss:$24 sps:$4 sm:$0xff]  }
 0xa87   :  { %4068 = vmatprep.subr.bf16.mxu0 %v6140_v6  ;;  %v6221_v6 = vld [vmem:[#allocation2 + $0x554] ss:$24 sps:$4 sm:$0xff]  }
 0xa88   :  { %4108 = vmatpush2.bf16.msra.mxu1 %v6135_v13  ;;  %v6216_v13 = vld [vmem:[#allocation2 + $0x250] ss:$24 sps:$4 sm:$0xff]  }
 0xa89   :  { %4109 = vmatprep.subr.bf16.mxu1 %v6143_v55  ;;  %v6224_v55 = vld [vmem:[#allocation2 + $0x224] ss:$24 sps:$4 sm:$0xff]  }
 0xa8a   :  { %4069 = vmatpush2.bf16.msra.mxu0 %v6138_v8  ;;  %v6219_v8 = vld [vmem:[#allocation2 + $0x550] ss:$24 sps:$4 sm:$0xff]  }
 0xa8b   :  { %4070 = vmatprep.subr.bf16.mxu0 %v6146_v43  ;;  %v6227_v43 = vld [vmem:[#allocation2 + $0x524] ss:$24 sps:$4 sm:$0xff]  }
 0xa8c   :  { %4110 = vmatpush2.bf16.msra.mxu1 %v6141_v9  ;;  %v6222_v9 = vld [vmem:[#allocation2 + $0x220] ss:$24 sps:$4 sm:$0xff]  }
 0xa8d   :  { %4111 = vmatprep.subr.bf16.mxu1 %v6149_v30  ;;  %v6230_v30 = vld [vmem:[#allocation2 + $0x1f4] ss:$24 sps:$4 sm:$0xff]  }
 0xa8e   :  { %4071 = vmatpush2.bf16.msra.mxu0 %v6144_v35  ;;  %v6225_v35 = vld [vmem:[#allocation2 + $0x520] ss:$24 sps:$4 sm:$0xff]  }
 0xa8f   :  { %4122 = vmatprep.subr.bf16.mxu0 %v6152_v12  ;;  %v6233_v12 = vld [vmem:[#allocation2 + $0x4f4] ss:$24 sps:$4 sm:$0xff]  }
 0xa90   :  { %4112 = vmatpush2.bf16.msra.mxu1 %v6147_v11  ;;  %v6228_v11 = vld [vmem:[#allocation2 + $0x1f0] ss:$24 sps:$4 sm:$0xff]  }
 0xa91   :  { %4073 = vmatmul.mubr.bf16.vlgmr.msra.gmra.mxu0 %v7453_v2  ;;  %4163 = vmatprep.subr.bf16.mxu1 %v6155_v59  ;;  %v6236_v59 = vld [vmem:[#allocation2 + $0x1c4] ss:$24 sps:$4 sm:$0xff]  }
 0xa92   :  { %4123 = vmatpush1.bf16.msra.mxu0 %v6150_v38  ;;  %4154 = vmatprep.mubr.bf16.mxu0 %v7421_v33  ;;  %v6168_v33 = vld [vmem:[#allocation2 + $0xd0] ss:$24 sps:$4 sm:$0xff]  }
 0xa93   :  { %4114 = vmatmul.mubr.bf16.vlgmr.msra.gmra.mxu1 %v7466_v27  ;;  %4124 = vmatprep.subr.bf16.mxu0 %v6158_v56  ;;  %v6231_v38 = vld [vmem:[#allocation2 + $0x4f0] ss:$24 sps:$4 sm:$0xff]   ;;  %v6239_v56 = vld [vmem:[#allocation2 + $0x4c4] ss:$24 sps:$4 sm:$0xff]  }
 0xa94   :  { %4164 = vmatpush1.bf16.msra.mxu1 %v6153_v50  ;;  %4195 = vmatprep.mubr.bf16.mxu1 %v7424_v52  ;;  %v6174_v52 = vld [vmem:[#allocation2 + $0xa0] ss:$24 sps:$4 sm:$0xff]  }
 0xa95   :  { %4165 = vmatprep.subr.bf16.mxu1 %v6161_v53  ;;  %v6234_v50 = vld [vmem:[#allocation2 + $0x1c0] ss:$24 sps:$4 sm:$0xff]   ;;  %v6242_v53 = vld [vmem:[#allocation2 + $0x194] ss:$24 sps:$4 sm:$0xff]  }
 0xa96   :  { %4125 = vmatpush1.bf16.msra.mxu0 %v6156_v46  ;;  %v6237_v46 = vld [vmem:[#allocation2 + $0x4c0] ss:$24 sps:$4 sm:$0xff]  }
 0xa97   :  { %4126 = vmatprep.subr.bf16.mxu0 %v6164_v10  ;;  %v6245_v10 = vld [vmem:[#allocation2 + $0x494] ss:$24 sps:$4 sm:$0xff]  }
 0xa98   :  { %4166 = vmatpush1.bf16.msra.mxu1 %v6159_v17  ;;  %v6240_v17 = vld [vmem:[#allocation2 + $0x190] ss:$24 sps:$4 sm:$0xff]  }
 0xa99   :  { %4167 = vmatprep.subr.bf16.mxu1 %v6167_v62  ;;  %v7476_v62 = vld [vmem:[#allocation6] sm:$0x3f] }
 0xa9a   :  { %4127 = vmatpush1.bf16.msra.mxu0 %v6162_v61  ;;  %v6248_v61 = vld [vmem:[#allocation2 + $0x764] ss:$24 sps:$4 sm:$0xff]  }
 0xa9b   :  { %4128 = vmatprep.subr.bf16.mxu0 %v6170_v51  ;;  %v6243_v51 = vld [vmem:[#allocation2 + $0x490] ss:$24 sps:$4 sm:$0xff]  }
 0xa9c   :  { %4168 = vmatpush1.bf16.msra.mxu1 %v6165_v19  ;;  %v2366_v19 = vrot.slane %v7476_v62, %v6792_v24  ;;  %v6254_v24 = vld [vmem:[#allocation2 + $0x704] ss:$24 sps:$4 sm:$0xff]  }
 0xa9d   :  { %4169 = vmatprep.subr.bf16.mxu1 %v6173_v23  ;;  %v6246_v23 = vld [vmem:[#allocation2 + $0x760] ss:$24 sps:$4 sm:$0xff]  }
 0xa9e   :  { %4129 = vmatpush1.bf16.msra.mxu0 %v6168_v33  ;;  %v6251_v33 = vld [vmem:[#allocation2 + $0x734] ss:$24 sps:$4 sm:$0xff]  }
 0xa9f   :  { %4130 = vmatprep.subr.bf16.mxu0 %v6176_v36  ;;  %v2370_v36 = vrot.slane %v7476_v62, %v6795_v25 }
 0xaa0   :  { %4170 = vmatpush1.bf16.msra.mxu1 %v6171_v22 }
 0xaa1   :  { %4171 = vmatprep.subr.bf16.mxu1 %v6179_v31 }
 0xaa2   :  { %4131 = vmatpush1.bf16.msra.mxu0 %v6174_v52  ;;  %v6249_v52 = vld [vmem:[#allocation2 + $0x730] ss:$24 sps:$4 sm:$0xff]  }
 0xaa3   :  { %4132 = vmatprep.subr.bf16.mxu0 %v6182_v0 }
 0xaa4   :  { %4172 = vmatpush1.bf16.msra.mxu1 %v6177_v58 }
 0xaa5   :  { %4173 = vmatprep.subr.bf16.mxu1 %v6185_v5 }
 0xaa6   :  { %4133 = vmatpush1.bf16.msra.mxu0 %v6180_v16 }
 0xaa7   :  { %4134 = vmatprep.subr.bf16.mxu0 %v6188_v49 }
 0xaa8   :  { %4174 = vmatpush1.bf16.msra.mxu1 %v6183_v7 }
 0xaa9   :  { %4175 = vmatprep.subr.bf16.mxu1 %v6191_v44 }
 0xaaa   :  { %4135 = vmatpush1.bf16.msra.mxu0 %v6186_v32  ;;  %v6257_v32 = vld [vmem:[#allocation2 + $0x6d4] ss:$24 sps:$4 sm:$0xff]  }
 0xaab   :  { %4136 = vmatprep.subr.bf16.mxu0 %v6194_v34 }
 0xaac   :  { %4176 = vmatpush1.bf16.msra.mxu1 %v6189_v29  ;;  %v6255_v29 = vld [vmem:[#allocation2 + $0x6d0] ss:$24 sps:$4 sm:$0xff]  }
 0xaad   :  { %4177 = vmatprep.subr.bf16.mxu1 %v6197_v3  ;;  %v6258_v3 = vld [vmem:[#allocation2 + $0x6a0] ss:$24 sps:$4 sm:$0xff]  }
 0xaae   :  { %4137 = vmatpush1.bf16.msra.mxu0 %v6192_v41  ;;  %v6263_v41 = vld [vmem:[#allocation2 + $0x674] ss:$24 sps:$4 sm:$0xff]  }
 0xaaf   :  { %4138 = vmatprep.subr.bf16.mxu0 %v6200_v4  ;;  %v6261_v4 = vld [vmem:[#allocation2 + $0x670] ss:$24 sps:$4 sm:$0xff]  }
 0xab0   :  { %4178 = vmatpush1.bf16.msra.mxu1 %v6195_v47  ;;  %v6266_v47 = vld [vmem:[#allocation2 + $0x644] ss:$24 sps:$4 sm:$0xff]  }
 0xab1   :  { %4179 = vmatprep.subr.bf16.mxu1 %v6203_v42  ;;  %v6264_v42 = vld [vmem:[#allocation2 + $0x640] ss:$24 sps:$4 sm:$0xff]  }
 0xab2   :  { %4139 = vmatpush2.bf16.msra.mxu0 %v6198_v26  ;;  %v6269_v26 = vld [vmem:[#allocation2 + $0x614] ss:$24 sps:$4 sm:$0xff]  }
 0xab3   :  { %4140 = vmatprep.subr.bf16.mxu0 %v6206_v45  ;;  %v6267_v45 = vld [vmem:[#allocation2 + $0x610] ss:$24 sps:$4 sm:$0xff]  }
 0xab4   :  { %4180 = vmatpush2.bf16.msra.mxu1 %v6201_v21  ;;  %v6272_v21 = vld [vmem:[#allocation2 + $0x8e4] ss:$24 sps:$4 sm:$0xff]  }
 0xab5   :  { %4181 = vmatprep.subr.bf16.mxu1 %v6209_v18  ;;  %v6270_v18 = vld [vmem:[#allocation2 + $0x8e0] ss:$24 sps:$4 sm:$0xff]  }
 0xab6   :  { %4141 = vmatpush2.bf16.msra.mxu0 %v6204_v14  ;;  %v6275_v14 = vld [vmem:[#allocation2 + $0x8b4] ss:$24 sps:$4 sm:$0xff]  }
 0xab7   :  { %4142 = vmatprep.subr.bf16.mxu0 %v6212_v39  ;;  %v6273_v39 = vld [vmem:[#allocation2 + $0x8b0] ss:$24 sps:$4 sm:$0xff]  }
 0xab8   :  { %4182 = vmatpush2.bf16.msra.mxu1 %v6207_v37  ;;  %v6278_v37 = vld [vmem:[#allocation2 + $0x884] ss:$24 sps:$4 sm:$0xff]  }
 0xab9   :  { %4183 = vmatprep.subr.bf16.mxu1 %v6215_v60  ;;  %v6276_v60 = vld [vmem:[#allocation2 + $0x880] ss:$24 sps:$4 sm:$0xff]  }
 0xaba   :  { %4143 = vmatpush2.bf16.msra.mxu0 %v6210_v20  ;;  %v6281_v20 = vld [vmem:[#allocation2 + $0x854] ss:$24 sps:$4 sm:$0xff]  }
 0xabb   :  { %4144 = vmatprep.subr.bf16.mxu0 %v6218_v54  ;;  %v6279_v54 = vld [vmem:[#allocation2 + $0x850] ss:$24 sps:$4 sm:$0xff]  }
 0xabc   :  { %4184 = vmatpush2.bf16.msra.mxu1 %v6213_v40  ;;  %v6284_v40 = vld [vmem:[#allocation2 + $0x824] ss:$24 sps:$4 sm:$0xff]  }
 0xabd   :  { %4185 = vmatprep.subr.bf16.mxu1 %v6221_v6  ;;  %v6282_v6 = vld [vmem:[#allocation2 + $0x820] ss:$24 sps:$4 sm:$0xff]  }
 0xabe   :  { %4145 = vmatpush2.bf16.msra.mxu0 %v6216_v13  ;;  %v6287_v13 = vld [vmem:[#allocation2 + $0x7f4] ss:$24 sps:$4 sm:$0xff]  }
 0xabf   :  { %4146 = vmatprep.subr.bf16.mxu0 %v6224_v55  ;;  %v6285_v55 = vld [vmem:[#allocation2 + $0x7f0] ss:$24 sps:$4 sm:$0xff]  }
 0xac0   :  { %4186 = vmatpush2.bf16.msra.mxu1 %v6219_v8  ;;  %v6290_v8 = vld [vmem:[#allocation2 + $0x7c4] ss:$24 sps:$4 sm:$0xff]  }
 0xac1   :  { %4187 = vmatprep.subr.bf16.mxu1 %v6227_v43  ;;  %v6288_v43 = vld [vmem:[#allocation2 + $0x7c0] ss:$24 sps:$4 sm:$0xff]  }
 0xac2   :  { %4147 = vmatpush2.bf16.msra.mxu0 %v6222_v9  ;;  %v6293_v9 = vld [vmem:[#allocation2 + $0x794] ss:$24 sps:$4 sm:$0xff]  }
 0xac3   :  { %4148 = vmatprep.subr.bf16.mxu0 %v6230_v30  ;;  %v6291_v30 = vld [vmem:[#allocation2 + $0x790] ss:$24 sps:$4 sm:$0xff]  }
 0xac4   :  { %4188 = vmatpush2.bf16.msra.mxu1 %v6225_v35 }
 0xac5   :  { %4189 = vmatprep.subr.bf16.mxu1 %v6233_v12 }
 0xac6   :  { %4149 = vmatpush2.bf16.msra.mxu0 %v6228_v11 }
 0xac7   :  { %4150 = vmatprep.subr.bf16.mxu0 %v6236_v59 }
 0xac8   :  { %4190 = vmatpush2.bf16.msra.mxu1 %v6231_v38 }
 0xac9   :  { %4191 = vmatprep.subr.bf16.mxu1 %v6239_v56 }
 0xaca   :  { %4151 = vmatpush2.bf16.msra.mxu0 %v6234_v50 }
 0xacb   :  { %4152 = vmatprep.subr.bf16.mxu0 %v6242_v53 }
 0xacc   :  { %4192 = vmatpush2.bf16.msra.mxu1 %v6237_v46 }
 0xacd   :  { %4193 = vmatprep.subr.bf16.mxu1 %v6245_v10 }
 0xace   :  { %4153 = vmatpush2.bf16.msra.mxu0 %v6240_v17 }
 0xacf   :  { %4204 = vmatprep.subr.bf16.mxu0 %v6248_v61 }
 0xad0   :  { %4194 = vmatpush2.bf16.msra.mxu1 %v6243_v51  ;;  %v2377_v51 = vsub.s32 3, %v6789_v15 }
 0xad1   :  { %v3910_v22 = vpop.f32.mrf.mxu0  ;;  %4155 = vmatmul.mubr.bf16.vlgmr.msra.gmra.mxu0 %v7449_v57  ;;  %v6252_v57 = vld [vmem:[#allocation2 + $0x700] ss:$24 sps:$4 sm:$0xff]  }
 0xad2   :  { %v3911_v31 = vadd.f32 %v3910_v22, %v2366_v19  ;;  %4205 = vmatpush1.bf16.msra.mxu0 %v6246_v23  ;;  %4236 = vmatprep.mubr.bf16.mxu0 %v7451_v28  ;;  %v2378_v19 = vrot.slane %v7476_v62, %v2377_v51 }
 0xad3   :  { %v3912_v0 = vpop.f32.mrf.mxu0  ;;  %v3951_v58 = vpop.f32.mrf.mxu1  ;;  %4196 = vmatmul.mubr.bf16.vlgmr.msra.gmra.mxu1 %v7453_v2  ;;  %4206 = vmatprep.subr.bf16.mxu0 %v6251_v33  ;;  %v6260_v2 = vld [vmem:[#allocation2 + $0x6a4] ss:$24 sps:$4 sm:$0xff]  }
 0xad4   :  { %v3913_v5 = vadd.f32 %v3912_v0, %v2370_v36  ;;  %v7485_v16 = vadd.f32 %v3951_v58, %v3911_v31 }
 0xad5   :  { %v3914_v49 = vpop.f32.mrf.mxu0  ;;  %v3953_v7 = vpop.f32.mrf.mxu1 }
 0xad6   :  { %v7487_v25 = vadd.f32 %v3953_v7, %v3913_v5  ;;  %4207 = vmatpush1.bf16.msra.mxu0 %v6249_v52 }
 0xad7   :  { %v3915_v44 = vpop.f32.mrf.mxu0  ;;  %4208 = vmatprep.subr.bf16.mxu0 %v6254_v24  ;;  %v3955_v34 = vpop.f32.mrf.mxu1 }
 0xad9   :  { %v3956_v28 = vpop.f32.mrf.mxu1 }
 0xada   :  { %4209 = vmatpush1.bf16.msra.mxu0 %v6252_v57 }
 0xadb   :  { %4210 = vmatprep.subr.bf16.mxu0 %v6257_v32 }
 0xade   :  { %4211 = vmatpush1.bf16.msra.mxu0 %v6255_v29 }
 0xadf   :  { %4212 = vmatprep.subr.bf16.mxu0 %v6260_v2 }
 0xae2   :  { %4213 = vmatpush1.bf16.msra.mxu0 %v6258_v3 }
 0xae3   :  { %4214 = vmatprep.subr.bf16.mxu0 %v6263_v41 }
 0xae6   :  { %4215 = vmatpush1.bf16.msra.mxu0 %v6261_v4  ;;  %v2381_v4 = vsub.s32 4, %v6789_v15 }
 0xae7   :  { %4216 = vmatprep.subr.bf16.mxu0 %v6266_v47  ;;  %v2385_v47 = vsub.s32 5, %v6789_v15 }
 0xaea   :  { %4217 = vmatpush1.bf16.msra.mxu0 %v6264_v42  ;;  %v2382_v42 = vrot.slane %v7476_v62, %v2381_v4 }
 0xaeb   :  { %4218 = vmatprep.subr.bf16.mxu0 %v6269_v26  ;;  %v2386_v26 = vrot.slane %v7476_v62, %v2385_v47 }
 0xaee   :  { %4219 = vmatpush1.bf16.msra.mxu0 %v6267_v45 }
 0xaef   :  { %4220 = vmatprep.subr.bf16.mxu0 %v6272_v21 }
 0xaf2   :  { %4221 = vmatpush2.bf16.msra.mxu0 %v6270_v18 }
 0xaf3   :  { %4222 = vmatprep.subr.bf16.mxu0 %v6275_v14 }
 0xaf6   :  { %4223 = vmatpush2.bf16.msra.mxu0 %v6273_v39 }
 0xaf7   :  { %4224 = vmatprep.subr.bf16.mxu0 %v6278_v37 }
 0xafa   :  { %4225 = vmatpush2.bf16.msra.mxu0 %v6276_v60 }
 0xafb   :  { %4226 = vmatprep.subr.bf16.mxu0 %v6281_v20 }
 0xafe   :  { %4227 = vmatpush2.bf16.msra.mxu0 %v6279_v54 }
 0xaff   :  { %4228 = vmatprep.subr.bf16.mxu0 %v6284_v40 }
 0xb02   :  { %4229 = vmatpush2.bf16.msra.mxu0 %v6282_v6 }
 0xb03   :  { %4230 = vmatprep.subr.bf16.mxu0 %v6287_v13 }
 0xb06   :  { %4231 = vmatpush2.bf16.msra.mxu0 %v6285_v55 }
 0xb07   :  { %4232 = vmatprep.subr.bf16.mxu0 %v6290_v8 }
 0xb0a   :  { %4233 = vmatpush2.bf16.msra.mxu0 %v6288_v43 }
 0xb0b   :  { %4234 = vmatprep.subr.bf16.mxu0 %v6293_v9 }
 0xb0e   :  { %4235 = vmatpush2.bf16.msra.mxu0 %v6291_v30 }
 0xb11   :  { %v3992_v35 = vpop.f32.mrf.mxu0  ;;  %4237 = vmatmul.mubr.bf16.vlgmr.msra.gmra.mxu0 %v7466_v27  ;;  %v2374_v27 = vrot.slane %v7476_v62, %v7036_v63 }
 0xb12   :  { %v3993_v12 = vadd.f32 %v3992_v35, %v7485_v16 }
 0xb13   :  { %v3994_v11 = vpop.f32.mrf.mxu0  ;;  %v4033_v59 = vpop.f32.mrf.mxu1 }
 0xb14   :  { %6294 = vtanh.f32 %v3993_v12  ;;  %v3995_v38 = vadd.f32 %v3994_v11, %v7487_v25  ;;  %v4034_v23 = vadd.f32 %v4033_v59, %v2374_v27 }
 0xb15   :  { %v3996_v56 = vpop.f32.mrf.mxu0  ;;  %v4035_v50 = vpop.f32.mrf.mxu1 }
 0xb16   :  { %6296 = vtanh.f32 %v3995_v38  ;;  %v4036_v33 = vadd.f32 %v4035_v50, %v2378_v19 }
 0xb17   :  { %v3997_v53 = vpop.f32.mrf.mxu0  ;;  %v4037_v46 = vpop.f32.mrf.mxu1 }
 0xb19   :  { %v4038_v10 = vpop.f32.mrf.mxu1 }
 0xb21   :  { %v7492_v17 = vpop.eup %6294 }
 0xb23   :  { %v6297_v61 = vpop.eup %6296 }
 0xb51   :  { %v4074_v36 = vpop.f32.mrf.mxu0 }
 0xb52   :  { %v4075_v22 = vadd.f32 %v4074_v36, %v4034_v23 }
 0xb53   :  { %v4076_v31 = vpop.f32.mrf.mxu0  ;;  %v4115_v52 = vpop.f32.mrf.mxu1 }
 0xb54   :  { %v4077_v0 = vadd.f32 %v4076_v31, %v4036_v33  ;;  %v4116_v58 = vadd.f32 %v4115_v52, %v4075_v22 }
 0xb55   :  { %v4078_v24 = vpop.f32.mrf.mxu0  ;;  %v4117_v5 = vpop.f32.mrf.mxu1 }
 0xb56   :  { %6298 = vtanh.f32 %v4116_v58  ;;  %v4118_v16 = vadd.f32 %v4117_v5, %v4077_v0 }
 0xb57   :  { %v4079_v49 = vpop.f32.mrf.mxu0  ;;  %v4119_v7 = vpop.f32.mrf.mxu1 }
 0xb58   :  { %6300 = vtanh.f32 %v4118_v16 }
 0xb59   :  { %v4120_v25 = vpop.f32.mrf.mxu1 }
 0xb63   :  { %v7498_v57 = vpop.eup %6298 }
 0xb65   :  { %v7500_v63 = vpop.eup %6300 }
 0xb91   :  { %v4156_v44 = vpop.f32.mrf.mxu0 }
 0xb92   :  { %v4157_v45 = vadd.f32 %v4156_v44, %v2382_v42 }
 0xb93   :  { %v4158_v32 = vpop.f32.mrf.mxu0  ;;  %v4197_v34 = vpop.f32.mrf.mxu1 }
 0xb94   :  { %v4159_v21 = vadd.f32 %v4158_v32, %v2386_v26  ;;  %v4198_v18 = vadd.f32 %v4197_v34, %v4157_v45 }
 0xb95   :  { %v4160_v28 = vpop.f32.mrf.mxu0  ;;  %v4199_v29 = vpop.f32.mrf.mxu1 }
 0xb96   :  { %v4200_v39 = vadd.f32 %v4199_v29, %v4159_v21 }
 0xb97   :  { %v4161_v2 = vpop.f32.mrf.mxu0  ;;  %v4201_v3 = vpop.f32.mrf.mxu1 }
 0xb99   :  { %v4202_v41 = vpop.f32.mrf.mxu1 }
 0xbd1   :  { %v4238_v14 = vpop.f32.mrf.mxu0 }
 0xbd2   :  { %v4239_v37 = vadd.f32 %v4238_v14, %v4198_v18 }
 0xbd3   :  { %v4240_v60 = vpop.f32.mrf.mxu0 }
 0xbd4   :  { %6302 = vtanh.f32 %v4239_v37  ;;  %v4241_v20 = vadd.f32 %v4240_v60, %v4200_v39 }
 0xbd5   :  { %v4242_v54 = vpop.f32.mrf.mxu0 }
 0xbd6   :  { %6304 = vtanh.f32 %v4241_v20 }
 0xbd7   :  { %v4243_v40 = vpop.f32.mrf.mxu0 }
 0xbe1   :  { %v7506_v6 = vpop.eup %6302 }
 0xbe3   :  { %v6305_v13 = vpop.eup %6304 }
 0xbe4   :  { %6580 = dma.done.wait [#allocation5 + $0x1], 6144 }
 0xbe5   :  { %6581 = vsyncadd [#allocation5 + $0x1], 4294961152  ;;  %v4272_v15 = vpack.c.bf16 %v6297_v61, %v6297_v61  ;;  %v4276_v55 = vpack.c.bf16 %v6305_v13, %v6305_v13  ;;  %v6306_v62 = vld [vmem:[#allocation3 + $0x78] sm:$0xff]   ;;  %v6308_v43 = vld [vmem:[#allocation3 + $0x70] sm:$0xff]   ;;  %v4271_v52 = vpack.c.bf16 %v7492_v17, %v7492_v17  ;;  %v4274_v24 = vpack.c.bf16 %v7500_v63, %v7500_v63  ;;  %s6609_s1 = smov [#allocation18]  }
 0xbe6   :  { %v6307_v8 = vld [vmem:[#allocation3 + $0x38] sm:$0xff]   ;;  %5412 = vmatprep.subr.bf16.mxu1 %v6306_v62  ;;  %v6309_v9 = vld [vmem:[#allocation3 + $0x30] sm:$0xff]   ;;  %v6310_v30 = vld [vmem:[#allocation3 + $0x68] sm:$0xff]   ;;  %v4275_v42 = vpack.c.bf16 %v7506_v6, %v7506_v6  ;;  %v4273_v39 = vpack.c.bf16 %v7498_v57, %v7498_v57  ;;  %vm4877_vm7 = vcmask 1041408   ;;  %s4896_s18 = sshll.u32 %s6609_s1, 4  ;;  %s4897_s18 = int_to_ptr.vmem [resolvable:$true] %s4896_s18 }
 0xbe7   :  { %4693 = vmatprep.mubr.bf16.mxu1 %v4272_v15  ;;  %4773 = vmatprep.mubr.bf16.mxu0 %v4276_v55  ;;  %v6311_v35 = vld [vmem:[#allocation3 + $0x28] sm:$0xff]   ;;  %v6312_v12 = vld [vmem:[#allocation3 + $0x60] sm:$0xff]   ;;  %v6314_v59 = vld [vmem:[#allocation3 + $0x58] sm:$0xff]   ;;  %v4254_v15 = vpack.c.bf16 %v7412_v1, %v7412_v1  ;;  %s6546_s8 = scalar_lea.vmem %s4897_s18, 32  ;;  %p6551_p5 = scmp.lt.s32.totalorder %s4897_s18, %s4897_s18 }
 0xbe8   :  { %5413 = vmatpush3.bf16.msra.mxu1 %v6307_v8  ;;  %v6313_v11 = vld [vmem:[#allocation3 + $0x20] sm:$0xff]   ;;  %v6315_v38 = vld [vmem:[#allocation3 + $0x18] sm:$0xff]   ;;  %v6316_v56 = vld [vmem:[#allocation3 + $0x50] sm:$0xff]   ;;  %p6547_p4 = scmp.ne.s32.totalorder %s4897_s18, %s6546_s8  ;;  %p6552_p6 = scmp.lt.s32.totalorder %s6546_s8, %s6546_s8 }
 0xbe9   :  { %5414 = vmatprep.subr.bf16.mxu1 %v6308_v43  ;;  %v6317_v50 = vld [vmem:[#allocation3 + $0x10] sm:$0xff]   ;;  %v6324_v53 = vld [vmem:[#allocation3 + $0x178] sm:$0xff]   ;;  %v6318_v10 = vld [vmem:[#allocation3 + $0x48] sm:$0xff]  }
 0xbea   :  { %v6325_v46 = vld [vmem:[#allocation3 + $0x138] sm:$0xff]   ;;  %5456 = vmatprep.subr.bf16.mxu0 %v6324_v53  ;;  %v6319_v61 = vld [vmem:[#allocation3 + $0x8] sm:$0xff]   ;;  %v6328_v51 = vld [vmem:[#allocation3 + $0x170] sm:$0xff]   ;;  %p6553_p7 = por %p6552_p6, %p6551_p5 }
 0xbeb   :  { %5457 = vmatpush3.bf16.msra.mxu0 %v6325_v46  ;;  %v6329_v27 = vld [vmem:[#allocation3 + $0x130] sm:$0xff]   ;;  %v6320_v19 = vld [vmem:[#allocation3 + $0x40] sm:$0xff]   ;;  %v6332_v33 = vld [vmem:[#allocation3 + $0x168] sm:$0xff]  }
 0xbec   :  { %5415 = vmatpush3.bf16.msra.mxu1 %v6309_v9  ;;  %5458 = vmatprep.subr.bf16.mxu0 %v6328_v51  ;;  %v6321_v23 = vld [vmem:[#allocation3] sm:$0xff]   ;;  %v6333_v36 = vld [vmem:[#allocation3 + $0x128] sm:$0xff]   ;;  %v6322_v22 = vld [vmem:[#allocation3 + $0xf8] sm:$0xff]   ;;  %p6554_p8 = pnand %p6553_p7, %p6547_p4 }
 0xbed   :  { %5416 = vmatprep.subr.bf16.mxu1 %v6310_v30  ;;  %v6323_v31 = vld [vmem:[#allocation3 + $0xb8] sm:$0xff]   ;;  %v6336_v0 = vld [vmem:[#allocation3 + $0x160] sm:$0xff]   ;;  %v6326_v5 = vld [vmem:[#allocation3 + $0xf0] sm:$0xff]  }
 0xbee   :  { %v6337_v58 = vld [vmem:[#allocation3 + $0x120] sm:$0xff]   ;;  %v6327_v16 = vld [vmem:[#allocation3 + $0xb0] sm:$0xff]   ;;  %v6340_v49 = vld [vmem:[#allocation3 + $0x158] sm:$0xff]  }
 0xbef   :  { %5459 = vmatpush3.bf16.msra.mxu0 %v6329_v27  ;;  %v6341_v7 = vld [vmem:[#allocation3 + $0x118] sm:$0xff]   ;;  %v6330_v25 = vld [vmem:[#allocation3 + $0xe8] sm:$0xff]   ;;  %v6344_v44 = vld [vmem:[#allocation3 + $0x150] sm:$0xff]  }
 0xbf0   :  { %5417 = vmatpush3.bf16.msra.mxu1 %v6311_v35  ;;  %5460 = vmatprep.subr.bf16.mxu0 %v6332_v33  ;;  %v6331_v17 = vld [vmem:[#allocation3 + $0xa8] sm:$0xff]   ;;  %v6345_v32 = vld [vmem:[#allocation3 + $0x110] sm:$0xff]   ;;  %v6334_v63 = vld [vmem:[#allocation3 + $0xe0] sm:$0xff]  }
 0xbf1   :  { %5418 = vmatprep.subr.bf16.mxu1 %v6312_v12  ;;  %v6335_v34 = vld [vmem:[#allocation3 + $0xa0] sm:$0xff]   ;;  %v6348_v28 = vld [vmem:[#allocation3 + $0x148] sm:$0xff]   ;;  %v6338_v2 = vld [vmem:[#allocation3 + $0xd8] sm:$0xff]  }
 0xbf2   :  { %v6349_v29 = vld [vmem:[#allocation3 + $0x108] sm:$0xff]   ;;  %v6339_v3 = vld [vmem:[#allocation3 + $0x98] sm:$0xff]   ;;  %v6352_v41 = vld [vmem:[#allocation3 + $0x140] sm:$0xff]  }
 0xbf3   :  { %5461 = vmatpush3.bf16.msra.mxu0 %v6333_v36  ;;  %v6353_v4 = vld [vmem:[#allocation3 + $0x100] sm:$0xff]   ;;  %v6342_v47 = vld [vmem:[#allocation3 + $0xd0] sm:$0xff]   ;;  %v6346_v45 = vld [vmem:[#allocation3 + $0xc8] sm:$0xff]  }
 0xbf4   :  { %5419 = vmatpush3.bf16.msra.mxu1 %v6313_v11  ;;  %5462 = vmatprep.subr.bf16.mxu0 %v6336_v0  ;;  %v6343_v26 = vld [vmem:[#allocation3 + $0x90] sm:$0xff]   ;;  %v6347_v21 = vld [vmem:[#allocation3 + $0x88] sm:$0xff]   ;;  %v6350_v18 = vld [vmem:[#allocation3 + $0xc0] sm:$0xff]  }
 0xbf5   :  { %5420 = vmatprep.subr.bf16.mxu1 %v6314_v59  ;;  %v6351_v14 = vld [vmem:[#allocation3 + $0x80] sm:$0xff]   ;;  %v6356_v20 = vld [vmem:[#allocation15 + $0x28] sm:$0xff]   ;;  %v6357_v54 = vld [vmem:[#allocation15 + $0x20] sm:$0xff]  }
 0xbf6   :  { %v6354_v37 = vld [vmem:[#allocation15 + $0x38] sm:$0xff]   ;;  %v6355_v60 = vld [vmem:[#allocation15 + $0x30] sm:$0xff]   ;;  %v6360_v6 = vld [vmem:[#allocation15 + $0x8] sm:$0xff]  }
 0xbf7   :  { %5463 = vmatpush3.bf16.msra.mxu0 %v6337_v58  ;;  %v6358_v57 = vld [vmem:[#allocation15 + $0x18] sm:$0xff]   ;;  %v6359_v40 = vld [vmem:[#allocation15 + $0x10] sm:$0xff]   ;;  %v6361_v13 = vld [vmem:[#allocation15] sm:$0xff]  }
 0xbf8   :  { %5421 = vmatpush3.bf16.msra.mxu1 %v6315_v38  ;;  %5464 = vmatprep.subr.bf16.mxu0 %v6340_v49 }
 0xbf9   :  { %5422 = vmatprep.subr.bf16.mxu1 %v6316_v56 }
 0xbfb   :  { %5465 = vmatpush3.bf16.msra.mxu0 %v6341_v7 }
 0xbfc   :  { %5423 = vmatpush3.bf16.msra.mxu1 %v6317_v50  ;;  %5466 = vmatprep.subr.bf16.mxu0 %v6344_v44 }
 0xbfd   :  { %5424 = vmatprep.subr.bf16.mxu1 %v6318_v10 }
 0xbff   :  { %5467 = vmatpush3.bf16.msra.mxu0 %v6345_v32 }
 0xc00   :  { %5425 = vmatpush3.bf16.msra.mxu1 %v6319_v61  ;;  %5468 = vmatprep.subr.bf16.mxu0 %v6348_v28  ;;  %v5333_v61 = vld [vmem:[#allocation17] ss:$0 sm:$0xff] }
 0xc01   :  { %5426 = vmatprep.subr.bf16.mxu1 %v6320_v19 }
 0xc03   :  { %5469 = vmatpush3.bf16.msra.mxu0 %v6349_v29 }
 0xc04   :  { %5427 = vmatpush3.bf16.msra.mxu1 %v6321_v23  ;;  %5470 = vmatprep.subr.bf16.mxu0 %v6352_v41 }
 0xc05   :  { %5434 = vmatprep.subr.bf16.mxu1 %v6322_v22 }
 0xc07   :  { %4694 = vmatmul.mubr.bf16.vlgmr.msra.gmra.mxu1 %v4271_v52  ;;  %5471 = vmatpush3.bf16.msra.mxu0 %v6353_v4 }
 0xc08   :  { %5435 = vmatpush3.bf16.msra.mxu1 %v6323_v31  ;;  %4733 = vmatprep.mubr.bf16.mxu1 %v4274_v24 }
 0xc09   :  { %5436 = vmatprep.subr.bf16.mxu1 %v6326_v5 }
 0xc0a   :  { %4774 = vmatmul.mubr.bf16.vlgmr.msra.gmra.mxu0 %v4275_v42 }
 0xc0c   :  { %5437 = vmatpush3.bf16.msra.mxu1 %v6327_v16 }
 0xc0d   :  { %5438 = vmatprep.subr.bf16.mxu1 %v6330_v25 }
 0xc10   :  { %5439 = vmatpush3.bf16.msra.mxu1 %v6331_v17 }
 0xc11   :  { %5440 = vmatprep.subr.bf16.mxu1 %v6334_v63 }
 0xc14   :  { %5441 = vmatpush3.bf16.msra.mxu1 %v6335_v34 }
 0xc15   :  { %5442 = vmatprep.subr.bf16.mxu1 %v6338_v2 }
 0xc18   :  { %5443 = vmatpush3.bf16.msra.mxu1 %v6339_v3 }
 0xc19   :  { %5444 = vmatprep.subr.bf16.mxu1 %v6342_v47 }
 0xc1c   :  { %5445 = vmatpush3.bf16.msra.mxu1 %v6343_v26 }
 0xc1d   :  { %5446 = vmatprep.subr.bf16.mxu1 %v6346_v45 }
 0xc20   :  { %5447 = vmatpush3.bf16.msra.mxu1 %v6347_v21 }
 0xc21   :  { %5448 = vmatprep.subr.bf16.mxu1 %v6350_v18 }
 0xc24   :  { %5449 = vmatpush3.bf16.msra.mxu1 %v6351_v14 }
 0xc25   :  { %5655 = vmatprep.subr.bf16.mxu1 %v6605_v48 }
 0xc27   :  { %4734 = vmatmul.mubr.bf16.vlgmr.msra.gmra.mxu1 %v4273_v39 }
 0xc28   :  { %5656 = vmatpush3.bf16.msra.mxu1 %v6354_v37  ;;  %5671 = vmatprep.mubr.msk.bf16.mxu1 %vm6608_vm5, %v6605_v48 }
 0xc29   :  { %5657 = vmatprep.subr.bf16.mxu1 %v6605_v48 }
 0xc2c   :  { %5658 = vmatpush3.bf16.msra.mxu1 %v6355_v60 }
 0xc2d   :  { %5659 = vmatprep.subr.bf16.mxu1 %v6605_v48 }
 0xc30   :  { %5660 = vmatpush3.bf16.msra.mxu1 %v6356_v20 }
 0xc31   :  { %5661 = vmatprep.subr.bf16.mxu1 %v6605_v48 }
 0xc34   :  { %5662 = vmatpush3.bf16.msra.mxu1 %v6357_v54 }
 0xc35   :  { %5663 = vmatprep.subr.bf16.mxu1 %v6605_v48 }
 0xc38   :  { %5664 = vmatpush3.bf16.msra.mxu1 %v6358_v57 }
 0xc39   :  { %5665 = vmatprep.subr.bf16.mxu1 %v6605_v48 }
 0xc3c   :  { %5666 = vmatpush3.bf16.msra.mxu1 %v6359_v40 }
 0xc3d   :  { %5667 = vmatprep.subr.bf16.mxu1 %v6605_v48 }
 0xc40   :  { %5668 = vmatpush3.bf16.msra.mxu1 %v6360_v6 }
 0xc41   :  { %5669 = vmatprep.subr.bf16.mxu1 %v6605_v48 }
 0xc44   :  { %5670 = vmatpush3.bf16.msra.mxu1 %v6361_v13 }
 0xc47   :  { %5672 = vmatmul.mubr.bf16.vlgmr.msra.gmra.mxu1 %v4254_v15 }
 0xcc7   :  { %v5428_v55 = vpop.f32.mrf.mxu1 }
 0xcc9   :  { %v5429_v62 = vpop.f32.mrf.mxu1 }
 0xcca   :  { %v5472_v9 = vpop.f32.mrf.mxu0  ;;  %v5430_v53 = vadd.f32 %v5429_v62, %v5428_v55 }
 0xccb   :  { %v5431_v8 = vpop.f32.mrf.mxu1 }
 0xccc   :  { %v5473_v30 = vpop.f32.mrf.mxu0 }
 0xccd   :  { %v5432_v43 = vpop.f32.mrf.mxu1  ;;  %v5474_v46 = vadd.f32 %v5473_v30, %v5472_v9 }
 0xcce   :  { %v5475_v35 = vpop.f32.mrf.mxu0 }
 0xcd0   :  { %v5476_v12 = vpop.f32.mrf.mxu0 }
 0xce7   :  { %v5450_v11 = vpop.f32.mrf.mxu1 }
 0xce9   :  { %v5451_v59 = vpop.f32.mrf.mxu1 }
 0xcea   :  { %v5452_v50 = vadd.f32 %v5451_v59, %v5450_v11 }
 0xceb   :  { %v5453_v38 = vpop.f32.mrf.mxu1 }
 0xcec   :  { %v4736_v48 = vadd.f32 %v5452_v50, %v5430_v53 }
 0xced   :  { %v5454_v56 = vpop.f32.mrf.mxu1 }
 0xcee   :  { %v4776_v10 = vadd.f32 %v5474_v46, %v4736_v48 }
 0xd07   :  { %v4863_v1 = vpop.f32.mrf.mxu1 }
 0xd08   :  { %v4864_v51 = vadd.f32 %v4863_v1, %v4776_v10 }
 0xd09   :  { %v5673_v27 = vpop.f32.mrf.mxu1 }
 0xd0a   :  { %v4876_v19 = vadd.f32 %v5333_v61, %v4864_v51 }
 0xd0b   :  { %v4866_v23 = vpop.f32.mrf.mxu1 }
 0xd0c   :  { %v4878_v33 = vsel %vm4877_vm7, %v4876_v19, -inf }
 0xd0d   :  { %4879 = vmax.xlane.f32.xlu0 %v4878_v33  ;;  %v5674_v36 = vpop.f32.mrf.mxu1 }
 0xd96   :  { %v4880_v22 = vpop.xlane.xlu0 %4879 }
 0xd97   :  { %v4881_v31 = vsub.f32 %v4876_v19, %v4880_v22 }
 0xd99   :  { %v4882_v52 = vmul.f32 1.442695, %v4881_v31 }
 0xd9b   :  { %6362 = vpow2.f32 %v4882_v52 }
 0xda8   :  { %v6363_v0 = vpop.eup %6362 }
 0xda9   :  { %v4884_v58 = vsel %vm4877_vm7, %v6363_v0, 0.0 }
 0xdaa   :  { %4885 = vadd.xlane.f32.xlu0 %v4884_v58 }
 0xe33   :  { %v4886_v24 = vpop.xlane.xlu0 %4885 }
 0xe34   :  { %6364 = vrcp.f32 %v4886_v24 }
 0xe41   :  { %v6365_v5 = vpop.eup %6364 }
 0xe42   :  { %v4888_v16 = vmul.f32 %v6365_v5, %v6363_v0 }
 0xe44   :  { %4889 = vst [vmem:[#allocation18] sm:$0x3] %v4888_v16 }
 0xe45   :  { %6557 = shalt.err (!%p6554_p8)
}
 0xe46   :  { %4899 = dma.vmem_to_hbm [thread:$0]  %s4897_s18, 32, %s7545_s14, [#allocation8]  }
 0xe47   :  { %6582 = dma.done.wait [#allocation8], 32  }
 0xe48   :  { %6583 = vsyncadd [#allocation8], 4294967264 }
 0xe49   :  { %4903 = vsyncpa [#allocation7], 1 }
 0xe4a   :  { %4904 = vsyncpa [#allocation10], 1 }
 0xe4b   :  { %4905 = vsyncpa [#allocation13], 1 }
 0xe4c   :  { %4906 = vsyncpa [#allocation16], 1 }
 0xe4d   :  { %4907 = vsyncpa [#allocation8], 1 }
 0xe4e   :  { %4908 = vsyncmov [#allocation5] }
 0xe51   :  { %s4909_s10 = vpop.sfrf %4908 }
 0xe52   :  { %p5334_p9 = scmp.ne.s32.totalorder %s4909_s10, 0 }
 0xe54   :  { %4913 = shalt.err (%p5334_p9)  }
 0xe55   :  { %4915 = vsyncmov [#allocation5 + $0x1] }
 0xe58   :  { %s4916_s4 = vpop.sfrf %4915 }
 0xe59   :  { %p5335_p10 = scmp.ne.s32.totalorder %s4916_s4, 0 }
 0xe5b   :  { %4920 = shalt.err (%p5335_p10)  }

</bundles_post_ra>
